<compile_context>
chip_gen: v6e
topology: v6e:2x2x1
jax: 0.10.0
libtpu: 0.0.40
codegen_flags: <defaults>
</compile_context>

<pallas_src>
import jax
import jax.numpy as jnp
from jax.experimental import pallas as pl
from jax.experimental.pallas import tpu as pltpu


def _fused_mlp_kernel(x_ref,
                      w0_ref, b0_ref,
                      w1_ref, b1_ref,
                      w2_ref, b2_ref,
                      w3_ref, b3_ref,
                      w4_ref, b4_ref,
                      o_ref):
    # Cast the f32 input tile to bf16 in VMEM/registers (input stays f32 in HBM).
    x = x_ref[...].astype(jnp.bfloat16)

    # fc: 3072 -> 512  (no ReLU in the reference forward)
    h = jnp.dot(x, w0_ref[...], preferred_element_type=jnp.float32)
    h = h + b0_ref[...]

    # fc0: 512 -> 256, ReLU
    h = jnp.dot(h.astype(jnp.bfloat16), w1_ref[...], preferred_element_type=jnp.float32)
    h = jnp.maximum(h + b1_ref[...], 0.0)

    # fc1: 256 -> 128, ReLU
    h = jnp.dot(h.astype(jnp.bfloat16), w2_ref[...], preferred_element_type=jnp.float32)
    h = jnp.maximum(h + b2_ref[...], 0.0)

    # fc2: 128 -> 64, ReLU
    h = jnp.dot(h.astype(jnp.bfloat16), w3_ref[...], preferred_element_type=jnp.float32)
    h = jnp.maximum(h + b3_ref[...], 0.0)

    # fc3: 64 -> 10, ReLU
    h = jnp.dot(h.astype(jnp.bfloat16), w4_ref[...], preferred_element_type=jnp.float32)
    h = jnp.maximum(h + b4_ref[...], 0.0)

    # self.dropout(x): identity in eval mode.
    o_ref[...] = h.astype(o_ref.dtype)


def _round_up(x, m):
    return ((x + m - 1) // m) * m


def _select_tile_n(n):
    """Pick a batch tile: prefer 512-row tiles for HBM/MXU efficiency, but keep
    the grid >= 2 steps when the batch allows (so v7x's two TensorCores both get
    work via the 'parallel' axis). Always a multiple of 16 (bf16-sublane safe)."""
    if n >= 1024:
        return 512                      # grid >= 2 automatically
    if n >= 32:
        return min(512, _round_up((n + 1) // 2, 16))  # ~2 tiles
    return _round_up(max(n, 1), 16)     # tiny batch: single small tile


def fused_relu_mlp(x2d, params, *, tile_n):
    """x2d: (Npad, 3072) f32, Npad a multiple of tile_n. Returns (Npad, 10) f32."""
    n, k = x2d.shape
    assert n % tile_n == 0

    flat_params = []
    in_specs = [pl.BlockSpec((tile_n, k), lambda i: (i, 0))]
    for (w, b) in params:
        flat_params += [w, b]
        # Weights/biases are small -> full-array constant-index blocks, so they are
        # DMA'd once and stay VMEM-resident across the whole grid.
        in_specs.append(pl.BlockSpec(w.shape, lambda i: (0, 0)))
        in_specs.append(pl.BlockSpec(b.shape, lambda i: (0, 0)))

    out_m = params[-1][0].shape[1]
    return pl.pallas_call(
        _fused_mlp_kernel,
        out_shape=jax.ShapeDtypeStruct((n, out_m), jnp.float32),
        grid=(n // tile_n,),
        in_specs=in_specs,
        out_specs=pl.BlockSpec((tile_n, out_m), lambda i: (i, 0)),
        compiler_params=pltpu.CompilerParams(
            dimension_semantics=("parallel",),
            vmem_limit_bytes=32 << 20,   # fits v7x (64 MiB part) with headroom
        ),
    )(x2d, *flat_params)


def init_linear_params(key, in_features, out_features):
    """Mimics torch.nn.Linear default init (uniform +-1/sqrt(in)).
    Weight stored as (in, out) so the kernel computes x @ W; cast to bf16 once here."""
    kw, kb = jax.random.split(key)
    bound = 1.0 / (in_features ** 0.5)
    w = jax.random.uniform(kw, (in_features, out_features), jnp.float32, -bound, bound)
    b = jax.random.uniform(kb, (1, out_features), jnp.float32, -bound, bound)
    return w.astype(jnp.bfloat16), b  # bf16 weight (MXU-native), f32 bias


def make_relu_model_params(key):
    sizes = [(32 * 32 * 3, 512), (512, 256), (256, 128), (128, 64), (64, 10)]
    keys = jax.random.split(key, len(sizes))
    return [init_linear_params(k, fin, fout) for k, (fin, fout) in zip(keys, sizes)]


@jax.jit
def relu_model_forward(x_nchw, params):
    n = x_nchw.shape[0]
    # torch.flatten(x, 1): row-major flatten of NCHW -> (N, 3072). Stays f32;
    # the bf16 cast happens inside the kernel to avoid an extra HBM round trip.
    x = jnp.reshape(x_nchw, (n, -1))

    tile_n = _select_tile_n(n)
    n_pad = _round_up(n, tile_n)
    if n_pad != n:
        x = jnp.pad(x, ((0, n_pad - n), (0, 0)))

    out = fused_relu_mlp(x, params, tile_n=tile_n)
    return out[:n]


if __name__ == "__main__":
    key = jax.random.PRNGKey(0)
    k_params, k_x = jax.random.split(key)

    params = make_relu_model_params(k_params)
    # Input consistent with the 32*32*3 flatten: (batch=4, C=3, H=32, W=32), NCHW.
    x = jax.random.normal(k_x, (4, 3, 32, 32), dtype=jnp.float32)

    out = relu_model_forward(x, params)
    out = jax.block_until_ready(out)

    assert out.shape == (4, 10), out.shape
    assert out.dtype == jnp.float32
    assert bool(jnp.all(jnp.isfinite(out)))
    # Last four layers end in ReLU, so output must be non-negative.
    assert bool(jnp.all(out >= 0.0))

    print("KERNEL_OK")
</pallas_src>

<mosaic_0001>
module attributes {stable_mosaic.version = 11 : i64} {
  func.func @_fused_mlp_kernel(%arg0: i32, %arg1: memref<16x3072xf32, #tpu.memory_space<vmem>>, %arg2: memref<3072x512xbf16, #tpu.memory_space<vmem>>, %arg3: memref<1x512xf32, #tpu.memory_space<vmem>>, %arg4: memref<512x256xbf16, #tpu.memory_space<vmem>>, %arg5: memref<1x256xf32, #tpu.memory_space<vmem>>, %arg6: memref<256x128xbf16, #tpu.memory_space<vmem>>, %arg7: memref<1x128xf32, #tpu.memory_space<vmem>>, %arg8: memref<128x64xbf16, #tpu.memory_space<vmem>>, %arg9: memref<1x64xf32, #tpu.memory_space<vmem>>, %arg10: memref<64x10xbf16, #tpu.memory_space<vmem>>, %arg11: memref<1x10xf32, #tpu.memory_space<vmem>>, %arg12: memref<16x10xf32, #tpu.memory_space<vmem>>) attributes {dimension_semantics = [#tpu.dimension_semantics<parallel>], iteration_bounds = array<i64: 1>, scalar_prefetch = 0 : i64, scratch_operands = 0 : i64, tpu.core_type = #tpu.core_type<tc>, window_params = [{transform_indices = @transform_0, window_bounds = array<i64: 16, 3072>}, {pipeline_mode = #tpu.pipeline_mode<synchronous>, transform_indices = @transform_1, window_bounds = array<i64: 3072, 512>}, {pipeline_mode = #tpu.pipeline_mode<synchronous>, transform_indices = @transform_2, window_bounds = array<i64: 1, 512>}, {pipeline_mode = #tpu.pipeline_mode<synchronous>, transform_indices = @transform_3, window_bounds = array<i64: 512, 256>}, {pipeline_mode = #tpu.pipeline_mode<synchronous>, transform_indices = @transform_4, window_bounds = array<i64: 1, 256>}, {pipeline_mode = #tpu.pipeline_mode<synchronous>, transform_indices = @transform_5, window_bounds = array<i64: 256, 128>}, {pipeline_mode = #tpu.pipeline_mode<synchronous>, transform_indices = @transform_6, window_bounds = array<i64: 1, 128>}, {pipeline_mode = #tpu.pipeline_mode<synchronous>, transform_indices = @transform_7, window_bounds = array<i64: 128, 64>}, {pipeline_mode = #tpu.pipeline_mode<synchronous>, transform_indices = @transform_8, window_bounds = array<i64: 1, 64>}, {pipeline_mode = #tpu.pipeline_mode<synchronous>, transform_indices = @transform_9, window_bounds = array<i64: 64, 10>}, {pipeline_mode = #tpu.pipeline_mode<synchronous>, transform_indices = @transform_10, window_bounds = array<i64: 1, 10>}, {transform_indices = @transform_11, window_bounds = array<i64: 16, 10>}]} {
    %c0 = arith.constant 0 : index
    %c0_0 = arith.constant 0 : index
    %0 = vector.load %arg1[%c0, %c0_0] : memref<16x3072xf32, #tpu.memory_space<vmem>>, vector<16x3072xf32>
    %1 = arith.truncf %0 : vector<16x3072xf32> to vector<16x3072xbf16>
    %c0_1 = arith.constant 0 : index
    %c0_2 = arith.constant 0 : index
    %2 = vector.load %arg2[%c0_1, %c0_2] : memref<3072x512xbf16, #tpu.memory_space<vmem>>, vector<3072x512xbf16>
    %cst = arith.constant dense<0.000000e+00> : vector<16x512xf32>
    %3 = tpu.matmul %1, %2, %cst {dimension_numbers = #tpu.dot_dimension_numbers<[1], [0], [0], [1], [0, 0, 1, 1], [], []>} : vector<16x3072xbf16>, vector<3072x512xbf16>, vector<16x512xf32> -> vector<16x512xf32>
    %c0_3 = arith.constant 0 : index
    %c0_4 = arith.constant 0 : index
    %4 = vector.load %arg3[%c0_3, %c0_4] : memref<1x512xf32, #tpu.memory_space<vmem>>, vector<1x512xf32>
    %5 = vector.broadcast %4 : vector<1x512xf32> to vector<16x512xf32>
    %6 = arith.addf %3, %5 : vector<16x512xf32>
    %7 = arith.truncf %6 : vector<16x512xf32> to vector<16x512xbf16>
    %c0_5 = arith.constant 0 : index
    %c0_6 = arith.constant 0 : index
    %8 = vector.load %arg4[%c0_5, %c0_6] : memref<512x256xbf16, #tpu.memory_space<vmem>>, vector<512x256xbf16>
    %cst_7 = arith.constant dense<0.000000e+00> : vector<16x256xf32>
    %9 = tpu.matmul %7, %8, %cst_7 {dimension_numbers = #tpu.dot_dimension_numbers<[1], [0], [0], [1], [0, 0, 1, 1], [], []>} : vector<16x512xbf16>, vector<512x256xbf16>, vector<16x256xf32> -> vector<16x256xf32>
    %c0_8 = arith.constant 0 : index
    %c0_9 = arith.constant 0 : index
    %10 = vector.load %arg5[%c0_8, %c0_9] : memref<1x256xf32, #tpu.memory_space<vmem>>, vector<1x256xf32>
    %11 = vector.broadcast %10 : vector<1x256xf32> to vector<16x256xf32>
    %12 = arith.addf %9, %11 : vector<16x256xf32>
    %cst_10 = arith.constant 0.000000e+00 : f32
    %13 = vector.broadcast %cst_10 : f32 to vector<16x256xf32>
    %14 = arith.maximumf %12, %13 : vector<16x256xf32>
    %15 = arith.truncf %14 : vector<16x256xf32> to vector<16x256xbf16>
    %c0_11 = arith.constant 0 : index
    %c0_12 = arith.constant 0 : index
    %16 = vector.load %arg6[%c0_11, %c0_12] : memref<256x128xbf16, #tpu.memory_space<vmem>>, vector<256x128xbf16>
    %cst_13 = arith.constant dense<0.000000e+00> : vector<16x128xf32>
    %17 = tpu.matmul %15, %16, %cst_13 {dimension_numbers = #tpu.dot_dimension_numbers<[1], [0], [0], [1], [0, 0, 1, 1], [], []>} : vector<16x256xbf16>, vector<256x128xbf16>, vector<16x128xf32> -> vector<16x128xf32>
    %c0_14 = arith.constant 0 : index
    %c0_15 = arith.constant 0 : index
    %18 = vector.load %arg7[%c0_14, %c0_15] : memref<1x128xf32, #tpu.memory_space<vmem>>, vector<1x128xf32>
    %19 = vector.broadcast %18 : vector<1x128xf32> to vector<16x128xf32>
    %20 = arith.addf %17, %19 : vector<16x128xf32>
    %cst_16 = arith.constant 0.000000e+00 : f32
    %21 = vector.broadcast %cst_16 : f32 to vector<16x128xf32>
    %22 = arith.maximumf %20, %21 : vector<16x128xf32>
    %23 = arith.truncf %22 : vector<16x128xf32> to vector<16x128xbf16>
    %c0_17 = arith.constant 0 : index
    %c0_18 = arith.constant 0 : index
    %24 = vector.load %arg8[%c0_17, %c0_18] : memref<128x64xbf16, #tpu.memory_space<vmem>>, vector<128x64xbf16>
    %cst_19 = arith.constant dense<0.000000e+00> : vector<16x64xf32>
    %25 = tpu.matmul %23, %24, %cst_19 {dimension_numbers = #tpu.dot_dimension_numbers<[1], [0], [0], [1], [0, 0, 1, 1], [], []>} : vector<16x128xbf16>, vector<128x64xbf16>, vector<16x64xf32> -> vector<16x64xf32>
    %c0_20 = arith.constant 0 : index
    %c0_21 = arith.constant 0 : index
    %26 = vector.load %arg9[%c0_20, %c0_21] : memref<1x64xf32, #tpu.memory_space<vmem>>, vector<1x64xf32>
    %27 = vector.broadcast %26 : vector<1x64xf32> to vector<16x64xf32>
    %28 = arith.addf %25, %27 : vector<16x64xf32>
    %cst_22 = arith.constant 0.000000e+00 : f32
    %29 = vector.broadcast %cst_22 : f32 to vector<16x64xf32>
    %30 = arith.maximumf %28, %29 : vector<16x64xf32>
    %31 = arith.truncf %30 : vector<16x64xf32> to vector<16x64xbf16>
    %c0_23 = arith.constant 0 : index
    %c0_24 = arith.constant 0 : index
    %32 = vector.load %arg10[%c0_23, %c0_24] : memref<64x10xbf16, #tpu.memory_space<vmem>>, vector<64x10xbf16>
    %cst_25 = arith.constant dense<0.000000e+00> : vector<16x10xf32>
    %33 = tpu.matmul %31, %32, %cst_25 {dimension_numbers = #tpu.dot_dimension_numbers<[1], [0], [0], [1], [0, 0, 1, 1], [], []>} : vector<16x64xbf16>, vector<64x10xbf16>, vector<16x10xf32> -> vector<16x10xf32>
    %c0_26 = arith.constant 0 : index
    %c0_27 = arith.constant 0 : index
    %34 = vector.load %arg11[%c0_26, %c0_27] : memref<1x10xf32, #tpu.memory_space<vmem>>, vector<1x10xf32>
    %35 = vector.broadcast %34 : vector<1x10xf32> to vector<16x10xf32>
    %36 = arith.addf %33, %35 : vector<16x10xf32>
    %cst_28 = arith.constant 0.000000e+00 : f32
    %37 = vector.broadcast %cst_28 : f32 to vector<16x10xf32>
    %38 = arith.maximumf %36, %37 : vector<16x10xf32>
    %c0_29 = arith.constant 0 : index
    %c0_30 = arith.constant 0 : index
    %39 = vector.load %arg12[%c0_29, %c0_30] : memref<16x10xf32, #tpu.memory_space<vmem>>, vector<16x10xf32>
    tpu.vector_store %arg12[%c0_29, %c0_30], %38 {strides = array<i32>} : memref<16x10xf32, #tpu.memory_space<vmem>>, vector<16x10xf32>,
    return
  }
  func.func @transform_0(%arg0: i32) -> (i32, i32) {
    %c0_i32 = arith.constant 0 : i32
    %c0_i32_0 = arith.constant 0 : i32
    return %arg0, %c0_i32 : i32, i32
  }
  func.func @transform_1(%arg0: i32) -> (i32, i32) {
    %c0_i32 = arith.constant 0 : i32
    %c0_i32_0 = arith.constant 0 : i32
    %c0_i32_1 = arith.constant 0 : i32
    return %c0_i32, %c0_i32_0 : i32, i32
  }
  func.func @transform_2(%arg0: i32) -> (i32, i32) {
    %c0_i32 = arith.constant 0 : i32
    %c0_i32_0 = arith.constant 0 : i32
    %c0_i32_1 = arith.constant 0 : i32
    return %c0_i32, %c0_i32_0 : i32, i32
  }
  func.func @transform_3(%arg0: i32) -> (i32, i32) {
    %c0_i32 = arith.constant 0 : i32
    %c0_i32_0 = arith.constant 0 : i32
    %c0_i32_1 = arith.constant 0 : i32
    return %c0_i32, %c0_i32_0 : i32, i32
  }
  func.func @transform_4(%arg0: i32) -> (i32, i32) {
    %c0_i32 = arith.constant 0 : i32
    %c0_i32_0 = arith.constant 0 : i32
    %c0_i32_1 = arith.constant 0 : i32
    return %c0_i32, %c0_i32_0 : i32, i32
  }
  func.func @transform_5(%arg0: i32) -> (i32, i32) {
    %c0_i32 = arith.constant 0 : i32
    %c0_i32_0 = arith.constant 0 : i32
    %c0_i32_1 = arith.constant 0 : i32
    return %c0_i32, %c0_i32_0 : i32, i32
  }
  func.func @transform_6(%arg0: i32) -> (i32, i32) {
    %c0_i32 = arith.constant 0 : i32
    %c0_i32_0 = arith.constant 0 : i32
    %c0_i32_1 = arith.constant 0 : i32
    return %c0_i32, %c0_i32_0 : i32, i32
  }
  func.func @transform_7(%arg0: i32) -> (i32, i32) {
    %c0_i32 = arith.constant 0 : i32
    %c0_i32_0 = arith.constant 0 : i32
    %c0_i32_1 = arith.constant 0 : i32
    return %c0_i32, %c0_i32_0 : i32, i32
  }
  func.func @transform_8(%arg0: i32) -> (i32, i32) {
    %c0_i32 = arith.constant 0 : i32
    %c0_i32_0 = arith.constant 0 : i32
    %c0_i32_1 = arith.constant 0 : i32
    return %c0_i32, %c0_i32_0 : i32, i32
  }
  func.func @transform_9(%arg0: i32) -> (i32, i32) {
    %c0_i32 = arith.constant 0 : i32
    %c0_i32_0 = arith.constant 0 : i32
    %c0_i32_1 = arith.constant 0 : i32
    return %c0_i32, %c0_i32_0 : i32, i32
  }
  func.func @transform_10(%arg0: i32) -> (i32, i32) {
    %c0_i32 = arith.constant 0 : i32
    %c0_i32_0 = arith.constant 0 : i32
    %c0_i32_1 = arith.constant 0 : i32
    return %c0_i32, %c0_i32_0 : i32, i32
  }
  func.func @transform_11(%arg0: i32) -> (i32, i32) {
    %c0_i32 = arith.constant 0 : i32
    %c0_i32_0 = arith.constant 0 : i32
    return %arg0, %c0_i32 : i32, i32
  }
}

</mosaic_0001>

<bundles_post_ra>
// kernel: relu_model_forward.1
= control target key start
LH: loop header
LB: loop body
LE: loop exit
PB: predicated region body
PF: predicated region fallthrough
CT: control target
= control target key end

     0   :  { %16 = vsyncpa [#allocation3], 0  ;;  %s9671_s0 = inlined_call_operand.vmem [shape: f32[16,3072], index: 0, kind: input, shape index: {}]   ;;  %s9672_s1 = inlined_call_operand.hbm [shape: bf16[3072,512], index: 1, kind: input, shape index: {}]   ;;  %s9673_s2 = inlined_call_operand.hbm [shape: f32[1,512], index: 2, kind: input, shape index: {}]   ;;  %s9674_s3 = inlined_call_operand.hbm [shape: bf16[512,256], index: 3, kind: input, shape index: {}]   ;;  %s9675_s4 = inlined_call_operand.hbm [shape: f32[1,256], index: 4, kind: input, shape index: {}]   ;;  %s9676_s5 = inlined_call_operand.hbm [shape: bf16[256,128], index: 5, kind: input, shape index: {}]   ;;  %s9677_s6 = inlined_call_operand.hbm [shape: f32[1,128], index: 6, kind: input, shape index: {}]   ;;  %s9678_s7 = inlined_call_operand.vmem [shape: bf16[128,64], index: 7, kind: input, shape index: {}]   ;;  %s9679_s8 = inlined_call_operand.hbm [shape: f32[1,64], index: 8, kind: input, shape index: {}]   ;;  %s9680_s9 = inlined_call_operand.vmem [shape: bf16[64,10], index: 9, kind: input, shape index: {}]   ;;  %s9681_s10 = inlined_call_operand.hbm [shape: f32[1,10], index: 10, kind: input, shape index: {}]   ;;  %s9682_s11 = inlined_call_operand.vmem [shape: f32[16,10], index: 11, kind: output, shape index: {}]  }
   0x1   :  { %17 = vsyncpa [#allocation5], 0 }
   0x2   :  { %18 = vsyncpa [#allocation8], 0 }
   0x3   :  { %19 = vsyncpa [#allocation11], 0 }
   0x4   :  { %20 = vsyncpa [#allocation14], 0  ;;  %s9151_s17 = smov [#allocation4]   ;;  %s9152_s19 = smov [#allocation7]  }
   0x5   :  { %s41_s18 = sshll.u32 %s9151_s17, 4  ;;  %s63_s20 = sshll.u32 %s9152_s19, 4  ;;  %s42_s18 = int_to_ptr.vmem [resolvable:$true] %s41_s18  ;;  %s64_s20 = int_to_ptr.vmem [resolvable:$true] %s63_s20 }
   0x6   :  { %s8989_s21 = scalar_lea.vmem %s42_s18, 64  ;;  %p8994_p1 = scmp.lt.s32.totalorder %s42_s18, %s42_s18 }
   0x7   :  { %p8990_p0 = scmp.ne.s32.totalorder %s42_s18, %s8989_s21  ;;  %p8995_p2 = scmp.lt.s32.totalorder %s8989_s21, %s8989_s21 }
   0x9   :  { %p8996_p3 = por %p8995_p2, %p8994_p1 }
   0xb   :  { %p8997_p4 = pnand %p8996_p3, %p8990_p0 }
   0xd   :  { %9000 = shalt.err (!%p8997_p4)
}
   0xe   :  { %44 = dma.hbm_to_vmem [thread:$0]  %s9673_s2, 64, %s42_s18, [#allocation5]  }
   0xf   :  { %s9009_s24 = scalar_lea.vmem %s64_s20, 32  ;;  %p9014_p6 = scmp.lt.s32.totalorder %s64_s20, %s64_s20 }
  0x10   :  { %p9010_p5 = scmp.ne.s32.totalorder %s64_s20, %s9009_s24  ;;  %p9015_p7 = scmp.lt.s32.totalorder %s9009_s24, %s9009_s24 }
  0x12   :  { %p9016_p8 = por %p9015_p7, %p9014_p6 }
  0x14   :  { %p9017_p9 = pnand %p9016_p8, %p9010_p5 }
  0x16   :  { %9020 = shalt.err (!%p9017_p9)
}
  0x17   :  { %66 = dma.hbm_to_vmem [thread:$0]  %s9675_s4, 32, %s64_s20, [#allocation8]  }
  0x18   :  { %s9153_s27 = smov [#allocation10]   ;;  %s9154_s29 = smov [#allocation2]  }
  0x19   :  { %s85_s28 = sshll.u32 %s9153_s27, 4  ;;  %s28_s30 = sshll.u32 %s9154_s29, 4  ;;  %s86_s28 = int_to_ptr.vmem [resolvable:$true] %s85_s28  ;;  %s29_s30 = int_to_ptr.vmem [resolvable:$true] %s28_s30 }
  0x1a   :  { %s9029_s12 = scalar_lea.vmem %s86_s28, 16  ;;  %s9033_s2 = scalar_lea.vmem %s86_s28, 32 }
  0x1b   :  { %p9030_p10 = scmp.ne.s32.totalorder %s86_s28, %s9029_s12  ;;  %p9034_p11 = scmp.lt.s32.totalorder %s86_s28, %s86_s28 }
  0x1c   :  { %p9035_p12 = scmp.lt.s32.totalorder %s9033_s2, %s9029_s12 }
  0x1e   :  { %p9036_p13 = por %p9035_p12, %p9034_p11 }
  0x20   :  { %p9037_p0 = pnand %p9036_p13, %p9030_p10 }
  0x22   :  { %9040 = shalt.err (!%p9037_p0)
}
  0x23   :  { %88 = dma.hbm_to_vmem [thread:$0]  %s9677_s6, 16, %s86_s28, [#allocation11]  }
  0x24   :  { %s9049_s15 = scalar_lea.vmem %s29_s30, 98304  ;;  %p9054_p2 = scmp.lt.s32.totalorder %s29_s30, %s29_s30 }
  0x25   :  { %p9050_p1 = scmp.ne.s32.totalorder %s29_s30, %s9049_s15  ;;  %p9055_p3 = scmp.lt.s32.totalorder %s9049_s15, %s9049_s15 }
  0x27   :  { %p9056_p4 = por %p9055_p3, %p9054_p2 }
  0x29   :  { %p9057_p5 = pnand %p9056_p4, %p9050_p1 }
  0x2b   :  { %9060 = shalt.err (!%p9057_p5)
}
  0x2c   :  { %s9155_s4 = smov 256   ;;  %s9156_s16 = smov 16  }
  0x2d   :  { %34 = dma.hbm_to_vmem [thread:$0]  %s9672_s1, 98304, %s29_s30, [#allocation3], %s9155_s4, %s9155_s4, %s9156_s16  }
  0x2e   :  { %s9157_s19 = smov [#allocation6]  }
  0x2f   :  { %s50_s20 = sshll.u32 %s9157_s19, 4  ;;  %s51_s20 = int_to_ptr.vmem [resolvable:$true] %s50_s20 }
  0x30   :  { %s9069_s21 = scalar_lea.vmem %s51_s20, 8192  ;;  %p9074_p7 = scmp.lt.s32.totalorder %s51_s20, %s51_s20 }
  0x31   :  { %p9070_p6 = scmp.ne.s32.totalorder %s51_s20, %s9069_s21  ;;  %p9075_p8 = scmp.lt.s32.totalorder %s9069_s21, %s9069_s21 }
  0x33   :  { %p9076_p9 = por %p9075_p8, %p9074_p7 }
  0x35   :  { %p9077_p10 = pnand %p9076_p9, %p9070_p6 }
  0x37   :  { %9080 = shalt.err (!%p9077_p10)
}
  0x38   :  { %s9158_s6 = smov 128   ;;  %s9159_s22 = smov 8  }
  0x39   :  { %56 = dma.hbm_to_vmem [thread:$0]  %s9674_s3, 8192, %s51_s20, [#allocation5], %s9158_s6, %s9158_s6, %s9159_s22  }
  0x3a   :  { %s9160_s25 = smov [#allocation9]  }
  0x3b   :  { %s72_s26 = sshll.u32 %s9160_s25, 4  ;;  %s73_s26 = int_to_ptr.vmem [resolvable:$true] %s72_s26 }
  0x3c   :  { %s9089_s1 = scalar_lea.vmem %s73_s26, 2048  ;;  %p9094_p12 = scmp.lt.s32.totalorder %s73_s26, %s73_s26 }
  0x3d   :  { %p9090_p11 = scmp.ne.s32.totalorder %s73_s26, %s9089_s1  ;;  %p9095_p13 = scmp.lt.s32.totalorder %s9089_s1, %s9089_s1 }
  0x3f   :  { %p9096_p0 = por %p9095_p13, %p9094_p12 }
  0x41   :  { %p9097_p1 = pnand %p9096_p0, %p9090_p11 }
  0x43   :  { %9100 = shalt.err (!%p9097_p1)
}
  0x44   :  { %s9161_s27 = smov 64   ;;  %s9162_s28 = smov 4  }
  0x45   :  { %78 = dma.hbm_to_vmem [thread:$0]  %s9676_s5, 2048, %s73_s26, [#allocation8], %s9161_s27, %s9161_s27, %s9162_s28  }
  0x46   :  { %s9163_s12 = smov [#allocation12]   ;;  %s9164_s13 = smov [#allocation13]  }
  0x47   :  { %s97_s2 = sshll.u32 %s9163_s12, 4  ;;  %s109_s3 = sshll.u32 %s9164_s13, 4  ;;  %s98_s2 = int_to_ptr.vmem [resolvable:$true] %s97_s2  ;;  %s110_s3 = int_to_ptr.vmem [resolvable:$true] %s109_s3 }
  0x48   :  { %s9109_s14 = scalar_lea.vmem %s98_s2, 16  ;;  %s9113_s15 = scalar_lea.vmem %s98_s2, 32 }
  0x49   :  { %p9110_p2 = scmp.ne.s32.totalorder %s98_s2, %s9109_s14  ;;  %p9114_p3 = scmp.lt.s32.totalorder %s98_s2, %s98_s2 }
  0x4a   :  { %p9115_p4 = scmp.lt.s32.totalorder %s9113_s15, %s9109_s14 }
  0x4c   :  { %p9116_p5 = por %p9115_p4, %p9114_p3 }
  0x4e   :  { %p9117_p6 = pnand %p9116_p5, %p9110_p2 }
  0x50   :  { %9120 = shalt.err (!%p9117_p6)
}
  0x51   :  { %100 = dma.hbm_to_vmem [thread:$0]  %s9679_s8, 16, %s98_s2, [#allocation11]  }
  0x52   :  { %s9129_s17 = scalar_lea.vmem %s110_s3, 16  ;;  %s9133_s5 = scalar_lea.vmem %s110_s3, 32 }
  0x53   :  { %p9130_p7 = scmp.ne.s32.totalorder %s110_s3, %s9129_s17  ;;  %p9134_p8 = scmp.lt.s32.totalorder %s110_s3, %s110_s3 }
  0x54   :  { %p9135_p9 = scmp.lt.s32.totalorder %s9133_s5, %s9129_s17 }
  0x56   :  { %p9136_p10 = por %p9135_p9, %p9134_p8 }
  0x58   :  { %p9137_p11 = pnand %p9136_p10, %p9130_p7 }
  0x5a   :  { %9140 = shalt.err (!%p9137_p11)
}
  0x5b   :  { %112 = dma.hbm_to_vmem [thread:$0]  %s9681_s10, 16, %s110_s3, [#allocation14]  }
  0x5c   :  { %9141 = dma.done.wait [#allocation3], 98304  }
  0x5d   :  { %9142 = vsyncadd [#allocation3], 4294868992 }
  0x5e   :  { %9143 = dma.done.wait [#allocation5], 8256  }
  0x5f   :  { %9144 = vsyncadd [#allocation5], 4294959040 }
  0x60   :  { %9145 = dma.done.wait [#allocation8], 2080  }
  0x61   :  { %9146 = vsyncadd [#allocation8], 4294965216 }
  0x62   :  { %9147 = dma.done.wait [#allocation11], 32  }
  0x63   :  { %9148 = vsyncadd [#allocation11], 4294967264 }
  0x64   :  { %9149 = dma.done.wait [#allocation14], 16  }
  0x65   :  { %9150 = vsyncadd [#allocation14], 4294967280  ;;  %v7704_v0 = vld [vmem:[#allocation2 + $0xe4] ss:$16 sps:$4 sm:$0xff]   ;;  %v7708_v2 = vld [vmem:[#allocation2 + $0xe0] ss:$16 sps:$4 sm:$0xff]  }
  0x66   :  { %v7706_v1 = vld [vmem:[#allocation2 + $0x2e4] ss:$16 sps:$4 sm:$0xff]   ;;  %4840 = vmatprep.subr.bf16.mxu0 %v7704_v0  ;;  %v7709_v3 = vld [vmem:[#allocation2 + $0x2e0] ss:$16 sps:$4 sm:$0xff]   ;;  %v139_v46 = vld [vmem:[%s9671_s0 + $0x8] sm:$0xff]  ;;  %vm9166_vm0 = vmmov 0  }
  0x67   :  { %4883 = vmatprep.subr.bf16.mxu1 %v7706_v1  ;;  %v7710_v4 = vld [vmem:[#allocation2 + $0xc4] ss:$16 sps:$4 sm:$0xff]   ;;  %4841 = vmatpush1.bf16.msra.mxu0 %v7708_v2  ;;  %v7714_v6 = vld [vmem:[#allocation2 + $0xc0] ss:$16 sps:$4 sm:$0xff]   ;;  %v163_v47 = vld [vmem:[%s9671_s0 + $0xc8] sm:$0xff]  ;;  %vm6697_vm1 = vcmask 523264  }
  0x68   :  { %4884 = vmatpush1.bf16.msra.mxu1 %v7709_v3  ;;  %v7712_v5 = vld [vmem:[#allocation2 + $0x2c4] ss:$16 sps:$4 sm:$0xff]   ;;  %4842 = vmatprep.subr.bf16.mxu0 %v7710_v4  ;;  %v7715_v7 = vld [vmem:[#allocation2 + $0x2c0] ss:$16 sps:$4 sm:$0xff]   ;;  %v141_v48 = vld [vmem:[%s9671_s0 + $0x18] sm:$0xff]  ;;  %v9263_v53 = vpack.c.bf16 %v163_v47, %v139_v46  ;;  %vm6744_vm2 = vcmask 80896  }
  0x69   :  { %4885 = vmatprep.subr.bf16.mxu1 %v7712_v5  ;;  %v7716_v8 = vld [vmem:[#allocation2 + $0xa4] ss:$16 sps:$4 sm:$0xff]   ;;  %v7720_v10 = vld [vmem:[#allocation2 + $0xa0] ss:$16 sps:$4 sm:$0xff]   ;;  %v165_v49 = vld [vmem:[%s9671_s0 + $0xd8] sm:$0xff] }
  0x6a   :  { %v7718_v9 = vld [vmem:[#allocation2 + $0x2a4] ss:$16 sps:$4 sm:$0xff]   ;;  %v7721_v11 = vld [vmem:[#allocation2 + $0x2a0] ss:$16 sps:$4 sm:$0xff]   ;;  %v9265_v54 = vpack.c.bf16 %v165_v49, %v141_v48  ;;  %4872 = vmatprep.mubr.bf16.mxu0 %v9263_v53  ;;  %v169_v46 = vld [vmem:[%s9671_s0 + $0xf8] sm:$0xff] }
  0x6b   :  { %4843 = vmatpush1.bf16.msra.mxu0 %v7714_v6  ;;  %v7722_v12 = vld [vmem:[#allocation2 + $0x84] ss:$16 sps:$4 sm:$0xff]   ;;  %v7726_v14 = vld [vmem:[#allocation2 + $0x80] ss:$16 sps:$4 sm:$0xff]  }
  0x6c   :  { %4886 = vmatpush1.bf16.msra.mxu1 %v7715_v7  ;;  %4844 = vmatprep.subr.bf16.mxu0 %v7716_v8  ;;  %v7724_v13 = vld [vmem:[#allocation2 + $0x284] ss:$16 sps:$4 sm:$0xff]   ;;  %v7727_v15 = vld [vmem:[#allocation2 + $0x280] ss:$16 sps:$4 sm:$0xff]  }
  0x6d   :  { %4887 = vmatprep.subr.bf16.mxu1 %v7718_v9  ;;  %v7728_v16 = vld [vmem:[#allocation2 + $0x64] ss:$16 sps:$4 sm:$0xff]   ;;  %v7732_v18 = vld [vmem:[#allocation2 + $0x60] ss:$16 sps:$4 sm:$0xff]   ;;  %4915 = vmatprep.mubr.bf16.mxu1 %v9265_v54 }
  0x6e   :  { %v7730_v17 = vld [vmem:[#allocation2 + $0x264] ss:$16 sps:$4 sm:$0xff]   ;;  %v7733_v19 = vld [vmem:[#allocation2 + $0x260] ss:$16 sps:$4 sm:$0xff]  }
  0x6f   :  { %4845 = vmatpush1.bf16.msra.mxu0 %v7720_v10  ;;  %v7734_v20 = vld [vmem:[#allocation2 + $0x44] ss:$16 sps:$4 sm:$0xff]   ;;  %v7738_v22 = vld [vmem:[#allocation2 + $0x40] ss:$16 sps:$4 sm:$0xff]  }
  0x70   :  { %4888 = vmatpush1.bf16.msra.mxu1 %v7721_v11  ;;  %4846 = vmatprep.subr.bf16.mxu0 %v7722_v12  ;;  %v7736_v21 = vld [vmem:[#allocation2 + $0x244] ss:$16 sps:$4 sm:$0xff]   ;;  %v7739_v23 = vld [vmem:[#allocation2 + $0x240] ss:$16 sps:$4 sm:$0xff]  }
  0x71   :  { %4889 = vmatprep.subr.bf16.mxu1 %v7724_v13  ;;  %v7740_v24 = vld [vmem:[#allocation2 + $0x24] ss:$16 sps:$4 sm:$0xff]   ;;  %v7744_v26 = vld [vmem:[#allocation2 + $0x20] ss:$16 sps:$4 sm:$0xff]  }
  0x72   :  { %v7742_v25 = vld [vmem:[#allocation2 + $0x224] ss:$16 sps:$4 sm:$0xff]   ;;  %v7745_v27 = vld [vmem:[#allocation2 + $0x220] ss:$16 sps:$4 sm:$0xff]  }
  0x73   :  { %4847 = vmatpush1.bf16.msra.mxu0 %v7726_v14  ;;  %v7746_v28 = vld [vmem:[#allocation2 + $0x4] ss:$16 sps:$4 sm:$0xff]   ;;  %v7750_v30 = vld [vmem:[#allocation2] ss:$16 sps:$4 sm:$0xff]  }
  0x74   :  { %4890 = vmatpush1.bf16.msra.mxu1 %v7727_v15  ;;  %4848 = vmatprep.subr.bf16.mxu0 %v7728_v16  ;;  %v7748_v29 = vld [vmem:[#allocation2 + $0x204] ss:$16 sps:$4 sm:$0xff]   ;;  %v7751_v31 = vld [vmem:[#allocation2 + $0x200] ss:$16 sps:$4 sm:$0xff]  }
  0x75   :  { %4891 = vmatprep.subr.bf16.mxu1 %v7730_v17  ;;  %v7752_v32 = vld [vmem:[#allocation2 + $0x1e4] ss:$16 sps:$4 sm:$0xff]   ;;  %v7756_v34 = vld [vmem:[#allocation2 + $0x1e0] ss:$16 sps:$4 sm:$0xff]  }
  0x76   :  { %v7754_v33 = vld [vmem:[#allocation2 + $0x3e4] ss:$16 sps:$4 sm:$0xff]   ;;  %v7757_v35 = vld [vmem:[#allocation2 + $0x3e0] ss:$16 sps:$4 sm:$0xff]  }
  0x77   :  { %4849 = vmatpush1.bf16.msra.mxu0 %v7732_v18  ;;  %v7758_v36 = vld [vmem:[#allocation2 + $0x1c4] ss:$16 sps:$4 sm:$0xff]   ;;  %v7762_v38 = vld [vmem:[#allocation2 + $0x1c0] ss:$16 sps:$4 sm:$0xff]  }
  0x78   :  { %4892 = vmatpush1.bf16.msra.mxu1 %v7733_v19  ;;  %4850 = vmatprep.subr.bf16.mxu0 %v7734_v20  ;;  %v7760_v37 = vld [vmem:[#allocation2 + $0x3c4] ss:$16 sps:$4 sm:$0xff]   ;;  %v7763_v39 = vld [vmem:[#allocation2 + $0x3c0] ss:$16 sps:$4 sm:$0xff]  }
  0x79   :  { %4893 = vmatprep.subr.bf16.mxu1 %v7736_v21  ;;  %v7764_v40 = vld [vmem:[#allocation2 + $0x1a4] ss:$16 sps:$4 sm:$0xff]   ;;  %v7768_v42 = vld [vmem:[#allocation2 + $0x1a0] ss:$16 sps:$4 sm:$0xff]  }
  0x7a   :  { %v7766_v41 = vld [vmem:[#allocation2 + $0x3a4] ss:$16 sps:$4 sm:$0xff]   ;;  %v7769_v43 = vld [vmem:[#allocation2 + $0x3a0] ss:$16 sps:$4 sm:$0xff]  }
  0x7b   :  { %4851 = vmatpush1.bf16.msra.mxu0 %v7738_v22  ;;  %v7770_v44 = vld [vmem:[#allocation2 + $0x184] ss:$16 sps:$4 sm:$0xff]   ;;  %v7774_v50 = vld [vmem:[#allocation2 + $0x180] ss:$16 sps:$4 sm:$0xff]  }
  0x7c   :  { %4894 = vmatpush1.bf16.msra.mxu1 %v7739_v23  ;;  %4852 = vmatprep.subr.bf16.mxu0 %v7740_v24  ;;  %v7772_v45 = vld [vmem:[#allocation2 + $0x384] ss:$16 sps:$4 sm:$0xff]   ;;  %v7775_v51 = vld [vmem:[#allocation2 + $0x380] ss:$16 sps:$4 sm:$0xff]  }
  0x7d   :  { %4895 = vmatprep.subr.bf16.mxu1 %v7742_v25  ;;  %v7776_v52 = vld [vmem:[#allocation2 + $0x164] ss:$16 sps:$4 sm:$0xff]   ;;  %v7780_v56 = vld [vmem:[#allocation2 + $0x160] ss:$16 sps:$4 sm:$0xff]  }
  0x7e   :  { %v7778_v55 = vld [vmem:[#allocation2 + $0x364] ss:$16 sps:$4 sm:$0xff]   ;;  %v7781_v57 = vld [vmem:[#allocation2 + $0x360] ss:$16 sps:$4 sm:$0xff]  }
  0x7f   :  { %4853 = vmatpush1.bf16.msra.mxu0 %v7744_v26  ;;  %v7782_v58 = vld [vmem:[#allocation2 + $0x144] ss:$16 sps:$4 sm:$0xff]   ;;  %v7786_v60 = vld [vmem:[#allocation2 + $0x140] ss:$16 sps:$4 sm:$0xff]  }
  0x80   :  { %4896 = vmatpush1.bf16.msra.mxu1 %v7745_v27  ;;  %4854 = vmatprep.subr.bf16.mxu0 %v7746_v28  ;;  %v7784_v59 = vld [vmem:[#allocation2 + $0x344] ss:$16 sps:$4 sm:$0xff]   ;;  %v7787_v61 = vld [vmem:[#allocation2 + $0x340] ss:$16 sps:$4 sm:$0xff]  }
  0x81   :  { %4897 = vmatprep.subr.bf16.mxu1 %v7748_v29  ;;  %v7788_v62 = vld [vmem:[#allocation2 + $0x124] ss:$16 sps:$4 sm:$0xff]   ;;  %v7792_v0 = vld [vmem:[#allocation2 + $0x120] ss:$16 sps:$4 sm:$0xff]  }
  0x82   :  { %v7790_v63 = vld [vmem:[#allocation2 + $0x324] ss:$16 sps:$4 sm:$0xff]   ;;  %v7793_v1 = vld [vmem:[#allocation2 + $0x320] ss:$16 sps:$4 sm:$0xff]  }
  0x83   :  { %4855 = vmatpush1.bf16.msra.mxu0 %v7750_v30  ;;  %v7794_v2 = vld [vmem:[#allocation2 + $0x104] ss:$16 sps:$4 sm:$0xff]   ;;  %v7798_v4 = vld [vmem:[#allocation2 + $0x100] ss:$16 sps:$4 sm:$0xff]  }
  0x84   :  { %4898 = vmatpush1.bf16.msra.mxu1 %v7751_v31  ;;  %4856 = vmatprep.subr.bf16.mxu0 %v7752_v32  ;;  %v7796_v3 = vld [vmem:[#allocation2 + $0x304] ss:$16 sps:$4 sm:$0xff]   ;;  %v7799_v5 = vld [vmem:[#allocation2 + $0x300] ss:$16 sps:$4 sm:$0xff]  }
  0x85   :  { %4899 = vmatprep.subr.bf16.mxu1 %v7754_v33  ;;  %v138_v6 = vld [vmem:[%s9671_s0] sm:$0xff]  ;;  %v140_v8 = vld [vmem:[%s9671_s0 + $0x10] sm:$0xff] }
  0x86   :  { %v162_v7 = vld [vmem:[%s9671_s0 + $0xc0] sm:$0xff]  ;;  %v164_v9 = vld [vmem:[%s9671_s0 + $0xd0] sm:$0xff] }
  0x87   :  { %4857 = vmatpush2.bf16.msra.mxu0 %v7756_v34  ;;  %v7802_v10 = vld [vmem:[#allocation2 + $0x4e4] ss:$16 sps:$4 sm:$0xff]   ;;  %v9281_v12 = vpack.c.bf16 %v162_v7, %v138_v6  ;;  %v9283_v13 = vpack.c.bf16 %v164_v9, %v140_v8  ;;  %v7800_v14 = vld [vmem:[#allocation2 + $0x4e0] ss:$16 sps:$4 sm:$0xff]  }
  0x88   :  { %4900 = vmatpush2.bf16.msra.mxu1 %v7757_v35  ;;  %4858 = vmatprep.subr.bf16.mxu0 %v7758_v36  ;;  %v7805_v11 = vld [vmem:[#allocation2 + $0x6e4] ss:$16 sps:$4 sm:$0xff]   ;;  %v7803_v15 = vld [vmem:[#allocation2 + $0x6e0] ss:$16 sps:$4 sm:$0xff]  }
  0x89   :  { %4901 = vmatprep.subr.bf16.mxu1 %v7760_v37  ;;  %v7808_v16 = vld [vmem:[#allocation2 + $0x4c4] ss:$16 sps:$4 sm:$0xff]   ;;  %v7806_v18 = vld [vmem:[#allocation2 + $0x4c0] ss:$16 sps:$4 sm:$0xff]  }
  0x8a   :  { %v7811_v17 = vld [vmem:[#allocation2 + $0x6c4] ss:$16 sps:$4 sm:$0xff]   ;;  %v7809_v19 = vld [vmem:[#allocation2 + $0x6c0] ss:$16 sps:$4 sm:$0xff]  }
  0x8b   :  { %4859 = vmatpush2.bf16.msra.mxu0 %v7762_v38  ;;  %v7814_v20 = vld [vmem:[#allocation2 + $0x4a4] ss:$16 sps:$4 sm:$0xff]   ;;  %v7812_v22 = vld [vmem:[#allocation2 + $0x4a0] ss:$16 sps:$4 sm:$0xff]  }
  0x8c   :  { %4902 = vmatpush2.bf16.msra.mxu1 %v7763_v39  ;;  %4860 = vmatprep.subr.bf16.mxu0 %v7764_v40  ;;  %v7817_v21 = vld [vmem:[#allocation2 + $0x6a4] ss:$16 sps:$4 sm:$0xff]   ;;  %v7815_v23 = vld [vmem:[#allocation2 + $0x6a0] ss:$16 sps:$4 sm:$0xff]   ;;  %v143_v40 = vld [vmem:[%s9671_s0 + $0x28] sm:$0xff] }
  0x8d   :  { %4903 = vmatprep.subr.bf16.mxu1 %v7766_v41  ;;  %v7820_v24 = vld [vmem:[#allocation2 + $0x484] ss:$16 sps:$4 sm:$0xff]   ;;  %v7818_v26 = vld [vmem:[#allocation2 + $0x480] ss:$16 sps:$4 sm:$0xff]   ;;  %v167_v41 = vld [vmem:[%s9671_s0 + $0xe8] sm:$0xff] }
  0x8e   :  { %v7823_v25 = vld [vmem:[#allocation2 + $0x684] ss:$16 sps:$4 sm:$0xff]   ;;  %v7821_v27 = vld [vmem:[#allocation2 + $0x680] ss:$16 sps:$4 sm:$0xff]  }
  0x8f   :  { %4861 = vmatpush2.bf16.msra.mxu0 %v7768_v42  ;;  %v7826_v28 = vld [vmem:[#allocation2 + $0x464] ss:$16 sps:$4 sm:$0xff]   ;;  %v7824_v30 = vld [vmem:[#allocation2 + $0x460] ss:$16 sps:$4 sm:$0xff]   ;;  %v145_v42 = vld [vmem:[%s9671_s0 + $0x38] sm:$0xff] }
  0x90   :  { %4904 = vmatpush2.bf16.msra.mxu1 %v7769_v43  ;;  %4862 = vmatprep.subr.bf16.mxu0 %v7770_v44  ;;  %v7829_v29 = vld [vmem:[#allocation2 + $0x664] ss:$16 sps:$4 sm:$0xff]   ;;  %v7827_v31 = vld [vmem:[#allocation2 + $0x660] ss:$16 sps:$4 sm:$0xff]   ;;  %v9301_v47 = vpack.c.bf16 %v169_v46, %v145_v42  ;;  %v173_v42 = vld [vmem:[%s9671_s0 + $0x118] sm:$0xff] }
  0x91   :  { %4905 = vmatprep.subr.bf16.mxu1 %v7772_v45  ;;  %v7832_v32 = vld [vmem:[#allocation2 + $0x444] ss:$16 sps:$4 sm:$0xff]   ;;  %v7830_v34 = vld [vmem:[#allocation2 + $0x440] ss:$16 sps:$4 sm:$0xff]   ;;  %v9296_v45 = vpack.c.bf16 %v167_v41, %v143_v40  ;;  %v149_v41 = vld [vmem:[%s9671_s0 + $0x58] sm:$0xff] }
  0x92   :  { %v7835_v33 = vld [vmem:[#allocation2 + $0x644] ss:$16 sps:$4 sm:$0xff]   ;;  %v7833_v35 = vld [vmem:[#allocation2 + $0x640] ss:$16 sps:$4 sm:$0xff]   ;;  %v9337_v46 = vpack.c.bf16 %v173_v42, %v149_v41 }
  0x93   :  { %4863 = vmatpush2.bf16.msra.mxu0 %v7774_v50  ;;  %v7838_v36 = vld [vmem:[#allocation2 + $0x424] ss:$16 sps:$4 sm:$0xff]   ;;  %v7836_v38 = vld [vmem:[#allocation2 + $0x420] ss:$16 sps:$4 sm:$0xff]  }
  0x94   :  { %4906 = vmatpush2.bf16.msra.mxu1 %v7775_v51  ;;  %4864 = vmatprep.subr.bf16.mxu0 %v7776_v52  ;;  %v7841_v37 = vld [vmem:[#allocation2 + $0x624] ss:$16 sps:$4 sm:$0xff]   ;;  %v7839_v39 = vld [vmem:[#allocation2 + $0x620] ss:$16 sps:$4 sm:$0xff]  }
  0x95   :  { %4907 = vmatprep.subr.bf16.mxu1 %v7778_v55  ;;  %v7844_v43 = vld [vmem:[#allocation2 + $0x404] ss:$16 sps:$4 sm:$0xff]   ;;  %v7842_v48 = vld [vmem:[#allocation2 + $0x400] ss:$16 sps:$4 sm:$0xff]  }
  0x96   :  { %v7847_v44 = vld [vmem:[#allocation2 + $0x604] ss:$16 sps:$4 sm:$0xff]   ;;  %v7845_v49 = vld [vmem:[#allocation2 + $0x600] ss:$16 sps:$4 sm:$0xff]  }
  0x97   :  { %4865 = vmatpush2.bf16.msra.mxu0 %v7780_v56  ;;  %v7850_v50 = vld [vmem:[#allocation2 + $0x5e4] ss:$16 sps:$4 sm:$0xff]   ;;  %v7848_v52 = vld [vmem:[#allocation2 + $0x5e0] ss:$16 sps:$4 sm:$0xff]  }
  0x98   :  { %4908 = vmatpush2.bf16.msra.mxu1 %v7781_v57  ;;  %4866 = vmatprep.subr.bf16.mxu0 %v7782_v58  ;;  %v7853_v51 = vld [vmem:[#allocation2 + $0x7e4] ss:$16 sps:$4 sm:$0xff]   ;;  %v7851_v55 = vld [vmem:[#allocation2 + $0x7e0] ss:$16 sps:$4 sm:$0xff]  }
  0x99   :  { %4909 = vmatprep.subr.bf16.mxu1 %v7784_v59  ;;  %v7856_v56 = vld [vmem:[#allocation2 + $0x5c4] ss:$16 sps:$4 sm:$0xff]   ;;  %v7854_v58 = vld [vmem:[#allocation2 + $0x5c0] ss:$16 sps:$4 sm:$0xff]  }
  0x9a   :  { %v7859_v57 = vld [vmem:[#allocation2 + $0x7c4] ss:$16 sps:$4 sm:$0xff]   ;;  %v7857_v59 = vld [vmem:[#allocation2 + $0x7c0] ss:$16 sps:$4 sm:$0xff]  }
  0x9b   :  { %4867 = vmatpush2.bf16.msra.mxu0 %v7786_v60  ;;  %v7862_v60 = vld [vmem:[#allocation2 + $0x5a4] ss:$16 sps:$4 sm:$0xff]   ;;  %v7872_v6 = vld [vmem:[#allocation2 + $0x560] ss:$16 sps:$4 sm:$0xff]  }
  0x9c   :  { %4910 = vmatpush2.bf16.msra.mxu1 %v7787_v61  ;;  %4868 = vmatprep.subr.bf16.mxu0 %v7788_v62  ;;  %v7865_v61 = vld [vmem:[#allocation2 + $0x7a4] ss:$16 sps:$4 sm:$0xff]   ;;  %v7860_v62 = vld [vmem:[#allocation2 + $0x5a0] ss:$16 sps:$4 sm:$0xff]  }
  0x9d   :  { %4911 = vmatprep.subr.bf16.mxu1 %v7790_v63  ;;  %v7863_v63 = vld [vmem:[#allocation2 + $0x7a0] ss:$16 sps:$4 sm:$0xff]   ;;  %v7880_v8 = vld [vmem:[#allocation2 + $0x544] ss:$16 sps:$4 sm:$0xff]  }
  0x9e   :  { %v7875_v7 = vld [vmem:[#allocation2 + $0x760] ss:$16 sps:$4 sm:$0xff]   ;;  %v7883_v9 = vld [vmem:[#allocation2 + $0x744] ss:$16 sps:$4 sm:$0xff]  }
  0x9f   :  { %4869 = vmatpush2.bf16.msra.mxu0 %v7792_v0  ;;  %v7868_v0 = vld [vmem:[#allocation2 + $0x584] ss:$16 sps:$4 sm:$0xff]   ;;  %v7986_v41 = vld [vmem:[#allocation2 + $0x900] ss:$16 sps:$4 sm:$0xff]  }
  0xa0   :  { %4912 = vmatpush2.bf16.msra.mxu1 %v7793_v1  ;;  %4870 = vmatprep.subr.bf16.mxu0 %v7794_v2  ;;  %v7871_v1 = vld [vmem:[#allocation2 + $0x784] ss:$16 sps:$4 sm:$0xff]   ;;  %v7866_v2 = vld [vmem:[#allocation2 + $0x580] ss:$16 sps:$4 sm:$0xff]  }
  0xa1   :  { %4913 = vmatprep.subr.bf16.mxu1 %v7796_v3  ;;  %v7869_v3 = vld [vmem:[#allocation2 + $0x780] ss:$16 sps:$4 sm:$0xff]  }
  0xa2   :  { %v7989_v42 = vld [vmem:[#allocation2 + $0xb00] ss:$16 sps:$4 sm:$0xff]  }
  0xa3   :  { %4871 = vmatpush2.bf16.msra.mxu0 %v7798_v4  ;;  %v7874_v4 = vld [vmem:[#allocation2 + $0x564] ss:$16 sps:$4 sm:$0xff]  }
  0xa4   :  { %4914 = vmatpush2.bf16.msra.mxu1 %v7799_v5  ;;  %4926 = vmatprep.subr.bf16.mxu0 %v7802_v10  ;;  %v7877_v5 = vld [vmem:[#allocation2 + $0x764] ss:$16 sps:$4 sm:$0xff]   ;;  %v7878_v10 = vld [vmem:[#allocation2 + $0x540] ss:$16 sps:$4 sm:$0xff]  }
  0xa5   :  { %4969 = vmatprep.subr.bf16.mxu1 %v7805_v11  ;;  %v7881_v11 = vld [vmem:[#allocation2 + $0x740] ss:$16 sps:$4 sm:$0xff]  }
  0xa6   :  { %4873 = vmatmul.mubr.bf16.vlgmr.msra.gmra.mxu0 %v9281_v12 }
  0xa7   :  { %4916 = vmatmul.mubr.bf16.vlgmr.msra.gmra.mxu1 %v9283_v13  ;;  %4927 = vmatpush1.bf16.msra.mxu0 %v7800_v14  ;;  %v7886_v14 = vld [vmem:[#allocation2 + $0x524] ss:$16 sps:$4 sm:$0xff]  }
  0xa8   :  { %4970 = vmatpush1.bf16.msra.mxu1 %v7803_v15  ;;  %4928 = vmatprep.subr.bf16.mxu0 %v7808_v16  ;;  %v7889_v15 = vld [vmem:[#allocation2 + $0x724] ss:$16 sps:$4 sm:$0xff]   ;;  %v7884_v16 = vld [vmem:[#allocation2 + $0x520] ss:$16 sps:$4 sm:$0xff]  }
  0xa9   :  { %4971 = vmatprep.subr.bf16.mxu1 %v7811_v17  ;;  %4958 = vmatprep.mubr.bf16.mxu0 %v9296_v45  ;;  %v7887_v17 = vld [vmem:[#allocation2 + $0x720] ss:$16 sps:$4 sm:$0xff]  }
  0xaa   :  { %5001 = vmatprep.mubr.bf16.mxu1 %v9301_v47 }
  0xab   :  { %4929 = vmatpush1.bf16.msra.mxu0 %v7806_v18  ;;  %v7892_v18 = vld [vmem:[#allocation2 + $0x504] ss:$16 sps:$4 sm:$0xff]  }
  0xac   :  { %4972 = vmatpush1.bf16.msra.mxu1 %v7809_v19  ;;  %4930 = vmatprep.subr.bf16.mxu0 %v7814_v20  ;;  %v7895_v19 = vld [vmem:[#allocation2 + $0x704] ss:$16 sps:$4 sm:$0xff]   ;;  %v7890_v20 = vld [vmem:[#allocation2 + $0x500] ss:$16 sps:$4 sm:$0xff]  }
  0xad   :  { %4973 = vmatprep.subr.bf16.mxu1 %v7817_v21  ;;  %v7893_v21 = vld [vmem:[#allocation2 + $0x700] ss:$16 sps:$4 sm:$0xff]  }
  0xaf   :  { %4931 = vmatpush1.bf16.msra.mxu0 %v7812_v22  ;;  %v142_v22 = vld [vmem:[%s9671_s0 + $0x20] sm:$0xff] }
  0xb0   :  { %4974 = vmatpush1.bf16.msra.mxu1 %v7815_v23  ;;  %4932 = vmatprep.subr.bf16.mxu0 %v7820_v24  ;;  %v166_v23 = vld [vmem:[%s9671_s0 + $0xe0] sm:$0xff]  ;;  %v144_v24 = vld [vmem:[%s9671_s0 + $0x30] sm:$0xff] }
  0xb1   :  { %4975 = vmatprep.subr.bf16.mxu1 %v7823_v25  ;;  %v168_v25 = vld [vmem:[%s9671_s0 + $0xf0] sm:$0xff] }
  0xb3   :  { %4933 = vmatpush1.bf16.msra.mxu0 %v7818_v26  ;;  %v7898_v26 = vld [vmem:[#allocation2 + $0x8e4] ss:$16 sps:$4 sm:$0xff]  }
  0xb4   :  { %4976 = vmatpush1.bf16.msra.mxu1 %v7821_v27  ;;  %4934 = vmatprep.subr.bf16.mxu0 %v7826_v28  ;;  %v7901_v27 = vld [vmem:[#allocation2 + $0xae4] ss:$16 sps:$4 sm:$0xff]   ;;  %v9317_v28 = vpack.c.bf16 %v166_v23, %v142_v22  ;;  %v7962_v22 = vld [vmem:[#allocation2 + $0x980] ss:$16 sps:$4 sm:$0xff]  }
  0xb5   :  { %4977 = vmatprep.subr.bf16.mxu1 %v7829_v29  ;;  %v9319_v29 = vpack.c.bf16 %v168_v25, %v144_v24  ;;  %v7965_v23 = vld [vmem:[#allocation2 + $0xb80] ss:$16 sps:$4 sm:$0xff]   ;;  %v7970_v24 = vld [vmem:[#allocation2 + $0x964] ss:$16 sps:$4 sm:$0xff]  }
  0xb6   :  { %v7973_v25 = vld [vmem:[#allocation2 + $0xb64] ss:$16 sps:$4 sm:$0xff]  }
  0xb7   :  { %4935 = vmatpush1.bf16.msra.mxu0 %v7824_v30  ;;  %v7896_v30 = vld [vmem:[#allocation2 + $0x8e0] ss:$16 sps:$4 sm:$0xff]  }
  0xb8   :  { %4978 = vmatpush1.bf16.msra.mxu1 %v7827_v31  ;;  %4936 = vmatprep.subr.bf16.mxu0 %v7832_v32  ;;  %v7899_v31 = vld [vmem:[#allocation2 + $0xae0] ss:$16 sps:$4 sm:$0xff]   ;;  %v7904_v32 = vld [vmem:[#allocation2 + $0x8c4] ss:$16 sps:$4 sm:$0xff]  }
  0xb9   :  { %4979 = vmatprep.subr.bf16.mxu1 %v7835_v33  ;;  %v7907_v33 = vld [vmem:[#allocation2 + $0xac4] ss:$16 sps:$4 sm:$0xff]  }
  0xbb   :  { %4937 = vmatpush1.bf16.msra.mxu0 %v7830_v34  ;;  %v7902_v34 = vld [vmem:[#allocation2 + $0x8c0] ss:$16 sps:$4 sm:$0xff]  }
  0xbc   :  { %4980 = vmatpush1.bf16.msra.mxu1 %v7833_v35  ;;  %4938 = vmatprep.subr.bf16.mxu0 %v7838_v36  ;;  %v7905_v35 = vld [vmem:[#allocation2 + $0xac0] ss:$16 sps:$4 sm:$0xff]   ;;  %v7910_v36 = vld [vmem:[#allocation2 + $0x8a4] ss:$16 sps:$4 sm:$0xff]  }
  0xbd   :  { %4981 = vmatprep.subr.bf16.mxu1 %v7841_v37  ;;  %v7913_v37 = vld [vmem:[#allocation2 + $0xaa4] ss:$16 sps:$4 sm:$0xff]  }
  0xbf   :  { %4939 = vmatpush1.bf16.msra.mxu0 %v7836_v38  ;;  %v147_v38 = vld [vmem:[%s9671_s0 + $0x48] sm:$0xff] }
  0xc0   :  { %4982 = vmatpush1.bf16.msra.mxu1 %v7839_v39  ;;  %4940 = vmatprep.subr.bf16.mxu0 %v7844_v43  ;;  %v171_v39 = vld [vmem:[%s9671_s0 + $0x108] sm:$0xff]  ;;  %v7908_v43 = vld [vmem:[#allocation2 + $0x8a0] ss:$16 sps:$4 sm:$0xff]  }
  0xc1   :  { %4983 = vmatprep.subr.bf16.mxu1 %v7847_v44  ;;  %v9329_v40 = vpack.c.bf16 %v171_v39, %v147_v38  ;;  %v7911_v44 = vld [vmem:[#allocation2 + $0xaa0] ss:$16 sps:$4 sm:$0xff]   ;;  %v7988_v38 = vld [vmem:[#allocation2 + $0x904] ss:$16 sps:$4 sm:$0xff]  }
  0xc2   :  { %v7991_v39 = vld [vmem:[#allocation2 + $0xb04] ss:$16 sps:$4 sm:$0xff]  }
  0xc3   :  { %4941 = vmatpush1.bf16.msra.mxu0 %v7842_v48  ;;  %v7916_v48 = vld [vmem:[#allocation2 + $0x884] ss:$16 sps:$4 sm:$0xff]  }
  0xc4   :  { %4984 = vmatpush1.bf16.msra.mxu1 %v7845_v49  ;;  %4942 = vmatprep.subr.bf16.mxu0 %v7850_v50  ;;  %v7919_v49 = vld [vmem:[#allocation2 + $0xa84] ss:$16 sps:$4 sm:$0xff]   ;;  %v7914_v50 = vld [vmem:[#allocation2 + $0x880] ss:$16 sps:$4 sm:$0xff]  }
  0xc5   :  { %4985 = vmatprep.subr.bf16.mxu1 %v7853_v51  ;;  %v7917_v51 = vld [vmem:[#allocation2 + $0xa80] ss:$16 sps:$4 sm:$0xff]  }
  0xc7   :  { %4943 = vmatpush2.bf16.msra.mxu0 %v7848_v52  ;;  %v7922_v52 = vld [vmem:[#allocation2 + $0x864] ss:$16 sps:$4 sm:$0xff]  }
  0xc8   :  { %4986 = vmatpush2.bf16.msra.mxu1 %v7851_v55  ;;  %4944 = vmatprep.subr.bf16.mxu0 %v7856_v56  ;;  %v7925_v55 = vld [vmem:[#allocation2 + $0xa64] ss:$16 sps:$4 sm:$0xff]   ;;  %v7920_v56 = vld [vmem:[#allocation2 + $0x860] ss:$16 sps:$4 sm:$0xff]  }
  0xc9   :  { %4987 = vmatprep.subr.bf16.mxu1 %v7859_v57  ;;  %v7923_v57 = vld [vmem:[#allocation2 + $0xa60] ss:$16 sps:$4 sm:$0xff]  }
  0xcb   :  { %4945 = vmatpush2.bf16.msra.mxu0 %v7854_v58  ;;  %v7928_v58 = vld [vmem:[#allocation2 + $0x844] ss:$16 sps:$4 sm:$0xff]  }
  0xcc   :  { %4988 = vmatpush2.bf16.msra.mxu1 %v7857_v59  ;;  %4946 = vmatprep.subr.bf16.mxu0 %v7862_v60  ;;  %v7931_v59 = vld [vmem:[#allocation2 + $0xa44] ss:$16 sps:$4 sm:$0xff]   ;;  %v7926_v60 = vld [vmem:[#allocation2 + $0x840] ss:$16 sps:$4 sm:$0xff]  }
  0xcd   :  { %4989 = vmatprep.subr.bf16.mxu1 %v7865_v61  ;;  %v7929_v61 = vld [vmem:[#allocation2 + $0xa40] ss:$16 sps:$4 sm:$0xff]  }
  0xcf   :  { %4947 = vmatpush2.bf16.msra.mxu0 %v7860_v62  ;;  %v7934_v62 = vld [vmem:[#allocation2 + $0x824] ss:$16 sps:$4 sm:$0xff]  }
  0xd0   :  { %4990 = vmatpush2.bf16.msra.mxu1 %v7863_v63  ;;  %4948 = vmatprep.subr.bf16.mxu0 %v7868_v0  ;;  %v7937_v63 = vld [vmem:[#allocation2 + $0xa24] ss:$16 sps:$4 sm:$0xff]   ;;  %v7932_v0 = vld [vmem:[#allocation2 + $0x820] ss:$16 sps:$4 sm:$0xff]  }
  0xd1   :  { %4991 = vmatprep.subr.bf16.mxu1 %v7871_v1  ;;  %v7935_v1 = vld [vmem:[#allocation2 + $0xa20] ss:$16 sps:$4 sm:$0xff]  }
  0xd3   :  { %4949 = vmatpush2.bf16.msra.mxu0 %v7866_v2  ;;  %v7940_v2 = vld [vmem:[#allocation2 + $0x804] ss:$16 sps:$4 sm:$0xff]  }
  0xd4   :  { %4992 = vmatpush2.bf16.msra.mxu1 %v7869_v3  ;;  %4950 = vmatprep.subr.bf16.mxu0 %v7874_v4  ;;  %v7943_v3 = vld [vmem:[#allocation2 + $0xa04] ss:$16 sps:$4 sm:$0xff]   ;;  %v7938_v4 = vld [vmem:[#allocation2 + $0x800] ss:$16 sps:$4 sm:$0xff]  }
  0xd5   :  { %4993 = vmatprep.subr.bf16.mxu1 %v7877_v5  ;;  %v7941_v5 = vld [vmem:[#allocation2 + $0xa00] ss:$16 sps:$4 sm:$0xff]  }
  0xd7   :  { %4951 = vmatpush2.bf16.msra.mxu0 %v7872_v6  ;;  %v7946_v6 = vld [vmem:[#allocation2 + $0x9e4] ss:$16 sps:$4 sm:$0xff]  }
  0xd8   :  { %4994 = vmatpush2.bf16.msra.mxu1 %v7875_v7  ;;  %4952 = vmatprep.subr.bf16.mxu0 %v7880_v8  ;;  %v7949_v7 = vld [vmem:[#allocation2 + $0xbe4] ss:$16 sps:$4 sm:$0xff]   ;;  %v7944_v8 = vld [vmem:[#allocation2 + $0x9e0] ss:$16 sps:$4 sm:$0xff]  }
  0xd9   :  { %4995 = vmatprep.subr.bf16.mxu1 %v7883_v9  ;;  %v7947_v9 = vld [vmem:[#allocation2 + $0xbe0] ss:$16 sps:$4 sm:$0xff]  }
  0xdb   :  { %4953 = vmatpush2.bf16.msra.mxu0 %v7878_v10  ;;  %v7952_v10 = vld [vmem:[#allocation2 + $0x9c4] ss:$16 sps:$4 sm:$0xff]  }
  0xdc   :  { %4996 = vmatpush2.bf16.msra.mxu1 %v7881_v11  ;;  %4954 = vmatprep.subr.bf16.mxu0 %v7886_v14  ;;  %v7955_v11 = vld [vmem:[#allocation2 + $0xbc4] ss:$16 sps:$4 sm:$0xff]   ;;  %v7950_v14 = vld [vmem:[#allocation2 + $0x9c0] ss:$16 sps:$4 sm:$0xff]  }
  0xdd   :  { %4997 = vmatprep.subr.bf16.mxu1 %v7889_v15  ;;  %v7953_v15 = vld [vmem:[#allocation2 + $0xbc0] ss:$16 sps:$4 sm:$0xff]  }
  0xdf   :  { %4955 = vmatpush2.bf16.msra.mxu0 %v7884_v16  ;;  %v7958_v16 = vld [vmem:[#allocation2 + $0x9a4] ss:$16 sps:$4 sm:$0xff]  }
  0xe0   :  { %4998 = vmatpush2.bf16.msra.mxu1 %v7887_v17  ;;  %4956 = vmatprep.subr.bf16.mxu0 %v7892_v18  ;;  %v7961_v17 = vld [vmem:[#allocation2 + $0xba4] ss:$16 sps:$4 sm:$0xff]   ;;  %v7956_v18 = vld [vmem:[#allocation2 + $0x9a0] ss:$16 sps:$4 sm:$0xff]  }
  0xe1   :  { %4999 = vmatprep.subr.bf16.mxu1 %v7895_v19  ;;  %v7959_v19 = vld [vmem:[#allocation2 + $0xba0] ss:$16 sps:$4 sm:$0xff]  }
  0xe3   :  { %4957 = vmatpush2.bf16.msra.mxu0 %v7890_v20  ;;  %v7964_v20 = vld [vmem:[#allocation2 + $0x984] ss:$16 sps:$4 sm:$0xff]  }
  0xe4   :  { %5000 = vmatpush2.bf16.msra.mxu1 %v7893_v21  ;;  %5012 = vmatprep.subr.bf16.mxu0 %v7898_v26  ;;  %v7967_v21 = vld [vmem:[#allocation2 + $0xb84] ss:$16 sps:$4 sm:$0xff]   ;;  %v7968_v26 = vld [vmem:[#allocation2 + $0x960] ss:$16 sps:$4 sm:$0xff]  }
  0xe5   :  { %5055 = vmatprep.subr.bf16.mxu1 %v7901_v27  ;;  %v7971_v27 = vld [vmem:[#allocation2 + $0xb60] ss:$16 sps:$4 sm:$0xff]  }
  0xe6   :  { %4959 = vmatmul.mubr.bf16.vlgmr.msra.gmra.mxu0 %v9317_v28 }
  0xe7   :  { %5002 = vmatmul.mubr.bf16.vlgmr.msra.gmra.mxu1 %v9319_v29  ;;  %5013 = vmatpush1.bf16.msra.mxu0 %v7896_v30  ;;  %v7976_v30 = vld [vmem:[#allocation2 + $0x944] ss:$16 sps:$4 sm:$0xff]  }
  0xe8   :  { %5056 = vmatpush1.bf16.msra.mxu1 %v7899_v31  ;;  %5014 = vmatprep.subr.bf16.mxu0 %v7904_v32  ;;  %v7979_v31 = vld [vmem:[#allocation2 + $0xb44] ss:$16 sps:$4 sm:$0xff]   ;;  %v7974_v32 = vld [vmem:[#allocation2 + $0x940] ss:$16 sps:$4 sm:$0xff]  }
  0xe9   :  { %5057 = vmatprep.subr.bf16.mxu1 %v7907_v33  ;;  %5044 = vmatprep.mubr.bf16.mxu0 %v9329_v40  ;;  %v7977_v33 = vld [vmem:[#allocation2 + $0xb40] ss:$16 sps:$4 sm:$0xff]  }
  0xea   :  { %5087 = vmatprep.mubr.bf16.mxu1 %v9337_v46 }
  0xeb   :  { %5015 = vmatpush1.bf16.msra.mxu0 %v7902_v34  ;;  %v7982_v34 = vld [vmem:[#allocation2 + $0x924] ss:$16 sps:$4 sm:$0xff]  }
  0xec   :  { %5058 = vmatpush1.bf16.msra.mxu1 %v7905_v35  ;;  %5016 = vmatprep.subr.bf16.mxu0 %v7910_v36  ;;  %v7985_v35 = vld [vmem:[#allocation2 + $0xb24] ss:$16 sps:$4 sm:$0xff]   ;;  %v7980_v36 = vld [vmem:[#allocation2 + $0x920] ss:$16 sps:$4 sm:$0xff]  }
  0xed   :  { %5059 = vmatprep.subr.bf16.mxu1 %v7913_v37  ;;  %v7983_v37 = vld [vmem:[#allocation2 + $0xb20] ss:$16 sps:$4 sm:$0xff]  }
  0xef   :  { %5017 = vmatpush1.bf16.msra.mxu0 %v7908_v43  ;;  %v146_v43 = vld [vmem:[%s9671_s0 + $0x40] sm:$0xff] }
  0xf0   :  { %5060 = vmatpush1.bf16.msra.mxu1 %v7911_v44  ;;  %5018 = vmatprep.subr.bf16.mxu0 %v7916_v48  ;;  %v170_v44 = vld [vmem:[%s9671_s0 + $0x100] sm:$0xff]  ;;  %v148_v48 = vld [vmem:[%s9671_s0 + $0x50] sm:$0xff] }
  0xf1   :  { %5061 = vmatprep.subr.bf16.mxu1 %v7919_v49  ;;  %v172_v49 = vld [vmem:[%s9671_s0 + $0x110] sm:$0xff] }
  0xf3   :  { %5019 = vmatpush1.bf16.msra.mxu0 %v7914_v50  ;;  %v7994_v50 = vld [vmem:[#allocation2 + $0xce4] ss:$16 sps:$4 sm:$0xff]  }
  0xf4   :  { %5062 = vmatpush1.bf16.msra.mxu1 %v7917_v51  ;;  %5020 = vmatprep.subr.bf16.mxu0 %v7922_v52  ;;  %v7997_v51 = vld [vmem:[#allocation2 + $0xee4] ss:$16 sps:$4 sm:$0xff]   ;;  %v151_v52 = vld [vmem:[%s9671_s0 + $0x68] sm:$0xff] }
  0xf5   :  { %5063 = vmatprep.subr.bf16.mxu1 %v7925_v55  ;;  %v7992_v55 = vld [vmem:[#allocation2 + $0xce0] ss:$16 sps:$4 sm:$0xff]  }
  0xf7   :  { %5021 = vmatpush1.bf16.msra.mxu0 %v7920_v56  ;;  %v175_v56 = vld [vmem:[%s9671_s0 + $0x128] sm:$0xff] }
  0xf8   :  { %5064 = vmatpush1.bf16.msra.mxu1 %v7923_v57  ;;  %5022 = vmatprep.subr.bf16.mxu0 %v7928_v58  ;;  %v153_v57 = vld [vmem:[%s9671_s0 + $0x78] sm:$0xff]  ;;  %v9362_v58 = vpack.c.bf16 %v170_v44, %v146_v43  ;;  %v8052_v43 = vld [vmem:[#allocation2 + $0xda0] ss:$16 sps:$4 sm:$0xff]  }
  0xf9   :  { %5065 = vmatprep.subr.bf16.mxu1 %v7931_v59  ;;  %v9364_v59 = vpack.c.bf16 %v172_v49, %v148_v48  ;;  %v8055_v44 = vld [vmem:[#allocation2 + $0xfa0] ss:$16 sps:$4 sm:$0xff]   ;;  %v8060_v48 = vld [vmem:[#allocation2 + $0xd84] ss:$16 sps:$4 sm:$0xff]  }
  0xfa   :  { %v8063_v49 = vld [vmem:[#allocation2 + $0xf84] ss:$16 sps:$4 sm:$0xff]  }
  0xfb   :  { %5023 = vmatpush1.bf16.msra.mxu0 %v7926_v60  ;;  %v177_v60 = vld [vmem:[%s9671_s0 + $0x138] sm:$0xff] }
  0xfc   :  { %5066 = vmatpush1.bf16.msra.mxu1 %v7929_v61  ;;  %5024 = vmatprep.subr.bf16.mxu0 %v7934_v62  ;;  %v7995_v61 = vld [vmem:[#allocation2 + $0xee0] ss:$16 sps:$4 sm:$0xff]   ;;  %v8000_v62 = vld [vmem:[#allocation2 + $0xcc4] ss:$16 sps:$4 sm:$0xff]  }
  0xfd   :  { %5067 = vmatprep.subr.bf16.mxu1 %v7937_v63  ;;  %v8003_v63 = vld [vmem:[#allocation2 + $0xec4] ss:$16 sps:$4 sm:$0xff]  }
  0xff   :  { %5025 = vmatpush1.bf16.msra.mxu0 %v7932_v0  ;;  %v9369_v0 = vpack.c.bf16 %v175_v56, %v151_v52  ;;  %v8066_v52 = vld [vmem:[#allocation2 + $0xd64] ss:$16 sps:$4 sm:$0xff]   ;;  %v8064_v56 = vld [vmem:[#allocation2 + $0xd60] ss:$16 sps:$4 sm:$0xff]  }
 0x100   :  { %5068 = vmatpush1.bf16.msra.mxu1 %v7935_v1  ;;  %5026 = vmatprep.subr.bf16.mxu0 %v7940_v2  ;;  %v9371_v1 = vpack.c.bf16 %v177_v60, %v153_v57  ;;  %v7998_v2 = vld [vmem:[#allocation2 + $0xcc0] ss:$16 sps:$4 sm:$0xff]   ;;  %v8072_v60 = vld [vmem:[#allocation2 + $0xd44] ss:$16 sps:$4 sm:$0xff]  }
 0x101   :  { %5069 = vmatprep.subr.bf16.mxu1 %v7943_v3  ;;  %v8001_v3 = vld [vmem:[#allocation2 + $0xec0] ss:$16 sps:$4 sm:$0xff]  }
 0x102   :  { %v8067_v57 = vld [vmem:[#allocation2 + $0xf60] ss:$16 sps:$4 sm:$0xff]  }
 0x103   :  { %5027 = vmatpush1.bf16.msra.mxu0 %v7938_v4  ;;  %v8006_v4 = vld [vmem:[#allocation2 + $0xca4] ss:$16 sps:$4 sm:$0xff]  }
 0x104   :  { %5070 = vmatpush1.bf16.msra.mxu1 %v7941_v5  ;;  %5028 = vmatprep.subr.bf16.mxu0 %v7946_v6  ;;  %v8009_v5 = vld [vmem:[#allocation2 + $0xea4] ss:$16 sps:$4 sm:$0xff]   ;;  %v8004_v6 = vld [vmem:[#allocation2 + $0xca0] ss:$16 sps:$4 sm:$0xff]  }
 0x105   :  { %5071 = vmatprep.subr.bf16.mxu1 %v7949_v7  ;;  %v8007_v7 = vld [vmem:[#allocation2 + $0xea0] ss:$16 sps:$4 sm:$0xff]  }
 0x107   :  { %5029 = vmatpush2.bf16.msra.mxu0 %v7944_v8  ;;  %v8012_v8 = vld [vmem:[#allocation2 + $0xc84] ss:$16 sps:$4 sm:$0xff]  }
 0x108   :  { %5072 = vmatpush2.bf16.msra.mxu1 %v7947_v9  ;;  %5030 = vmatprep.subr.bf16.mxu0 %v7952_v10  ;;  %v8015_v9 = vld [vmem:[#allocation2 + $0xe84] ss:$16 sps:$4 sm:$0xff]   ;;  %v8010_v10 = vld [vmem:[#allocation2 + $0xc80] ss:$16 sps:$4 sm:$0xff]  }
 0x109   :  { %5073 = vmatprep.subr.bf16.mxu1 %v7955_v11  ;;  %v8013_v11 = vld [vmem:[#allocation2 + $0xe80] ss:$16 sps:$4 sm:$0xff]  }
 0x10b   :  { %5031 = vmatpush2.bf16.msra.mxu0 %v7950_v14  ;;  %v8018_v14 = vld [vmem:[#allocation2 + $0xc64] ss:$16 sps:$4 sm:$0xff]  }
 0x10c   :  { %5074 = vmatpush2.bf16.msra.mxu1 %v7953_v15  ;;  %5032 = vmatprep.subr.bf16.mxu0 %v7958_v16  ;;  %v8021_v15 = vld [vmem:[#allocation2 + $0xe64] ss:$16 sps:$4 sm:$0xff]   ;;  %v8016_v16 = vld [vmem:[#allocation2 + $0xc60] ss:$16 sps:$4 sm:$0xff]  }
 0x10d   :  { %5075 = vmatprep.subr.bf16.mxu1 %v7961_v17  ;;  %v8019_v17 = vld [vmem:[#allocation2 + $0xe60] ss:$16 sps:$4 sm:$0xff]  }
 0x10f   :  { %5033 = vmatpush2.bf16.msra.mxu0 %v7956_v18  ;;  %v8024_v18 = vld [vmem:[#allocation2 + $0xc44] ss:$16 sps:$4 sm:$0xff]  }
 0x110   :  { %5076 = vmatpush2.bf16.msra.mxu1 %v7959_v19  ;;  %5034 = vmatprep.subr.bf16.mxu0 %v7964_v20  ;;  %v8027_v19 = vld [vmem:[#allocation2 + $0xe44] ss:$16 sps:$4 sm:$0xff]   ;;  %v8022_v20 = vld [vmem:[#allocation2 + $0xc40] ss:$16 sps:$4 sm:$0xff]  }
 0x111   :  { %5077 = vmatprep.subr.bf16.mxu1 %v7967_v21  ;;  %v8025_v21 = vld [vmem:[#allocation2 + $0xe40] ss:$16 sps:$4 sm:$0xff]  }
 0x113   :  { %5035 = vmatpush2.bf16.msra.mxu0 %v7962_v22  ;;  %v8030_v22 = vld [vmem:[#allocation2 + $0xc24] ss:$16 sps:$4 sm:$0xff]  }
 0x114   :  { %5078 = vmatpush2.bf16.msra.mxu1 %v7965_v23  ;;  %5036 = vmatprep.subr.bf16.mxu0 %v7970_v24  ;;  %v8033_v23 = vld [vmem:[#allocation2 + $0xe24] ss:$16 sps:$4 sm:$0xff]   ;;  %v8028_v24 = vld [vmem:[#allocation2 + $0xc20] ss:$16 sps:$4 sm:$0xff]  }
 0x115   :  { %5079 = vmatprep.subr.bf16.mxu1 %v7973_v25  ;;  %v8031_v25 = vld [vmem:[#allocation2 + $0xe20] ss:$16 sps:$4 sm:$0xff]  }
 0x117   :  { %5037 = vmatpush2.bf16.msra.mxu0 %v7968_v26  ;;  %v8036_v26 = vld [vmem:[#allocation2 + $0xc04] ss:$16 sps:$4 sm:$0xff]  }
 0x118   :  { %5080 = vmatpush2.bf16.msra.mxu1 %v7971_v27  ;;  %5038 = vmatprep.subr.bf16.mxu0 %v7976_v30  ;;  %v8039_v27 = vld [vmem:[#allocation2 + $0xe04] ss:$16 sps:$4 sm:$0xff]   ;;  %v8034_v30 = vld [vmem:[#allocation2 + $0xc00] ss:$16 sps:$4 sm:$0xff]  }
 0x119   :  { %5081 = vmatprep.subr.bf16.mxu1 %v7979_v31  ;;  %v8037_v31 = vld [vmem:[#allocation2 + $0xe00] ss:$16 sps:$4 sm:$0xff]  }
 0x11b   :  { %5039 = vmatpush2.bf16.msra.mxu0 %v7974_v32  ;;  %v8042_v32 = vld [vmem:[#allocation2 + $0xde4] ss:$16 sps:$4 sm:$0xff]  }
 0x11c   :  { %5082 = vmatpush2.bf16.msra.mxu1 %v7977_v33  ;;  %5040 = vmatprep.subr.bf16.mxu0 %v7982_v34  ;;  %v8045_v33 = vld [vmem:[#allocation2 + $0xfe4] ss:$16 sps:$4 sm:$0xff]   ;;  %v8040_v34 = vld [vmem:[#allocation2 + $0xde0] ss:$16 sps:$4 sm:$0xff]  }
 0x11d   :  { %5083 = vmatprep.subr.bf16.mxu1 %v7985_v35  ;;  %v8043_v35 = vld [vmem:[#allocation2 + $0xfe0] ss:$16 sps:$4 sm:$0xff]  }
 0x11f   :  { %5041 = vmatpush2.bf16.msra.mxu0 %v7980_v36  ;;  %v8048_v36 = vld [vmem:[#allocation2 + $0xdc4] ss:$16 sps:$4 sm:$0xff]  }
 0x120   :  { %5084 = vmatpush2.bf16.msra.mxu1 %v7983_v37  ;;  %5042 = vmatprep.subr.bf16.mxu0 %v7988_v38  ;;  %v8051_v37 = vld [vmem:[#allocation2 + $0xfc4] ss:$16 sps:$4 sm:$0xff]   ;;  %v8046_v38 = vld [vmem:[#allocation2 + $0xdc0] ss:$16 sps:$4 sm:$0xff]  }
 0x121   :  { %5085 = vmatprep.subr.bf16.mxu1 %v7991_v39  ;;  %v8049_v39 = vld [vmem:[#allocation2 + $0xfc0] ss:$16 sps:$4 sm:$0xff]  }
 0x123   :  { %5043 = vmatpush2.bf16.msra.mxu0 %v7986_v41  ;;  %v8054_v41 = vld [vmem:[#allocation2 + $0xda4] ss:$16 sps:$4 sm:$0xff]  }
 0x124   :  { %5086 = vmatpush2.bf16.msra.mxu1 %v7989_v42  ;;  %5098 = vmatprep.subr.bf16.mxu0 %v7994_v50  ;;  %v8057_v42 = vld [vmem:[#allocation2 + $0xfa4] ss:$16 sps:$4 sm:$0xff]   ;;  %v8058_v50 = vld [vmem:[#allocation2 + $0xd80] ss:$16 sps:$4 sm:$0xff]  }
 0x125   :  { %5141 = vmatprep.subr.bf16.mxu1 %v7997_v51  ;;  %v8061_v51 = vld [vmem:[#allocation2 + $0xf80] ss:$16 sps:$4 sm:$0xff]  }
 0x126   :  { %5045 = vmatmul.mubr.bf16.vlgmr.msra.gmra.mxu0 %v9362_v58 }
 0x127   :  { %5088 = vmatmul.mubr.bf16.vlgmr.msra.gmra.mxu1 %v9364_v59  ;;  %5099 = vmatpush1.bf16.msra.mxu0 %v7992_v55  ;;  %v8069_v55 = vld [vmem:[#allocation2 + $0xf64] ss:$16 sps:$4 sm:$0xff]  }
 0x128   :  { %5142 = vmatpush1.bf16.msra.mxu1 %v7995_v61  ;;  %5100 = vmatprep.subr.bf16.mxu0 %v8000_v62  ;;  %v8075_v61 = vld [vmem:[#allocation2 + $0xf44] ss:$16 sps:$4 sm:$0xff]   ;;  %v8070_v62 = vld [vmem:[#allocation2 + $0xd40] ss:$16 sps:$4 sm:$0xff]  }
 0x129   :  { %5143 = vmatprep.subr.bf16.mxu1 %v8003_v63  ;;  %5130 = vmatprep.mubr.bf16.mxu0 %v9369_v0  ;;  %v8073_v63 = vld [vmem:[#allocation2 + $0xf40] ss:$16 sps:$4 sm:$0xff]  }
 0x12a   :  { %5173 = vmatprep.mubr.bf16.mxu1 %v9371_v1 }
 0x12b   :  { %5101 = vmatpush1.bf16.msra.mxu0 %v7998_v2  ;;  %v980_v2 = vlaneseq }
 0x12c   :  { %5144 = vmatpush1.bf16.msra.mxu1 %v8001_v3  ;;  %5102 = vmatprep.subr.bf16.mxu0 %v8006_v4  ;;  %v8078_v3 = vld [vmem:[#allocation2 + $0xd24] ss:$16 sps:$4 sm:$0xff]  }
 0x12d   :  { %5145 = vmatprep.subr.bf16.mxu1 %v8009_v5  ;;  %v8081_v4 = vld [vmem:[#allocation2 + $0xf24] ss:$16 sps:$4 sm:$0xff]   ;;  %v8076_v5 = vld [vmem:[#allocation2 + $0xd20] ss:$16 sps:$4 sm:$0xff]  }
 0x12f   :  { %5103 = vmatpush1.bf16.msra.mxu0 %v8004_v6  ;;  %v8079_v6 = vld [vmem:[#allocation2 + $0xf20] ss:$16 sps:$4 sm:$0xff]  }
 0x130   :  { %5146 = vmatpush1.bf16.msra.mxu1 %v8007_v7  ;;  %5104 = vmatprep.subr.bf16.mxu0 %v8012_v8  ;;  %v9377_v7 = vshrl.u32 %v980_v2, 7  ;;  %v8084_v8 = vld [vmem:[#allocation2 + $0xd04] ss:$16 sps:$4 sm:$0xff]   ;;  %v8109_v2 = vld [vmem:[#allocation2 + $0x1280] ss:$16 sps:$4 sm:$0xff]  }
 0x131   :  { %5147 = vmatprep.subr.bf16.mxu1 %v8015_v9  ;;  %v8087_v9 = vld [vmem:[#allocation2 + $0xf04] ss:$16 sps:$4 sm:$0xff]  }
 0x133   :  { %5105 = vmatpush1.bf16.msra.mxu0 %v8010_v10  ;;  %v8082_v10 = vld [vmem:[#allocation2 + $0xd00] ss:$16 sps:$4 sm:$0xff]  }
 0x134   :  { %5148 = vmatpush1.bf16.msra.mxu1 %v8013_v11  ;;  %5106 = vmatprep.subr.bf16.mxu0 %v8018_v14  ;;  %v8085_v11 = vld [vmem:[#allocation2 + $0xf00] ss:$16 sps:$4 sm:$0xff]  }
 0x135   :  { %5149 = vmatprep.subr.bf16.mxu1 %v8021_v15  ;;  %v150_v14 = vld [vmem:[%s9671_s0 + $0x60] sm:$0xff] }
 0x136   :  { %v174_v15 = vld [vmem:[%s9671_s0 + $0x120] sm:$0xff] }
 0x137   :  { %5107 = vmatpush1.bf16.msra.mxu0 %v8016_v16  ;;  %v152_v16 = vld [vmem:[%s9671_s0 + $0x70] sm:$0xff] }
 0x138   :  { %5150 = vmatpush1.bf16.msra.mxu1 %v8019_v17  ;;  %5108 = vmatprep.subr.bf16.mxu0 %v8024_v18  ;;  %v978_v17 = vld [vmem:[#allocation4] sm:$0xf]  ;;  %v176_v18 = vld [vmem:[%s9671_s0 + $0x130] sm:$0xff] }
 0x139   :  { %5151 = vmatprep.subr.bf16.mxu1 %v8027_v19  ;;  %v982_v19 = vsub.s32 0, %v9377_v7 }
 0x13b   :  { %5109 = vmatpush1.bf16.msra.mxu0 %v8022_v20  ;;  %v8090_v20 = vld [vmem:[#allocation2 + $0x10e4] ss:$16 sps:$4 sm:$0xff]  }
 0x13c   :  { %5152 = vmatpush1.bf16.msra.mxu1 %v8025_v21  ;;  %5110 = vmatprep.subr.bf16.mxu0 %v8030_v22  ;;  %v8093_v21 = vld [vmem:[#allocation2 + $0x12e4] ss:$16 sps:$4 sm:$0xff]   ;;  %v155_v22 = vld [vmem:[%s9671_s0 + $0x88] sm:$0xff] }
 0x13d   :  { %5153 = vmatprep.subr.bf16.mxu1 %v8033_v23  ;;  %v8088_v23 = vld [vmem:[#allocation2 + $0x10e0] ss:$16 sps:$4 sm:$0xff]  }
 0x13f   :  { %5111 = vmatpush1.bf16.msra.mxu0 %v8028_v24  ;;  %v179_v24 = vld [vmem:[%s9671_s0 + $0x148] sm:$0xff] }
 0x140   :  { %5154 = vmatpush1.bf16.msra.mxu1 %v8031_v25  ;;  %5112 = vmatprep.subr.bf16.mxu0 %v8036_v26  ;;  %v157_v25 = vld [vmem:[%s9671_s0 + $0x98] sm:$0xff]  ;;  %v9401_v26 = vpack.c.bf16 %v174_v15, %v150_v14  ;;  %v8126_v14 = vld [vmem:[#allocation2 + $0x1024] ss:$16 sps:$4 sm:$0xff]  }
 0x141   :  { %5155 = vmatprep.subr.bf16.mxu1 %v8039_v27  ;;  %v9403_v27 = vpack.c.bf16 %v176_v18, %v152_v16  ;;  %v8129_v15 = vld [vmem:[#allocation2 + $0x1224] ss:$16 sps:$4 sm:$0xff]   ;;  %v8124_v16 = vld [vmem:[#allocation2 + $0x1020] ss:$16 sps:$4 sm:$0xff]  }
 0x142   :  { %v8132_v18 = vld [vmem:[#allocation2 + $0x1004] ss:$16 sps:$4 sm:$0xff]  }
 0x143   :  { %5113 = vmatpush1.bf16.msra.mxu0 %v8034_v30  ;;  %v181_v30 = vld [vmem:[%s9671_s0 + $0x158] sm:$0xff] }
 0x144   :  { %5156 = vmatpush1.bf16.msra.mxu1 %v8037_v31  ;;  %5114 = vmatprep.subr.bf16.mxu0 %v8042_v32  ;;  %v983_v31 = vrot.slane %v978_v17, %v982_v19  ;;  %v8091_v32 = vld [vmem:[#allocation2 + $0x12e0] ss:$16 sps:$4 sm:$0xff]  }
 0x145   :  { %5157 = vmatprep.subr.bf16.mxu1 %v8045_v33  ;;  %v8096_v33 = vld [vmem:[#allocation2 + $0x10c4] ss:$16 sps:$4 sm:$0xff]   ;;  %v8127_v17 = vld [vmem:[#allocation2 + $0x1220] ss:$16 sps:$4 sm:$0xff]  }
 0x147   :  { %5115 = vmatpush2.bf16.msra.mxu0 %v8040_v34  ;;  %v8099_v34 = vld [vmem:[#allocation2 + $0x12c4] ss:$16 sps:$4 sm:$0xff]  }
 0x148   :  { %5158 = vmatpush2.bf16.msra.mxu1 %v8043_v35  ;;  %5116 = vmatprep.subr.bf16.mxu0 %v8048_v36  ;;  %v9410_v35 = vpack.c.bf16 %v179_v24, %v155_v22  ;;  %v9412_v36 = vpack.c.bf16 %v181_v30, %v157_v25  ;;  %v8133_v22 = vld [vmem:[#allocation2 + $0x1200] ss:$16 sps:$4 sm:$0xff]   ;;  %v8141_v24 = vld [vmem:[#allocation2 + $0x13e4] ss:$16 sps:$4 sm:$0xff]  }
 0x149   :  { %5159 = vmatprep.subr.bf16.mxu1 %v8051_v37  ;;  %v8136_v25 = vld [vmem:[#allocation2 + $0x11e0] ss:$16 sps:$4 sm:$0xff]  }
 0x14a   :  { %v8139_v30 = vld [vmem:[#allocation2 + $0x13e0] ss:$16 sps:$4 sm:$0xff]  }
 0x14b   :  { %5117 = vmatpush2.bf16.msra.mxu0 %v8046_v38 }
 0x14c   :  { %5160 = vmatpush2.bf16.msra.mxu1 %v8049_v39  ;;  %5118 = vmatprep.subr.bf16.mxu0 %v8054_v41  ;;  %v8094_v39 = vld [vmem:[#allocation2 + $0x10c0] ss:$16 sps:$4 sm:$0xff]  }
 0x14d   :  { %5161 = vmatprep.subr.bf16.mxu1 %v8057_v42  ;;  %v8097_v42 = vld [vmem:[#allocation2 + $0x12c0] ss:$16 sps:$4 sm:$0xff]  }
 0x14f   :  { %5119 = vmatpush2.bf16.msra.mxu0 %v8052_v43 }
 0x150   :  { %5162 = vmatpush2.bf16.msra.mxu1 %v8055_v44  ;;  %5120 = vmatprep.subr.bf16.mxu0 %v8060_v48  ;;  %v8102_v48 = vld [vmem:[#allocation2 + $0x10a4] ss:$16 sps:$4 sm:$0xff]  }
 0x151   :  { %5163 = vmatprep.subr.bf16.mxu1 %v8063_v49  ;;  %v8105_v49 = vld [vmem:[#allocation2 + $0x12a4] ss:$16 sps:$4 sm:$0xff]  }
 0x153   :  { %5121 = vmatpush2.bf16.msra.mxu0 %v8058_v50 }
 0x154   :  { %5164 = vmatpush2.bf16.msra.mxu1 %v8061_v51  ;;  %5122 = vmatprep.subr.bf16.mxu0 %v8066_v52  ;;  %v8100_v52 = vld [vmem:[#allocation2 + $0x10a0] ss:$16 sps:$4 sm:$0xff]  }
 0x155   :  { %5165 = vmatprep.subr.bf16.mxu1 %v8069_v55 }
 0x157   :  { %5123 = vmatpush2.bf16.msra.mxu0 %v8064_v56  ;;  %v8103_v56 = vld [vmem:[#allocation2 + $0x12a0] ss:$16 sps:$4 sm:$0xff]  }
 0x158   :  { %5166 = vmatpush2.bf16.msra.mxu1 %v8067_v57  ;;  %5124 = vmatprep.subr.bf16.mxu0 %v8072_v60  ;;  %v8108_v60 = vld [vmem:[#allocation2 + $0x1084] ss:$16 sps:$4 sm:$0xff]  }
 0x159   :  { %5167 = vmatprep.subr.bf16.mxu1 %v8075_v61  ;;  %v8111_v61 = vld [vmem:[#allocation2 + $0x1284] ss:$16 sps:$4 sm:$0xff]  }
 0x15b   :  { %5125 = vmatpush2.bf16.msra.mxu0 %v8070_v62 }
 0x15c   :  { %5168 = vmatpush2.bf16.msra.mxu1 %v8073_v63  ;;  %5126 = vmatprep.subr.bf16.mxu0 %v8078_v3  ;;  %v8106_v63 = vld [vmem:[#allocation2 + $0x1080] ss:$16 sps:$4 sm:$0xff]   ;;  %v8114_v3 = vld [vmem:[#allocation2 + $0x1064] ss:$16 sps:$4 sm:$0xff]  }
 0x15d   :  { %5169 = vmatprep.subr.bf16.mxu1 %v8081_v4  ;;  %v8117_v4 = vld [vmem:[#allocation2 + $0x1264] ss:$16 sps:$4 sm:$0xff]  }
 0x15f   :  { %5127 = vmatpush2.bf16.msra.mxu0 %v8076_v5  ;;  %v8112_v5 = vld [vmem:[#allocation2 + $0x1060] ss:$16 sps:$4 sm:$0xff]  }
 0x160   :  { %5170 = vmatpush2.bf16.msra.mxu1 %v8079_v6  ;;  %5128 = vmatprep.subr.bf16.mxu0 %v8084_v8  ;;  %v8115_v6 = vld [vmem:[#allocation2 + $0x1260] ss:$16 sps:$4 sm:$0xff]   ;;  %v8120_v8 = vld [vmem:[#allocation2 + $0x1044] ss:$16 sps:$4 sm:$0xff]  }
 0x161   :  { %5171 = vmatprep.subr.bf16.mxu1 %v8087_v9  ;;  %v8123_v9 = vld [vmem:[#allocation2 + $0x1244] ss:$16 sps:$4 sm:$0xff]  }
 0x163   :  { %5129 = vmatpush2.bf16.msra.mxu0 %v8082_v10  ;;  %v8118_v10 = vld [vmem:[#allocation2 + $0x1040] ss:$16 sps:$4 sm:$0xff]  }
 0x164   :  { %5172 = vmatpush2.bf16.msra.mxu1 %v8085_v11  ;;  %5184 = vmatprep.subr.bf16.mxu0 %v8090_v20  ;;  %v8121_v11 = vld [vmem:[#allocation2 + $0x1240] ss:$16 sps:$4 sm:$0xff]   ;;  %v8135_v20 = vld [vmem:[#allocation2 + $0x1204] ss:$16 sps:$4 sm:$0xff]  }
 0x165   :  { %5227 = vmatprep.subr.bf16.mxu1 %v8093_v21  ;;  %v8130_v21 = vld [vmem:[#allocation2 + $0x1000] ss:$16 sps:$4 sm:$0xff]  }
 0x166   :  { %v4874_v37 = vpop.f32.mrf.mxu0  ;;  %5131 = vmatmul.mubr.bf16.vlgmr.msra.gmra.mxu0 %v9401_v26 }
 0x167   :  { %v4917_v38 = vpop.f32.mrf.mxu1  ;;  %5174 = vmatmul.mubr.bf16.vlgmr.msra.gmra.mxu1 %v9403_v27  ;;  %v4875_v41 = vadd.f32 %v4874_v37, %v983_v31  ;;  %5185 = vmatpush1.bf16.msra.mxu0 %v8088_v23  ;;  %v8138_v23 = vld [vmem:[#allocation2 + $0x11e4] ss:$16 sps:$4 sm:$0xff]  }
 0x168   :  { %5228 = vmatpush1.bf16.msra.mxu1 %v8091_v32  ;;  %v9416_v43 = vpop.f32.mrf.mxu0  ;;  %5186 = vmatprep.subr.bf16.mxu0 %v8096_v33  ;;  %v8147_v32 = vld [vmem:[#allocation2 + $0x13c4] ss:$16 sps:$4 sm:$0xff]   ;;  %v8142_v33 = vld [vmem:[#allocation2 + $0x11c0] ss:$16 sps:$4 sm:$0xff]  }
 0x169   :  { %v9418_v44 = vpop.f32.mrf.mxu1  ;;  %5229 = vmatprep.subr.bf16.mxu1 %v8099_v34  ;;  %v9420_v50 = vadd.f32 %v4917_v38, %v4875_v41  ;;  %5216 = vmatprep.mubr.bf16.mxu0 %v9410_v35  ;;  %v8145_v34 = vld [vmem:[#allocation2 + $0x13c0] ss:$16 sps:$4 sm:$0xff]   ;;  %v8150_v37 = vld [vmem:[#allocation2 + $0x11a4] ss:$16 sps:$4 sm:$0xff]  }
 0x16a   :  { %5259 = vmatprep.mubr.bf16.mxu1 %v9412_v36  ;;  %v4878_v51 = vpop.f32.mrf.mxu0  ;;  %v8153_v38 = vld [vmem:[#allocation2 + $0x13a4] ss:$16 sps:$4 sm:$0xff]   ;;  %v8151_v41 = vld [vmem:[#allocation2 + $0x13a0] ss:$16 sps:$4 sm:$0xff]  }
 0x16b   :  { %v4879_v55 = vadd.f32 %v4878_v51, %v983_v31  ;;  %5187 = vmatpush1.bf16.msra.mxu0 %v8094_v39  ;;  %v4921_v57 = vpop.f32.mrf.mxu1  ;;  %v8144_v31 = vld [vmem:[#allocation2 + $0x11c4] ss:$16 sps:$4 sm:$0xff]   ;;  %v8148_v39 = vld [vmem:[#allocation2 + $0x11a0] ss:$16 sps:$4 sm:$0xff]  }
 0x16c   :  { %5230 = vmatpush1.bf16.msra.mxu1 %v8097_v42  ;;  %5188 = vmatprep.subr.bf16.mxu0 %v8102_v48  ;;  %v8156_v42 = vld [vmem:[#allocation2 + $0x1184] ss:$16 sps:$4 sm:$0xff]   ;;  %v8157_v51 = vld [vmem:[#allocation2 + $0x1380] ss:$16 sps:$4 sm:$0xff]  }
 0x16d   :  { %5231 = vmatprep.subr.bf16.mxu1 %v8105_v49  ;;  %v9424_v62 = vadd.f32 %v4921_v57, %v4879_v55  ;;  %v8159_v48 = vld [vmem:[#allocation2 + $0x1384] ss:$16 sps:$4 sm:$0xff]   ;;  %v8154_v49 = vld [vmem:[#allocation2 + $0x1180] ss:$16 sps:$4 sm:$0xff]  }
 0x16e   :  { %v8165_v55 = vld [vmem:[#allocation2 + $0x1364] ss:$16 sps:$4 sm:$0xff]   ;;  %v8163_v57 = vld [vmem:[#allocation2 + $0x1360] ss:$16 sps:$4 sm:$0xff]  }
 0x16f   :  { %5189 = vmatpush1.bf16.msra.mxu0 %v8100_v52  ;;  %v8162_v52 = vld [vmem:[#allocation2 + $0x1164] ss:$16 sps:$4 sm:$0xff]  }
 0x170   :  { %5232 = vmatpush1.bf16.msra.mxu1 %v8103_v56  ;;  %5190 = vmatprep.subr.bf16.mxu0 %v8108_v60  ;;  %v8160_v56 = vld [vmem:[#allocation2 + $0x1160] ss:$16 sps:$4 sm:$0xff]   ;;  %v8168_v60 = vld [vmem:[#allocation2 + $0x1144] ss:$16 sps:$4 sm:$0xff]  }
 0x171   :  { %5233 = vmatprep.subr.bf16.mxu1 %v8111_v61  ;;  %v8171_v61 = vld [vmem:[#allocation2 + $0x1344] ss:$16 sps:$4 sm:$0xff]  }
 0x173   :  { %5191 = vmatpush1.bf16.msra.mxu0 %v8106_v63  ;;  %v8166_v63 = vld [vmem:[#allocation2 + $0x1140] ss:$16 sps:$4 sm:$0xff]  }
 0x174   :  { %5234 = vmatpush1.bf16.msra.mxu1 %v8109_v2  ;;  %5192 = vmatprep.subr.bf16.mxu0 %v8114_v3  ;;  %v8169_v2 = vld [vmem:[#allocation2 + $0x1340] ss:$16 sps:$4 sm:$0xff]   ;;  %v8174_v3 = vld [vmem:[#allocation2 + $0x1124] ss:$16 sps:$4 sm:$0xff]  }
 0x175   :  { %5235 = vmatprep.subr.bf16.mxu1 %v8117_v4  ;;  %v8177_v4 = vld [vmem:[#allocation2 + $0x1324] ss:$16 sps:$4 sm:$0xff]  }
 0x177   :  { %5193 = vmatpush1.bf16.msra.mxu0 %v8112_v5  ;;  %v8172_v5 = vld [vmem:[#allocation2 + $0x1120] ss:$16 sps:$4 sm:$0xff]  }
 0x178   :  { %5236 = vmatpush1.bf16.msra.mxu1 %v8115_v6  ;;  %5194 = vmatprep.subr.bf16.mxu0 %v8120_v8  ;;  %v8175_v6 = vld [vmem:[#allocation2 + $0x1320] ss:$16 sps:$4 sm:$0xff]   ;;  %v8180_v8 = vld [vmem:[#allocation2 + $0x1104] ss:$16 sps:$4 sm:$0xff]  }
 0x179   :  { %5237 = vmatprep.subr.bf16.mxu1 %v8123_v9  ;;  %v8183_v9 = vld [vmem:[#allocation2 + $0x1304] ss:$16 sps:$4 sm:$0xff]  }
 0x17b   :  { %5195 = vmatpush1.bf16.msra.mxu0 %v8118_v10  ;;  %v8178_v10 = vld [vmem:[#allocation2 + $0x1100] ss:$16 sps:$4 sm:$0xff]  }
 0x17c   :  { %5238 = vmatpush1.bf16.msra.mxu1 %v8121_v11  ;;  %5196 = vmatprep.subr.bf16.mxu0 %v8126_v14  ;;  %v8181_v11 = vld [vmem:[#allocation2 + $0x1300] ss:$16 sps:$4 sm:$0xff]  }
 0x17d   :  { %5239 = vmatprep.subr.bf16.mxu1 %v8129_v15  ;;  %v154_v14 = vld [vmem:[%s9671_s0 + $0x80] sm:$0xff] }
 0x17e   :  { %v178_v15 = vld [vmem:[%s9671_s0 + $0x140] sm:$0xff] }
 0x17f   :  { %5197 = vmatpush1.bf16.msra.mxu0 %v8124_v16  ;;  %v156_v16 = vld [vmem:[%s9671_s0 + $0x90] sm:$0xff] }
 0x180   :  { %5240 = vmatpush1.bf16.msra.mxu1 %v8127_v17  ;;  %5198 = vmatprep.subr.bf16.mxu0 %v8132_v18  ;;  %v180_v17 = vld [vmem:[%s9671_s0 + $0x150] sm:$0xff] }
 0x181   :  { %5241 = vmatprep.subr.bf16.mxu1 %v8135_v20  ;;  %v8186_v18 = vld [vmem:[#allocation2 + $0x14e4] ss:$16 sps:$4 sm:$0xff]  }
 0x182   :  { %v8189_v20 = vld [vmem:[#allocation2 + $0x16e4] ss:$16 sps:$4 sm:$0xff]  }
 0x183   :  { %5199 = vmatpush1.bf16.msra.mxu0 %v8130_v21  ;;  %v159_v21 = vld [vmem:[%s9671_s0 + $0xa8] sm:$0xff] }
 0x184   :  { %5242 = vmatpush1.bf16.msra.mxu1 %v8133_v22  ;;  %5200 = vmatprep.subr.bf16.mxu0 %v8138_v23  ;;  %v183_v22 = vld [vmem:[%s9671_s0 + $0x168] sm:$0xff]  ;;  %v161_v23 = vld [vmem:[%s9671_s0 + $0xb8] sm:$0xff] }
 0x185   :  { %5243 = vmatprep.subr.bf16.mxu1 %v8141_v24  ;;  %v185_v24 = vld [vmem:[%s9671_s0 + $0x178] sm:$0xff] }
 0x187   :  { %5201 = vmatpush2.bf16.msra.mxu0 %v8136_v25  ;;  %v8184_v25 = vld [vmem:[#allocation2 + $0x14e0] ss:$16 sps:$4 sm:$0xff]  }
 0x188   :  { %5244 = vmatpush2.bf16.msra.mxu1 %v8139_v30  ;;  %5202 = vmatprep.subr.bf16.mxu0 %v8144_v31  ;;  %v8187_v30 = vld [vmem:[#allocation2 + $0x16e0] ss:$16 sps:$4 sm:$0xff]   ;;  %v9450_v31 = vpack.c.bf16 %v178_v15, %v154_v14  ;;  %v8213_v14 = vld [vmem:[#allocation2 + $0x1664] ss:$16 sps:$4 sm:$0xff]  }
 0x189   :  { %5245 = vmatprep.subr.bf16.mxu1 %v8147_v32  ;;  %v9452_v32 = vpack.c.bf16 %v180_v17, %v156_v16  ;;  %v8211_v15 = vld [vmem:[#allocation2 + $0x1660] ss:$16 sps:$4 sm:$0xff]   ;;  %v8216_v16 = vld [vmem:[#allocation2 + $0x1444] ss:$16 sps:$4 sm:$0xff]  }
 0x18a   :  { %v8219_v17 = vld [vmem:[#allocation2 + $0x1644] ss:$16 sps:$4 sm:$0xff]  }
 0x18b   :  { %5203 = vmatpush2.bf16.msra.mxu0 %v8142_v33  ;;  %v9454_v33 = vpop.f32.mrf.mxu0 }
 0x18c   :  { %5246 = vmatpush2.bf16.msra.mxu1 %v8145_v34  ;;  %5204 = vmatprep.subr.bf16.mxu0 %v8150_v37  ;;  %v9456_v34 = vpop.f32.mrf.mxu1  ;;  %v8192_v37 = vld [vmem:[#allocation2 + $0x14c4] ss:$16 sps:$4 sm:$0xff]  }
 0x18d   :  { %5247 = vmatprep.subr.bf16.mxu1 %v8153_v38  ;;  %v8195_v38 = vld [vmem:[#allocation2 + $0x16c4] ss:$16 sps:$4 sm:$0xff]  }
 0x18f   :  { %5205 = vmatpush2.bf16.msra.mxu0 %v8148_v39  ;;  %v8190_v39 = vld [vmem:[#allocation2 + $0x14c0] ss:$16 sps:$4 sm:$0xff]  }
 0x190   :  { %5248 = vmatpush2.bf16.msra.mxu1 %v8151_v41  ;;  %5206 = vmatprep.subr.bf16.mxu0 %v8156_v42  ;;  %v8193_v41 = vld [vmem:[#allocation2 + $0x16c0] ss:$16 sps:$4 sm:$0xff]   ;;  %v9458_v42 = vpack.c.bf16 %v183_v22, %v159_v21  ;;  %v8222_v21 = vld [vmem:[#allocation2 + $0x1424] ss:$16 sps:$4 sm:$0xff]  }
 0x191   :  { %5249 = vmatprep.subr.bf16.mxu1 %v8159_v48  ;;  %v9460_v48 = vpack.c.bf16 %v185_v24, %v161_v23  ;;  %v8225_v22 = vld [vmem:[#allocation2 + $0x1624] ss:$16 sps:$4 sm:$0xff]   ;;  %v8220_v23 = vld [vmem:[#allocation2 + $0x1420] ss:$16 sps:$4 sm:$0xff]  }
 0x192   :  { %v8223_v24 = vld [vmem:[#allocation2 + $0x1620] ss:$16 sps:$4 sm:$0xff]  }
 0x193   :  { %5207 = vmatpush2.bf16.msra.mxu0 %v8154_v49 }
 0x194   :  { %5250 = vmatpush2.bf16.msra.mxu1 %v8157_v51  ;;  %5208 = vmatprep.subr.bf16.mxu0 %v8162_v52 }
 0x195   :  { %5251 = vmatprep.subr.bf16.mxu1 %v8165_v55 }
 0x197   :  { %5209 = vmatpush2.bf16.msra.mxu0 %v8160_v56 }
 0x198   :  { %5252 = vmatpush2.bf16.msra.mxu1 %v8163_v57  ;;  %5210 = vmatprep.subr.bf16.mxu0 %v8168_v60  ;;  %v8198_v57 = vld [vmem:[#allocation2 + $0x14a4] ss:$16 sps:$4 sm:$0xff]  }
 0x199   :  { %5253 = vmatprep.subr.bf16.mxu1 %v8171_v61  ;;  %v8201_v60 = vld [vmem:[#allocation2 + $0x16a4] ss:$16 sps:$4 sm:$0xff]  }
 0x19b   :  { %5211 = vmatpush2.bf16.msra.mxu0 %v8166_v63  ;;  %v8196_v63 = vld [vmem:[#allocation2 + $0x14a0] ss:$16 sps:$4 sm:$0xff]  }
 0x19c   :  { %5254 = vmatpush2.bf16.msra.mxu1 %v8169_v2  ;;  %5212 = vmatprep.subr.bf16.mxu0 %v8174_v3  ;;  %v8199_v2 = vld [vmem:[#allocation2 + $0x16a0] ss:$16 sps:$4 sm:$0xff]  }
 0x19d   :  { %5255 = vmatprep.subr.bf16.mxu1 %v8177_v4 }
 0x19f   :  { %5213 = vmatpush2.bf16.msra.mxu0 %v8172_v5  ;;  %v8204_v5 = vld [vmem:[#allocation2 + $0x1484] ss:$16 sps:$4 sm:$0xff]  }
 0x1a0   :  { %5256 = vmatpush2.bf16.msra.mxu1 %v8175_v6  ;;  %5214 = vmatprep.subr.bf16.mxu0 %v8180_v8  ;;  %v8207_v6 = vld [vmem:[#allocation2 + $0x1684] ss:$16 sps:$4 sm:$0xff]  }
 0x1a1   :  { %5257 = vmatprep.subr.bf16.mxu1 %v8183_v9  ;;  %v8202_v9 = vld [vmem:[#allocation2 + $0x1480] ss:$16 sps:$4 sm:$0xff]  }
 0x1a3   :  { %5215 = vmatpush2.bf16.msra.mxu0 %v8178_v10  ;;  %v8205_v10 = vld [vmem:[#allocation2 + $0x1680] ss:$16 sps:$4 sm:$0xff]  }
 0x1a4   :  { %5258 = vmatpush2.bf16.msra.mxu1 %v8181_v11  ;;  %5270 = vmatprep.subr.bf16.mxu0 %v8186_v18  ;;  %v8210_v11 = vld [vmem:[#allocation2 + $0x1464] ss:$16 sps:$4 sm:$0xff]   ;;  %v8214_v18 = vld [vmem:[#allocation2 + $0x1440] ss:$16 sps:$4 sm:$0xff]  }
 0x1a5   :  { %5313 = vmatprep.subr.bf16.mxu1 %v8189_v20  ;;  %v8217_v20 = vld [vmem:[#allocation2 + $0x1640] ss:$16 sps:$4 sm:$0xff]  }
 0x1a6   :  { %v4960_v49 = vpop.f32.mrf.mxu0  ;;  %5217 = vmatmul.mubr.bf16.vlgmr.msra.gmra.mxu0 %v9450_v31 }
 0x1a7   :  { %v5003_v51 = vpop.f32.mrf.mxu1  ;;  %5260 = vmatmul.mubr.bf16.vlgmr.msra.gmra.mxu1 %v9452_v32  ;;  %v4961_v52 = vadd.f32 %v4960_v49, %v9420_v50  ;;  %5271 = vmatpush1.bf16.msra.mxu0 %v8184_v25  ;;  %v8228_v25 = vld [vmem:[#allocation2 + $0x1404] ss:$16 sps:$4 sm:$0xff]   ;;  %v8232_v49 = vld [vmem:[#allocation2 + $0x15e0] ss:$16 sps:$4 sm:$0xff]  }
 0x1a8   :  { %5314 = vmatpush1.bf16.msra.mxu1 %v8187_v30  ;;  %v9465_v55 = vpop.f32.mrf.mxu0  ;;  %5272 = vmatprep.subr.bf16.mxu0 %v8192_v37  ;;  %v8231_v30 = vld [vmem:[#allocation2 + $0x1604] ss:$16 sps:$4 sm:$0xff]   ;;  %v8226_v37 = vld [vmem:[#allocation2 + $0x1400] ss:$16 sps:$4 sm:$0xff]  }
 0x1a9   :  { %v9467_v56 = vpop.f32.mrf.mxu1  ;;  %5315 = vmatprep.subr.bf16.mxu1 %v8195_v38  ;;  %v9469_v61 = vadd.f32 %v5003_v51, %v4961_v52  ;;  %5302 = vmatprep.mubr.bf16.mxu0 %v9458_v42  ;;  %v8229_v38 = vld [vmem:[#allocation2 + $0x1600] ss:$16 sps:$4 sm:$0xff]   ;;  %v8240_v52 = vld [vmem:[#allocation2 + $0x15c4] ss:$16 sps:$4 sm:$0xff]  }
 0x1aa   :  { %5345 = vmatprep.mubr.bf16.mxu1 %v9460_v48  ;;  %v4964_v3 = vpop.f32.mrf.mxu0  ;;  %v8235_v51 = vld [vmem:[#allocation2 + $0x17e0] ss:$16 sps:$4 sm:$0xff]  }
 0x1ab   :  { %v4965_v50 = vadd.f32 %v4964_v3, %v9424_v62  ;;  %5273 = vmatpush1.bf16.msra.mxu0 %v8190_v39  ;;  %v5007_v4 = vpop.f32.mrf.mxu1  ;;  %v8208_v62 = vld [vmem:[#allocation2 + $0x1460] ss:$16 sps:$4 sm:$0xff]   ;;  %v8234_v39 = vld [vmem:[#allocation2 + $0x15e4] ss:$16 sps:$4 sm:$0xff]  }
 0x1ac   :  { %5316 = vmatpush1.bf16.msra.mxu1 %v8193_v41  ;;  %5274 = vmatprep.subr.bf16.mxu0 %v8198_v57  ;;  %v8237_v41 = vld [vmem:[#allocation2 + $0x17e4] ss:$16 sps:$4 sm:$0xff]  }
 0x1ad   :  { %5317 = vmatprep.subr.bf16.mxu1 %v8201_v60  ;;  %v9474_v8 = vadd.f32 %v5007_v4, %v4965_v50  ;;  %v8243_v57 = vld [vmem:[#allocation2 + $0x17c4] ss:$16 sps:$4 sm:$0xff]   ;;  %v8238_v60 = vld [vmem:[#allocation2 + $0x15c0] ss:$16 sps:$4 sm:$0xff]  }
 0x1ae   :  { %v8249_v3 = vld [vmem:[#allocation2 + $0x17a4] ss:$16 sps:$4 sm:$0xff]   ;;  %v8244_v50 = vld [vmem:[#allocation2 + $0x15a0] ss:$16 sps:$4 sm:$0xff]  }
 0x1af   :  { %5275 = vmatpush1.bf16.msra.mxu0 %v8196_v63  ;;  %v8241_v63 = vld [vmem:[#allocation2 + $0x17c0] ss:$16 sps:$4 sm:$0xff]  }
 0x1b0   :  { %5318 = vmatpush1.bf16.msra.mxu1 %v8199_v2  ;;  %5276 = vmatprep.subr.bf16.mxu0 %v8204_v5  ;;  %v8246_v2 = vld [vmem:[#allocation2 + $0x15a4] ss:$16 sps:$4 sm:$0xff]   ;;  %v8247_v4 = vld [vmem:[#allocation2 + $0x17a0] ss:$16 sps:$4 sm:$0xff]  }
 0x1b1   :  { %5319 = vmatprep.subr.bf16.mxu1 %v8207_v6  ;;  %v8252_v5 = vld [vmem:[#allocation2 + $0x1584] ss:$16 sps:$4 sm:$0xff]  }
 0x1b2   :  { %v8255_v6 = vld [vmem:[#allocation2 + $0x1784] ss:$16 sps:$4 sm:$0xff]  }
 0x1b3   :  { %5277 = vmatpush1.bf16.msra.mxu0 %v8202_v9  ;;  %v8250_v9 = vld [vmem:[#allocation2 + $0x1580] ss:$16 sps:$4 sm:$0xff]  }
 0x1b4   :  { %5320 = vmatpush1.bf16.msra.mxu1 %v8205_v10  ;;  %5278 = vmatprep.subr.bf16.mxu0 %v8210_v11  ;;  %v8253_v10 = vld [vmem:[#allocation2 + $0x1780] ss:$16 sps:$4 sm:$0xff]   ;;  %v8258_v11 = vld [vmem:[#allocation2 + $0x1564] ss:$16 sps:$4 sm:$0xff]  }
 0x1b5   :  { %5321 = vmatprep.subr.bf16.mxu1 %v8213_v14  ;;  %v8261_v14 = vld [vmem:[#allocation2 + $0x1764] ss:$16 sps:$4 sm:$0xff]  }
 0x1b7   :  { %5279 = vmatpush1.bf16.msra.mxu0 %v8208_v62  ;;  %v8256_v62 = vld [vmem:[#allocation2 + $0x1560] ss:$16 sps:$4 sm:$0xff]  }
 0x1b8   :  { %5322 = vmatpush1.bf16.msra.mxu1 %v8211_v15  ;;  %5280 = vmatprep.subr.bf16.mxu0 %v8216_v16  ;;  %v8259_v15 = vld [vmem:[#allocation2 + $0x1760] ss:$16 sps:$4 sm:$0xff]   ;;  %v8264_v16 = vld [vmem:[#allocation2 + $0x1544] ss:$16 sps:$4 sm:$0xff]  }
 0x1b9   :  { %5323 = vmatprep.subr.bf16.mxu1 %v8219_v17  ;;  %v8267_v17 = vld [vmem:[#allocation2 + $0x1744] ss:$16 sps:$4 sm:$0xff]  }
 0x1bb   :  { %5281 = vmatpush1.bf16.msra.mxu0 %v8214_v18  ;;  %v8262_v18 = vld [vmem:[#allocation2 + $0x1540] ss:$16 sps:$4 sm:$0xff]  }
 0x1bc   :  { %5324 = vmatpush1.bf16.msra.mxu1 %v8217_v20  ;;  %5282 = vmatprep.subr.bf16.mxu0 %v8222_v21  ;;  %v8265_v20 = vld [vmem:[#allocation2 + $0x1740] ss:$16 sps:$4 sm:$0xff]   ;;  %v8270_v21 = vld [vmem:[#allocation2 + $0x1524] ss:$16 sps:$4 sm:$0xff]  }
 0x1bd   :  { %5325 = vmatprep.subr.bf16.mxu1 %v8225_v22  ;;  %v8273_v22 = vld [vmem:[#allocation2 + $0x1724] ss:$16 sps:$4 sm:$0xff]  }
 0x1bf   :  { %5283 = vmatpush1.bf16.msra.mxu0 %v8220_v23  ;;  %v8268_v23 = vld [vmem:[#allocation2 + $0x1520] ss:$16 sps:$4 sm:$0xff]  }
 0x1c0   :  { %5326 = vmatpush1.bf16.msra.mxu1 %v8223_v24  ;;  %5284 = vmatprep.subr.bf16.mxu0 %v8228_v25  ;;  %v8271_v24 = vld [vmem:[#allocation2 + $0x1720] ss:$16 sps:$4 sm:$0xff]   ;;  %v8276_v25 = vld [vmem:[#allocation2 + $0x1504] ss:$16 sps:$4 sm:$0xff]  }
 0x1c1   :  { %5327 = vmatprep.subr.bf16.mxu1 %v8231_v30  ;;  %v8279_v30 = vld [vmem:[#allocation2 + $0x1704] ss:$16 sps:$4 sm:$0xff]  }
 0x1c3   :  { %5285 = vmatpush1.bf16.msra.mxu0 %v8226_v37  ;;  %v8274_v37 = vld [vmem:[#allocation2 + $0x1500] ss:$16 sps:$4 sm:$0xff]  }
 0x1c4   :  { %5328 = vmatpush1.bf16.msra.mxu1 %v8229_v38  ;;  %5286 = vmatprep.subr.bf16.mxu0 %v8234_v39  ;;  %v8277_v38 = vld [vmem:[#allocation2 + $0x1700] ss:$16 sps:$4 sm:$0xff]  }
 0x1c5   :  { %5329 = vmatprep.subr.bf16.mxu1 %v8237_v41  ;;  %v158_v39 = vld [vmem:[%s9671_s0 + $0xa0] sm:$0xff] }
 0x1c6   :  { %v182_v41 = vld [vmem:[%s9671_s0 + $0x160] sm:$0xff] }
 0x1c7   :  { %5287 = vmatpush2.bf16.msra.mxu0 %v8232_v49  ;;  %v160_v49 = vld [vmem:[%s9671_s0 + $0xb0] sm:$0xff] }
 0x1c8   :  { %5330 = vmatpush2.bf16.msra.mxu1 %v8235_v51  ;;  %5288 = vmatprep.subr.bf16.mxu0 %v8240_v52  ;;  %v184_v51 = vld [vmem:[%s9671_s0 + $0x170] sm:$0xff]  ;;  %v8282_v52 = vld [vmem:[#allocation2 + $0xec] ss:$16 sps:$4 sm:$0xff]  }
 0x1c9   :  { %5331 = vmatprep.subr.bf16.mxu1 %v8243_v57  ;;  %v8285_v57 = vld [vmem:[#allocation2 + $0x2ec] ss:$16 sps:$4 sm:$0xff]  }
 0x1cb   :  { %5289 = vmatpush2.bf16.msra.mxu0 %v8238_v60  ;;  %v8280_v60 = vld [vmem:[#allocation2 + $0xe8] ss:$16 sps:$4 sm:$0xff]  }
 0x1cc   :  { %5332 = vmatpush2.bf16.msra.mxu1 %v8241_v63  ;;  %5290 = vmatprep.subr.bf16.mxu0 %v8246_v2  ;;  %v8283_v63 = vld [vmem:[#allocation2 + $0x2e8] ss:$16 sps:$4 sm:$0xff]   ;;  %v9488_v2 = vpack.c.bf16 %v182_v41, %v158_v39 }
 0x1cd   :  { %5333 = vmatprep.subr.bf16.mxu1 %v8249_v3  ;;  %v9490_v3 = vpack.c.bf16 %v184_v51, %v160_v49  ;;  %v8301_v39 = vld [vmem:[#allocation2 + $0x288] ss:$16 sps:$4 sm:$0xff]   ;;  %v8312_v49 = vld [vmem:[#allocation2 + $0x4c] ss:$16 sps:$4 sm:$0xff]  }
 0x1ce   :  { %v8307_v41 = vld [vmem:[#allocation2 + $0x268] ss:$16 sps:$4 sm:$0xff]   ;;  %v8315_v51 = vld [vmem:[#allocation2 + $0x24c] ss:$16 sps:$4 sm:$0xff]  }
 0x1cf   :  { %5291 = vmatpush2.bf16.msra.mxu0 %v8244_v50  ;;  %v9492_v50 = vpop.f32.mrf.mxu0 }
 0x1d0   :  { %5334 = vmatpush2.bf16.msra.mxu1 %v8247_v4  ;;  %5292 = vmatprep.subr.bf16.mxu0 %v8252_v5  ;;  %v9494_v4 = vpop.f32.mrf.mxu1  ;;  %v8288_v5 = vld [vmem:[#allocation2 + $0xcc] ss:$16 sps:$4 sm:$0xff]  }
 0x1d1   :  { %5335 = vmatprep.subr.bf16.mxu1 %v8255_v6  ;;  %v8291_v6 = vld [vmem:[#allocation2 + $0x2cc] ss:$16 sps:$4 sm:$0xff]  }
 0x1d3   :  { %5293 = vmatpush2.bf16.msra.mxu0 %v8250_v9  ;;  %v8286_v9 = vld [vmem:[#allocation2 + $0xc8] ss:$16 sps:$4 sm:$0xff]  }
 0x1d4   :  { %5336 = vmatpush2.bf16.msra.mxu1 %v8253_v10  ;;  %5294 = vmatprep.subr.bf16.mxu0 %v8258_v11  ;;  %v8289_v10 = vld [vmem:[#allocation2 + $0x2c8] ss:$16 sps:$4 sm:$0xff]  }
 0x1d5   :  { %5337 = vmatprep.subr.bf16.mxu1 %v8261_v14 }
 0x1d7   :  { %5295 = vmatpush2.bf16.msra.mxu0 %v8256_v62 }
 0x1d8   :  { %5338 = vmatpush2.bf16.msra.mxu1 %v8259_v15  ;;  %5296 = vmatprep.subr.bf16.mxu0 %v8264_v16 }
 0x1d9   :  { %5339 = vmatprep.subr.bf16.mxu1 %v8267_v17  ;;  %v8294_v17 = vld [vmem:[#allocation2 + $0xac] ss:$16 sps:$4 sm:$0xff]  }
 0x1db   :  { %5297 = vmatpush2.bf16.msra.mxu0 %v8262_v18  ;;  %v8297_v18 = vld [vmem:[#allocation2 + $0x2ac] ss:$16 sps:$4 sm:$0xff]  }
 0x1dc   :  { %5340 = vmatpush2.bf16.msra.mxu1 %v8265_v20  ;;  %5298 = vmatprep.subr.bf16.mxu0 %v8270_v21  ;;  %v8292_v21 = vld [vmem:[#allocation2 + $0xa8] ss:$16 sps:$4 sm:$0xff]  }
 0x1dd   :  { %5341 = vmatprep.subr.bf16.mxu1 %v8273_v22  ;;  %v8295_v22 = vld [vmem:[#allocation2 + $0x2a8] ss:$16 sps:$4 sm:$0xff]  }
 0x1df   :  { %5299 = vmatpush2.bf16.msra.mxu0 %v8268_v23 }
 0x1e0   :  { %5342 = vmatpush2.bf16.msra.mxu1 %v8271_v24  ;;  %5300 = vmatprep.subr.bf16.mxu0 %v8276_v25  ;;  %v8300_v25 = vld [vmem:[#allocation2 + $0x8c] ss:$16 sps:$4 sm:$0xff]  }
 0x1e1   :  { %5343 = vmatprep.subr.bf16.mxu1 %v8279_v30  ;;  %v8303_v30 = vld [vmem:[#allocation2 + $0x28c] ss:$16 sps:$4 sm:$0xff]  }
 0x1e3   :  { %5301 = vmatpush2.bf16.msra.mxu0 %v8274_v37 }
 0x1e4   :  { %5344 = vmatpush2.bf16.msra.mxu1 %v8277_v38  ;;  %5356 = vmatprep.subr.bf16.mxu0 %v8282_v52  ;;  %v8298_v38 = vld [vmem:[#allocation2 + $0x88] ss:$16 sps:$4 sm:$0xff]  }
 0x1e5   :  { %5399 = vmatprep.subr.bf16.mxu1 %v8285_v57  ;;  %v8310_v52 = vld [vmem:[#allocation2 + $0x48] ss:$16 sps:$4 sm:$0xff]  }
 0x1e6   :  { %v5046_v11 = vpop.f32.mrf.mxu0  ;;  %5303 = vmatmul.mubr.bf16.vlgmr.msra.gmra.mxu0 %v9488_v2  ;;  %v8313_v57 = vld [vmem:[#allocation2 + $0x248] ss:$16 sps:$4 sm:$0xff]  }
 0x1e7   :  { %v5089_v14 = vpop.f32.mrf.mxu1  ;;  %5346 = vmatmul.mubr.bf16.vlgmr.msra.gmra.mxu1 %v9490_v3  ;;  %v5047_v62 = vadd.f32 %v5046_v11, %v9469_v61  ;;  %5357 = vmatpush1.bf16.msra.mxu0 %v8280_v60  ;;  %v8318_v60 = vld [vmem:[#allocation2 + $0x2c] ss:$16 sps:$4 sm:$0xff]   ;;  %v8322_v11 = vld [vmem:[#allocation2 + $0x8] ss:$16 sps:$4 sm:$0xff]  }
 0x1e8   :  { %5400 = vmatpush1.bf16.msra.mxu1 %v8283_v63  ;;  %v9499_v15 = vpop.f32.mrf.mxu0  ;;  %5358 = vmatprep.subr.bf16.mxu0 %v8288_v5  ;;  %v8321_v63 = vld [vmem:[#allocation2 + $0x22c] ss:$16 sps:$4 sm:$0xff]   ;;  %v8316_v5 = vld [vmem:[#allocation2 + $0x28] ss:$16 sps:$4 sm:$0xff]  }
 0x1e9   :  { %v9501_v16 = vpop.f32.mrf.mxu1  ;;  %5401 = vmatprep.subr.bf16.mxu1 %v8291_v6  ;;  %v9503_v20 = vadd.f32 %v5089_v14, %v5047_v62  ;;  %5388 = vmatprep.mubr.bf16.mxu0 %v9263_v53  ;;  %v8306_v53 = vld [vmem:[#allocation2 + $0x6c] ss:$16 sps:$4 sm:$0xff]   ;;  %v8319_v6 = vld [vmem:[#allocation2 + $0x228] ss:$16 sps:$4 sm:$0xff]  }
 0x1ea   :  { %5431 = vmatprep.mubr.bf16.mxu1 %v9265_v54  ;;  %v5050_v23 = vpop.f32.mrf.mxu0  ;;  %v8309_v54 = vld [vmem:[#allocation2 + $0x26c] ss:$16 sps:$4 sm:$0xff]   ;;  %v8325_v14 = vld [vmem:[#allocation2 + $0x208] ss:$16 sps:$4 sm:$0xff]  }
 0x1eb   :  { %v5051_v61 = vadd.f32 %v5050_v23, %v9474_v8  ;;  %5359 = vmatpush1.bf16.msra.mxu0 %v8286_v9  ;;  %v5093_v24 = vpop.f32.mrf.mxu1  ;;  %v8304_v8 = vld [vmem:[#allocation2 + $0x68] ss:$16 sps:$4 sm:$0xff]   ;;  %v8324_v9 = vld [vmem:[#allocation2 + $0xc] ss:$16 sps:$4 sm:$0xff]  }
 0x1ec   :  { %5402 = vmatpush1.bf16.msra.mxu1 %v8289_v10  ;;  %5360 = vmatprep.subr.bf16.mxu0 %v8294_v17  ;;  %v8327_v10 = vld [vmem:[#allocation2 + $0x20c] ss:$16 sps:$4 sm:$0xff]  }
 0x1ed   :  { %5403 = vmatprep.subr.bf16.mxu1 %v8297_v18  ;;  %v9508_v37 = vadd.f32 %v5093_v24, %v5051_v61  ;;  %v8330_v62 = vld [vmem:[#allocation2 + $0x1ec] ss:$16 sps:$4 sm:$0xff]   ;;  %v8328_v18 = vld [vmem:[#allocation2 + $0x1e8] ss:$16 sps:$4 sm:$0xff]  }
 0x1ee   :  { %v8333_v17 = vld [vmem:[#allocation2 + $0x3ec] ss:$16 sps:$4 sm:$0xff]   ;;  %v8334_v61 = vld [vmem:[#allocation2 + $0x1c8] ss:$16 sps:$4 sm:$0xff]  }
 0x1ef   :  { %5361 = vmatpush1.bf16.msra.mxu0 %v8292_v21  ;;  %v8331_v21 = vld [vmem:[#allocation2 + $0x3e8] ss:$16 sps:$4 sm:$0xff]   ;;  %v8339_v23 = vld [vmem:[#allocation2 + $0x3cc] ss:$16 sps:$4 sm:$0xff]  }
 0x1f0   :  { %5404 = vmatpush1.bf16.msra.mxu1 %v8295_v22  ;;  %5362 = vmatprep.subr.bf16.mxu0 %v8300_v25  ;;  %v8336_v22 = vld [vmem:[#allocation2 + $0x1cc] ss:$16 sps:$4 sm:$0xff]   ;;  %v8337_v24 = vld [vmem:[#allocation2 + $0x3c8] ss:$16 sps:$4 sm:$0xff]  }
 0x1f1   :  { %5405 = vmatprep.subr.bf16.mxu1 %v8303_v30  ;;  %v8342_v25 = vld [vmem:[#allocation2 + $0x1ac] ss:$16 sps:$4 sm:$0xff]  }
 0x1f2   :  { %v8345_v30 = vld [vmem:[#allocation2 + $0x3ac] ss:$16 sps:$4 sm:$0xff]  }
 0x1f3   :  { %5363 = vmatpush1.bf16.msra.mxu0 %v8298_v38  ;;  %v8340_v38 = vld [vmem:[#allocation2 + $0x1a8] ss:$16 sps:$4 sm:$0xff]  }
 0x1f4   :  { %5406 = vmatpush1.bf16.msra.mxu1 %v8301_v39  ;;  %5364 = vmatprep.subr.bf16.mxu0 %v8306_v53  ;;  %v8343_v39 = vld [vmem:[#allocation2 + $0x3a8] ss:$16 sps:$4 sm:$0xff]   ;;  %v8348_v53 = vld [vmem:[#allocation2 + $0x18c] ss:$16 sps:$4 sm:$0xff]  }
 0x1f5   :  { %5407 = vmatprep.subr.bf16.mxu1 %v8309_v54  ;;  %v8351_v54 = vld [vmem:[#allocation2 + $0x38c] ss:$16 sps:$4 sm:$0xff]  }
 0x1f7   :  { %5365 = vmatpush1.bf16.msra.mxu0 %v8304_v8  ;;  %v8346_v8 = vld [vmem:[#allocation2 + $0x188] ss:$16 sps:$4 sm:$0xff]  }
 0x1f8   :  { %5408 = vmatpush1.bf16.msra.mxu1 %v8307_v41  ;;  %5366 = vmatprep.subr.bf16.mxu0 %v8312_v49  ;;  %v8349_v41 = vld [vmem:[#allocation2 + $0x388] ss:$16 sps:$4 sm:$0xff]   ;;  %v8354_v49 = vld [vmem:[#allocation2 + $0x16c] ss:$16 sps:$4 sm:$0xff]  }
 0x1f9   :  { %5409 = vmatprep.subr.bf16.mxu1 %v8315_v51  ;;  %v8357_v51 = vld [vmem:[#allocation2 + $0x36c] ss:$16 sps:$4 sm:$0xff]  }
 0x1fb   :  { %5367 = vmatpush1.bf16.msra.mxu0 %v8310_v52  ;;  %v8352_v52 = vld [vmem:[#allocation2 + $0x168] ss:$16 sps:$4 sm:$0xff]  }
 0x1fc   :  { %5410 = vmatpush1.bf16.msra.mxu1 %v8313_v57  ;;  %5368 = vmatprep.subr.bf16.mxu0 %v8318_v60  ;;  %v8355_v57 = vld [vmem:[#allocation2 + $0x368] ss:$16 sps:$4 sm:$0xff]   ;;  %v8360_v60 = vld [vmem:[#allocation2 + $0x14c] ss:$16 sps:$4 sm:$0xff]  }
 0x1fd   :  { %5411 = vmatprep.subr.bf16.mxu1 %v8321_v63  ;;  %v8363_v63 = vld [vmem:[#allocation2 + $0x34c] ss:$16 sps:$4 sm:$0xff]  }
 0x1ff   :  { %5369 = vmatpush1.bf16.msra.mxu0 %v8316_v5  ;;  %v8358_v5 = vld [vmem:[#allocation2 + $0x148] ss:$16 sps:$4 sm:$0xff]  }
 0x200   :  { %5412 = vmatpush1.bf16.msra.mxu1 %v8319_v6  ;;  %5370 = vmatprep.subr.bf16.mxu0 %v8324_v9  ;;  %v8361_v6 = vld [vmem:[#allocation2 + $0x348] ss:$16 sps:$4 sm:$0xff]   ;;  %v8366_v9 = vld [vmem:[#allocation2 + $0x12c] ss:$16 sps:$4 sm:$0xff]  }
 0x201   :  { %5413 = vmatprep.subr.bf16.mxu1 %v8327_v10  ;;  %v8369_v10 = vld [vmem:[#allocation2 + $0x32c] ss:$16 sps:$4 sm:$0xff]  }
 0x203   :  { %5371 = vmatpush1.bf16.msra.mxu0 %v8322_v11  ;;  %v8364_v11 = vld [vmem:[#allocation2 + $0x128] ss:$16 sps:$4 sm:$0xff]  }
 0x204   :  { %5414 = vmatpush1.bf16.msra.mxu1 %v8325_v14  ;;  %5372 = vmatprep.subr.bf16.mxu0 %v8330_v62  ;;  %v8367_v14 = vld [vmem:[#allocation2 + $0x328] ss:$16 sps:$4 sm:$0xff]   ;;  %v8372_v62 = vld [vmem:[#allocation2 + $0x10c] ss:$16 sps:$4 sm:$0xff]  }
 0x205   :  { %5415 = vmatprep.subr.bf16.mxu1 %v8333_v17  ;;  %v8375_v17 = vld [vmem:[#allocation2 + $0x30c] ss:$16 sps:$4 sm:$0xff]  }
 0x207   :  { %5373 = vmatpush2.bf16.msra.mxu0 %v8328_v18  ;;  %v8370_v18 = vld [vmem:[#allocation2 + $0x108] ss:$16 sps:$4 sm:$0xff]  }
 0x208   :  { %5416 = vmatpush2.bf16.msra.mxu1 %v8331_v21  ;;  %5374 = vmatprep.subr.bf16.mxu0 %v8336_v22  ;;  %v8373_v21 = vld [vmem:[#allocation2 + $0x308] ss:$16 sps:$4 sm:$0xff]   ;;  %v8378_v22 = vld [vmem:[#allocation2 + $0x4ec] ss:$16 sps:$4 sm:$0xff]  }
 0x209   :  { %5417 = vmatprep.subr.bf16.mxu1 %v8339_v23  ;;  %v8381_v23 = vld [vmem:[#allocation2 + $0x6ec] ss:$16 sps:$4 sm:$0xff]  }
 0x20b   :  { %5375 = vmatpush2.bf16.msra.mxu0 %v8334_v61  ;;  %v8376_v61 = vld [vmem:[#allocation2 + $0x4e8] ss:$16 sps:$4 sm:$0xff]  }
 0x20c   :  { %5418 = vmatpush2.bf16.msra.mxu1 %v8337_v24  ;;  %5376 = vmatprep.subr.bf16.mxu0 %v8342_v25  ;;  %v8379_v24 = vld [vmem:[#allocation2 + $0x6e8] ss:$16 sps:$4 sm:$0xff]   ;;  %v9510_v25 = vpop.f32.mrf.mxu0 }
 0x20d   :  { %5419 = vmatprep.subr.bf16.mxu1 %v8345_v30  ;;  %v9512_v30 = vpop.f32.mrf.mxu1 }
 0x20f   :  { %5377 = vmatpush2.bf16.msra.mxu0 %v8340_v38  ;;  %v8384_v38 = vld [vmem:[#allocation2 + $0x4cc] ss:$16 sps:$4 sm:$0xff]  }
 0x210   :  { %5420 = vmatpush2.bf16.msra.mxu1 %v8343_v39  ;;  %5378 = vmatprep.subr.bf16.mxu0 %v8348_v53  ;;  %v8387_v39 = vld [vmem:[#allocation2 + $0x6cc] ss:$16 sps:$4 sm:$0xff]   ;;  %v8382_v53 = vld [vmem:[#allocation2 + $0x4c8] ss:$16 sps:$4 sm:$0xff]  }
 0x211   :  { %5421 = vmatprep.subr.bf16.mxu1 %v8351_v54  ;;  %v8385_v54 = vld [vmem:[#allocation2 + $0x6c8] ss:$16 sps:$4 sm:$0xff]  }
 0x213   :  { %5379 = vmatpush2.bf16.msra.mxu0 %v8346_v8 }
 0x214   :  { %5422 = vmatpush2.bf16.msra.mxu1 %v8349_v41  ;;  %5380 = vmatprep.subr.bf16.mxu0 %v8354_v49 }
 0x215   :  { %5423 = vmatprep.subr.bf16.mxu1 %v8357_v51 }
 0x217   :  { %5381 = vmatpush2.bf16.msra.mxu0 %v8352_v52 }
 0x218   :  { %5424 = vmatpush2.bf16.msra.mxu1 %v8355_v57  ;;  %5382 = vmatprep.subr.bf16.mxu0 %v8360_v60  ;;  %v8390_v57 = vld [vmem:[#allocation2 + $0x4ac] ss:$16 sps:$4 sm:$0xff]  }
 0x219   :  { %5425 = vmatprep.subr.bf16.mxu1 %v8363_v63  ;;  %v8393_v60 = vld [vmem:[#allocation2 + $0x6ac] ss:$16 sps:$4 sm:$0xff]  }
 0x21b   :  { %5383 = vmatpush2.bf16.msra.mxu0 %v8358_v5  ;;  %v8388_v5 = vld [vmem:[#allocation2 + $0x4a8] ss:$16 sps:$4 sm:$0xff]  }
 0x21c   :  { %5426 = vmatpush2.bf16.msra.mxu1 %v8361_v6  ;;  %5384 = vmatprep.subr.bf16.mxu0 %v8366_v9  ;;  %v8391_v6 = vld [vmem:[#allocation2 + $0x6a8] ss:$16 sps:$4 sm:$0xff]   ;;  %v8396_v9 = vld [vmem:[#allocation2 + $0x48c] ss:$16 sps:$4 sm:$0xff]  }
 0x21d   :  { %5427 = vmatprep.subr.bf16.mxu1 %v8369_v10  ;;  %v8399_v10 = vld [vmem:[#allocation2 + $0x68c] ss:$16 sps:$4 sm:$0xff]  }
 0x21f   :  { %5385 = vmatpush2.bf16.msra.mxu0 %v8364_v11 }
 0x220   :  { %5428 = vmatpush2.bf16.msra.mxu1 %v8367_v14  ;;  %5386 = vmatprep.subr.bf16.mxu0 %v8372_v62  ;;  %v8394_v14 = vld [vmem:[#allocation2 + $0x488] ss:$16 sps:$4 sm:$0xff]  }
 0x221   :  { %5429 = vmatprep.subr.bf16.mxu1 %v8375_v17  ;;  %v8397_v62 = vld [vmem:[#allocation2 + $0x688] ss:$16 sps:$4 sm:$0xff]  }
 0x222   :  { %v8403_v17 = vld [vmem:[#allocation2 + $0x668] ss:$16 sps:$4 sm:$0xff]  }
 0x223   :  { %5387 = vmatpush2.bf16.msra.mxu0 %v8370_v18  ;;  %v8408_v18 = vld [vmem:[#allocation2 + $0x44c] ss:$16 sps:$4 sm:$0xff]  }
 0x224   :  { %5430 = vmatpush2.bf16.msra.mxu1 %v8373_v21  ;;  %5442 = vmatprep.subr.bf16.mxu0 %v8378_v22  ;;  %v8411_v21 = vld [vmem:[#allocation2 + $0x64c] ss:$16 sps:$4 sm:$0xff]   ;;  %v8406_v22 = vld [vmem:[#allocation2 + $0x448] ss:$16 sps:$4 sm:$0xff]  }
 0x225   :  { %5485 = vmatprep.subr.bf16.mxu1 %v8381_v23  ;;  %v8409_v23 = vld [vmem:[#allocation2 + $0x648] ss:$16 sps:$4 sm:$0xff]  }
 0x226   :  { %v5132_v8 = vpop.f32.mrf.mxu0  ;;  %5389 = vmatmul.mubr.bf16.vlgmr.msra.gmra.mxu0 %v9281_v12 }
 0x227   :  { %v5175_v41 = vpop.f32.mrf.mxu1  ;;  %5432 = vmatmul.mubr.bf16.vlgmr.msra.gmra.mxu1 %v9283_v13  ;;  %v5133_v49 = vadd.f32 %v5132_v8, %v9503_v20  ;;  %5443 = vmatpush1.bf16.msra.mxu0 %v8376_v61  ;;  %v8414_v61 = vld [vmem:[#allocation2 + $0x42c] ss:$16 sps:$4 sm:$0xff]   ;;  %v8418_v8 = vld [vmem:[#allocation2 + $0x408] ss:$16 sps:$4 sm:$0xff]  }
 0x228   :  { %5486 = vmatpush1.bf16.msra.mxu1 %v8379_v24  ;;  %v9517_v51 = vpop.f32.mrf.mxu0  ;;  %5444 = vmatprep.subr.bf16.mxu0 %v8384_v38  ;;  %v8417_v24 = vld [vmem:[#allocation2 + $0x62c] ss:$16 sps:$4 sm:$0xff]   ;;  %v8412_v38 = vld [vmem:[#allocation2 + $0x428] ss:$16 sps:$4 sm:$0xff]  }
 0x229   :  { %v9519_v52 = vpop.f32.mrf.mxu1  ;;  %5487 = vmatprep.subr.bf16.mxu1 %v8387_v39  ;;  %v9521_v63 = vadd.f32 %v5175_v41, %v5133_v49  ;;  %5474 = vmatprep.mubr.bf16.mxu0 %v9296_v45  ;;  %v8402_v45 = vld [vmem:[#allocation2 + $0x46c] ss:$16 sps:$4 sm:$0xff]   ;;  %v8415_v39 = vld [vmem:[#allocation2 + $0x628] ss:$16 sps:$4 sm:$0xff]  }
 0x22a   :  { %5517 = vmatprep.mubr.bf16.mxu1 %v9301_v47  ;;  %v5136_v12 = vpop.f32.mrf.mxu0  ;;  %v8405_v47 = vld [vmem:[#allocation2 + $0x66c] ss:$16 sps:$4 sm:$0xff]   ;;  %v8421_v41 = vld [vmem:[#allocation2 + $0x608] ss:$16 sps:$4 sm:$0xff]  }
 0x22b   :  { %v5137_v13 = vadd.f32 %v5136_v12, %v9508_v37  ;;  %5445 = vmatpush1.bf16.msra.mxu0 %v8382_v53  ;;  %v5179_v20 = vpop.f32.mrf.mxu1  ;;  %v8400_v37 = vld [vmem:[#allocation2 + $0x468] ss:$16 sps:$4 sm:$0xff]   ;;  %v8420_v53 = vld [vmem:[#allocation2 + $0x40c] ss:$16 sps:$4 sm:$0xff]  }
 0x22c   :  { %5488 = vmatpush1.bf16.msra.mxu1 %v8385_v54  ;;  %5446 = vmatprep.subr.bf16.mxu0 %v8390_v57  ;;  %v8423_v54 = vld [vmem:[#allocation2 + $0x60c] ss:$16 sps:$4 sm:$0xff]  }
 0x22d   :  { %5489 = vmatprep.subr.bf16.mxu1 %v8393_v60  ;;  %v9526_v11 = vadd.f32 %v5179_v20, %v5137_v13  ;;  %v8426_v49 = vld [vmem:[#allocation2 + $0x5ec] ss:$16 sps:$4 sm:$0xff]   ;;  %v8424_v60 = vld [vmem:[#allocation2 + $0x5e8] ss:$16 sps:$4 sm:$0xff]  }
 0x22e   :  { %v8429_v57 = vld [vmem:[#allocation2 + $0x7ec] ss:$16 sps:$4 sm:$0xff]   ;;  %v8430_v13 = vld [vmem:[#allocation2 + $0x5c8] ss:$16 sps:$4 sm:$0xff]  }
 0x22f   :  { %5447 = vmatpush1.bf16.msra.mxu0 %v8388_v5  ;;  %v8427_v5 = vld [vmem:[#allocation2 + $0x7e8] ss:$16 sps:$4 sm:$0xff]   ;;  %v8435_v12 = vld [vmem:[#allocation2 + $0x7cc] ss:$16 sps:$4 sm:$0xff]  }
 0x230   :  { %5490 = vmatpush1.bf16.msra.mxu1 %v8391_v6  ;;  %5448 = vmatprep.subr.bf16.mxu0 %v8396_v9  ;;  %v8432_v6 = vld [vmem:[#allocation2 + $0x5cc] ss:$16 sps:$4 sm:$0xff]   ;;  %v8433_v20 = vld [vmem:[#allocation2 + $0x7c8] ss:$16 sps:$4 sm:$0xff]  }
 0x231   :  { %5491 = vmatprep.subr.bf16.mxu1 %v8399_v10  ;;  %v8438_v9 = vld [vmem:[#allocation2 + $0x5ac] ss:$16 sps:$4 sm:$0xff]  }
 0x232   :  { %v8441_v10 = vld [vmem:[#allocation2 + $0x7ac] ss:$16 sps:$4 sm:$0xff]  }
 0x233   :  { %5449 = vmatpush1.bf16.msra.mxu0 %v8394_v14  ;;  %v8436_v14 = vld [vmem:[#allocation2 + $0x5a8] ss:$16 sps:$4 sm:$0xff]  }
 0x234   :  { %5492 = vmatpush1.bf16.msra.mxu1 %v8397_v62  ;;  %5450 = vmatprep.subr.bf16.mxu0 %v8402_v45  ;;  %v8439_v62 = vld [vmem:[#allocation2 + $0x7a8] ss:$16 sps:$4 sm:$0xff]   ;;  %v8444_v45 = vld [vmem:[#allocation2 + $0x58c] ss:$16 sps:$4 sm:$0xff]  }
 0x235   :  { %5493 = vmatprep.subr.bf16.mxu1 %v8405_v47  ;;  %v8447_v47 = vld [vmem:[#allocation2 + $0x78c] ss:$16 sps:$4 sm:$0xff]  }
 0x237   :  { %5451 = vmatpush1.bf16.msra.mxu0 %v8400_v37  ;;  %v8442_v37 = vld [vmem:[#allocation2 + $0x588] ss:$16 sps:$4 sm:$0xff]  }
 0x238   :  { %5494 = vmatpush1.bf16.msra.mxu1 %v8403_v17  ;;  %5452 = vmatprep.subr.bf16.mxu0 %v8408_v18  ;;  %v8445_v17 = vld [vmem:[#allocation2 + $0x788] ss:$16 sps:$4 sm:$0xff]   ;;  %v8450_v18 = vld [vmem:[#allocation2 + $0x56c] ss:$16 sps:$4 sm:$0xff]  }
 0x239   :  { %5495 = vmatprep.subr.bf16.mxu1 %v8411_v21  ;;  %v8453_v21 = vld [vmem:[#allocation2 + $0x76c] ss:$16 sps:$4 sm:$0xff]  }
 0x23b   :  { %5453 = vmatpush1.bf16.msra.mxu0 %v8406_v22  ;;  %v8448_v22 = vld [vmem:[#allocation2 + $0x568] ss:$16 sps:$4 sm:$0xff]  }
 0x23c   :  { %5496 = vmatpush1.bf16.msra.mxu1 %v8409_v23  ;;  %5454 = vmatprep.subr.bf16.mxu0 %v8414_v61  ;;  %v8451_v23 = vld [vmem:[#allocation2 + $0x768] ss:$16 sps:$4 sm:$0xff]   ;;  %v8456_v61 = vld [vmem:[#allocation2 + $0x54c] ss:$16 sps:$4 sm:$0xff]  }
 0x23d   :  { %5497 = vmatprep.subr.bf16.mxu1 %v8417_v24  ;;  %v8459_v24 = vld [vmem:[#allocation2 + $0x74c] ss:$16 sps:$4 sm:$0xff]  }
 0x23f   :  { %5455 = vmatpush1.bf16.msra.mxu0 %v8412_v38  ;;  %v8454_v38 = vld [vmem:[#allocation2 + $0x548] ss:$16 sps:$4 sm:$0xff]  }
 0x240   :  { %5498 = vmatpush1.bf16.msra.mxu1 %v8415_v39  ;;  %5456 = vmatprep.subr.bf16.mxu0 %v8420_v53  ;;  %v8457_v39 = vld [vmem:[#allocation2 + $0x748] ss:$16 sps:$4 sm:$0xff]   ;;  %v8462_v53 = vld [vmem:[#allocation2 + $0x52c] ss:$16 sps:$4 sm:$0xff]  }
 0x241   :  { %5499 = vmatprep.subr.bf16.mxu1 %v8423_v54  ;;  %v8465_v54 = vld [vmem:[#allocation2 + $0x72c] ss:$16 sps:$4 sm:$0xff]  }
 0x243   :  { %5457 = vmatpush1.bf16.msra.mxu0 %v8418_v8  ;;  %v8460_v8 = vld [vmem:[#allocation2 + $0x528] ss:$16 sps:$4 sm:$0xff]  }
 0x244   :  { %5500 = vmatpush1.bf16.msra.mxu1 %v8421_v41  ;;  %5458 = vmatprep.subr.bf16.mxu0 %v8426_v49  ;;  %v8463_v41 = vld [vmem:[#allocation2 + $0x728] ss:$16 sps:$4 sm:$0xff]   ;;  %v8468_v49 = vld [vmem:[#allocation2 + $0x50c] ss:$16 sps:$4 sm:$0xff]  }
 0x245   :  { %5501 = vmatprep.subr.bf16.mxu1 %v8429_v57  ;;  %v8471_v57 = vld [vmem:[#allocation2 + $0x70c] ss:$16 sps:$4 sm:$0xff]  }
 0x247   :  { %5459 = vmatpush2.bf16.msra.mxu0 %v8424_v60  ;;  %v8466_v60 = vld [vmem:[#allocation2 + $0x508] ss:$16 sps:$4 sm:$0xff]  }
 0x248   :  { %5502 = vmatpush2.bf16.msra.mxu1 %v8427_v5  ;;  %5460 = vmatprep.subr.bf16.mxu0 %v8432_v6  ;;  %v8469_v5 = vld [vmem:[#allocation2 + $0x708] ss:$16 sps:$4 sm:$0xff]   ;;  %v8474_v6 = vld [vmem:[#allocation2 + $0x8ec] ss:$16 sps:$4 sm:$0xff]  }
 0x249   :  { %5503 = vmatprep.subr.bf16.mxu1 %v8435_v12  ;;  %v8477_v12 = vld [vmem:[#allocation2 + $0xaec] ss:$16 sps:$4 sm:$0xff]  }
 0x24b   :  { %5461 = vmatpush2.bf16.msra.mxu0 %v8430_v13  ;;  %v8472_v13 = vld [vmem:[#allocation2 + $0x8e8] ss:$16 sps:$4 sm:$0xff]  }
 0x24c   :  { %5504 = vmatpush2.bf16.msra.mxu1 %v8433_v20  ;;  %5462 = vmatprep.subr.bf16.mxu0 %v8438_v9  ;;  %v8475_v20 = vld [vmem:[#allocation2 + $0xae8] ss:$16 sps:$4 sm:$0xff]   ;;  %v9528_v9 = vpop.f32.mrf.mxu0 }
 0x24d   :  { %5505 = vmatprep.subr.bf16.mxu1 %v8441_v10  ;;  %v9530_v10 = vpop.f32.mrf.mxu1 }
 0x24f   :  { %5463 = vmatpush2.bf16.msra.mxu0 %v8436_v14  ;;  %v8480_v14 = vld [vmem:[#allocation2 + $0x8cc] ss:$16 sps:$4 sm:$0xff]  }
 0x250   :  { %5506 = vmatpush2.bf16.msra.mxu1 %v8439_v62  ;;  %5464 = vmatprep.subr.bf16.mxu0 %v8444_v45  ;;  %v8483_v62 = vld [vmem:[#allocation2 + $0xacc] ss:$16 sps:$4 sm:$0xff]   ;;  %v8478_v45 = vld [vmem:[#allocation2 + $0x8c8] ss:$16 sps:$4 sm:$0xff]  }
 0x251   :  { %5507 = vmatprep.subr.bf16.mxu1 %v8447_v47  ;;  %v8481_v47 = vld [vmem:[#allocation2 + $0xac8] ss:$16 sps:$4 sm:$0xff]  }
 0x253   :  { %5465 = vmatpush2.bf16.msra.mxu0 %v8442_v37 }
 0x254   :  { %5508 = vmatpush2.bf16.msra.mxu1 %v8445_v17  ;;  %5466 = vmatprep.subr.bf16.mxu0 %v8450_v18 }
 0x255   :  { %5509 = vmatprep.subr.bf16.mxu1 %v8453_v21 }
 0x257   :  { %5467 = vmatpush2.bf16.msra.mxu0 %v8448_v22 }
 0x258   :  { %5510 = vmatpush2.bf16.msra.mxu1 %v8451_v23  ;;  %5468 = vmatprep.subr.bf16.mxu0 %v8456_v61  ;;  %v8486_v23 = vld [vmem:[#allocation2 + $0x8ac] ss:$16 sps:$4 sm:$0xff]  }
 0x259   :  { %5511 = vmatprep.subr.bf16.mxu1 %v8459_v24  ;;  %v8489_v61 = vld [vmem:[#allocation2 + $0xaac] ss:$16 sps:$4 sm:$0xff]  }
 0x25b   :  { %5469 = vmatpush2.bf16.msra.mxu0 %v8454_v38  ;;  %v8484_v38 = vld [vmem:[#allocation2 + $0x8a8] ss:$16 sps:$4 sm:$0xff]  }
 0x25c   :  { %5512 = vmatpush2.bf16.msra.mxu1 %v8457_v39  ;;  %5470 = vmatprep.subr.bf16.mxu0 %v8462_v53  ;;  %v8487_v39 = vld [vmem:[#allocation2 + $0xaa8] ss:$16 sps:$4 sm:$0xff]   ;;  %v8492_v53 = vld [vmem:[#allocation2 + $0x88c] ss:$16 sps:$4 sm:$0xff]  }
 0x25d   :  { %5513 = vmatprep.subr.bf16.mxu1 %v8465_v54  ;;  %v8495_v54 = vld [vmem:[#allocation2 + $0xa8c] ss:$16 sps:$4 sm:$0xff]  }
 0x25f   :  { %5471 = vmatpush2.bf16.msra.mxu0 %v8460_v8 }
 0x260   :  { %5514 = vmatpush2.bf16.msra.mxu1 %v8463_v41  ;;  %5472 = vmatprep.subr.bf16.mxu0 %v8468_v49  ;;  %v8490_v41 = vld [vmem:[#allocation2 + $0x888] ss:$16 sps:$4 sm:$0xff]  }
 0x261   :  { %5515 = vmatprep.subr.bf16.mxu1 %v8471_v57  ;;  %v8493_v49 = vld [vmem:[#allocation2 + $0xa88] ss:$16 sps:$4 sm:$0xff]  }
 0x262   :  { %v8499_v57 = vld [vmem:[#allocation2 + $0xa68] ss:$16 sps:$4 sm:$0xff]  }
 0x263   :  { %5473 = vmatpush2.bf16.msra.mxu0 %v8466_v60  ;;  %v8504_v60 = vld [vmem:[#allocation2 + $0x84c] ss:$16 sps:$4 sm:$0xff]  }
 0x264   :  { %5516 = vmatpush2.bf16.msra.mxu1 %v8469_v5  ;;  %5528 = vmatprep.subr.bf16.mxu0 %v8474_v6  ;;  %v8507_v5 = vld [vmem:[#allocation2 + $0xa4c] ss:$16 sps:$4 sm:$0xff]   ;;  %v8502_v6 = vld [vmem:[#allocation2 + $0x848] ss:$16 sps:$4 sm:$0xff]  }
 0x265   :  { %5571 = vmatprep.subr.bf16.mxu1 %v8477_v12  ;;  %v8505_v12 = vld [vmem:[#allocation2 + $0xa48] ss:$16 sps:$4 sm:$0xff]  }
 0x266   :  { %v5218_v37 = vpop.f32.mrf.mxu0  ;;  %5475 = vmatmul.mubr.bf16.vlgmr.msra.gmra.mxu0 %v9317_v28 }
 0x267   :  { %v5261_v17 = vpop.f32.mrf.mxu1  ;;  %5518 = vmatmul.mubr.bf16.vlgmr.msra.gmra.mxu1 %v9319_v29  ;;  %v5219_v18 = vadd.f32 %v5218_v37, %v9521_v63  ;;  %5529 = vmatpush1.bf16.msra.mxu0 %v8472_v13  ;;  %v8510_v13 = vld [vmem:[#allocation2 + $0x82c] ss:$16 sps:$4 sm:$0xff]   ;;  %v8514_v37 = vld [vmem:[#allocation2 + $0x808] ss:$16 sps:$4 sm:$0xff]  }
 0x268   :  { %5572 = vmatpush1.bf16.msra.mxu1 %v8475_v20  ;;  %v9535_v21 = vpop.f32.mrf.mxu0  ;;  %5530 = vmatprep.subr.bf16.mxu0 %v8480_v14  ;;  %v8513_v20 = vld [vmem:[#allocation2 + $0xa2c] ss:$16 sps:$4 sm:$0xff]   ;;  %v8508_v14 = vld [vmem:[#allocation2 + $0x828] ss:$16 sps:$4 sm:$0xff]  }
 0x269   :  { %v9537_v22 = vpop.f32.mrf.mxu1  ;;  %5573 = vmatprep.subr.bf16.mxu1 %v8483_v62  ;;  %v9539_v24 = vadd.f32 %v5261_v17, %v5219_v18  ;;  %5560 = vmatprep.mubr.bf16.mxu0 %v9329_v40  ;;  %v8498_v40 = vld [vmem:[#allocation2 + $0x86c] ss:$16 sps:$4 sm:$0xff]   ;;  %v8511_v62 = vld [vmem:[#allocation2 + $0xa28] ss:$16 sps:$4 sm:$0xff]  }
 0x26a   :  { %5603 = vmatprep.mubr.bf16.mxu1 %v9337_v46  ;;  %v5222_v28 = vpop.f32.mrf.mxu0  ;;  %v8501_v46 = vld [vmem:[#allocation2 + $0xa6c] ss:$16 sps:$4 sm:$0xff]   ;;  %v8517_v17 = vld [vmem:[#allocation2 + $0xa08] ss:$16 sps:$4 sm:$0xff]  }
 0x26b   :  { %v5223_v29 = vadd.f32 %v5222_v28, %v9526_v11  ;;  %5531 = vmatpush1.bf16.msra.mxu0 %v8478_v45  ;;  %v5265_v63 = vpop.f32.mrf.mxu1  ;;  %v8496_v11 = vld [vmem:[#allocation2 + $0x868] ss:$16 sps:$4 sm:$0xff]   ;;  %v8516_v45 = vld [vmem:[#allocation2 + $0x80c] ss:$16 sps:$4 sm:$0xff]  }
 0x26c   :  { %5574 = vmatpush1.bf16.msra.mxu1 %v8481_v47  ;;  %5532 = vmatprep.subr.bf16.mxu0 %v8486_v23  ;;  %v8519_v47 = vld [vmem:[#allocation2 + $0xa0c] ss:$16 sps:$4 sm:$0xff]  }
 0x26d   :  { %5575 = vmatprep.subr.bf16.mxu1 %v8489_v61  ;;  %v9544_v8 = vadd.f32 %v5265_v63, %v5223_v29  ;;  %v8522_v18 = vld [vmem:[#allocation2 + $0x9ec] ss:$16 sps:$4 sm:$0xff]   ;;  %v8520_v61 = vld [vmem:[#allocation2 + $0x9e8] ss:$16 sps:$4 sm:$0xff]  }
 0x26e   :  { %v8525_v23 = vld [vmem:[#allocation2 + $0xbec] ss:$16 sps:$4 sm:$0xff]   ;;  %v8526_v29 = vld [vmem:[#allocation2 + $0x9c8] ss:$16 sps:$4 sm:$0xff]  }
 0x26f   :  { %5533 = vmatpush1.bf16.msra.mxu0 %v8484_v38  ;;  %v8523_v38 = vld [vmem:[#allocation2 + $0xbe8] ss:$16 sps:$4 sm:$0xff]   ;;  %v8531_v28 = vld [vmem:[#allocation2 + $0xbcc] ss:$16 sps:$4 sm:$0xff]  }
 0x270   :  { %5576 = vmatpush1.bf16.msra.mxu1 %v8487_v39  ;;  %5534 = vmatprep.subr.bf16.mxu0 %v8492_v53  ;;  %v8528_v39 = vld [vmem:[#allocation2 + $0x9cc] ss:$16 sps:$4 sm:$0xff]   ;;  %v8529_v63 = vld [vmem:[#allocation2 + $0xbc8] ss:$16 sps:$4 sm:$0xff]  }
 0x271   :  { %5577 = vmatprep.subr.bf16.mxu1 %v8495_v54  ;;  %v8534_v53 = vld [vmem:[#allocation2 + $0x9ac] ss:$16 sps:$4 sm:$0xff]  }
 0x272   :  { %v8537_v54 = vld [vmem:[#allocation2 + $0xbac] ss:$16 sps:$4 sm:$0xff]  }
 0x273   :  { %5535 = vmatpush1.bf16.msra.mxu0 %v8490_v41  ;;  %v8532_v41 = vld [vmem:[#allocation2 + $0x9a8] ss:$16 sps:$4 sm:$0xff]  }
 0x274   :  { %5578 = vmatpush1.bf16.msra.mxu1 %v8493_v49  ;;  %5536 = vmatprep.subr.bf16.mxu0 %v8498_v40  ;;  %v8535_v49 = vld [vmem:[#allocation2 + $0xba8] ss:$16 sps:$4 sm:$0xff]   ;;  %v8540_v40 = vld [vmem:[#allocation2 + $0x98c] ss:$16 sps:$4 sm:$0xff]  }
 0x275   :  { %5579 = vmatprep.subr.bf16.mxu1 %v8501_v46  ;;  %v8543_v46 = vld [vmem:[#allocation2 + $0xb8c] ss:$16 sps:$4 sm:$0xff]  }
 0x277   :  { %5537 = vmatpush1.bf16.msra.mxu0 %v8496_v11  ;;  %v8538_v11 = vld [vmem:[#allocation2 + $0x988] ss:$16 sps:$4 sm:$0xff]  }
 0x278   :  { %5580 = vmatpush1.bf16.msra.mxu1 %v8499_v57  ;;  %5538 = vmatprep.subr.bf16.mxu0 %v8504_v60  ;;  %v8541_v57 = vld [vmem:[#allocation2 + $0xb88] ss:$16 sps:$4 sm:$0xff]   ;;  %v8546_v60 = vld [vmem:[#allocation2 + $0x96c] ss:$16 sps:$4 sm:$0xff]  }
 0x279   :  { %5581 = vmatprep.subr.bf16.mxu1 %v8507_v5  ;;  %v8549_v5 = vld [vmem:[#allocation2 + $0xb6c] ss:$16 sps:$4 sm:$0xff]  }
 0x27b   :  { %5539 = vmatpush1.bf16.msra.mxu0 %v8502_v6  ;;  %v8544_v6 = vld [vmem:[#allocation2 + $0x968] ss:$16 sps:$4 sm:$0xff]  }
 0x27c   :  { %5582 = vmatpush1.bf16.msra.mxu1 %v8505_v12  ;;  %5540 = vmatprep.subr.bf16.mxu0 %v8510_v13  ;;  %v8547_v12 = vld [vmem:[#allocation2 + $0xb68] ss:$16 sps:$4 sm:$0xff]   ;;  %v8552_v13 = vld [vmem:[#allocation2 + $0x94c] ss:$16 sps:$4 sm:$0xff]  }
 0x27d   :  { %5583 = vmatprep.subr.bf16.mxu1 %v8513_v20  ;;  %v8555_v20 = vld [vmem:[#allocation2 + $0xb4c] ss:$16 sps:$4 sm:$0xff]  }
 0x27f   :  { %5541 = vmatpush1.bf16.msra.mxu0 %v8508_v14  ;;  %v8550_v14 = vld [vmem:[#allocation2 + $0x948] ss:$16 sps:$4 sm:$0xff]  }
 0x280   :  { %5584 = vmatpush1.bf16.msra.mxu1 %v8511_v62  ;;  %5542 = vmatprep.subr.bf16.mxu0 %v8516_v45  ;;  %v8553_v62 = vld [vmem:[#allocation2 + $0xb48] ss:$16 sps:$4 sm:$0xff]   ;;  %v8558_v45 = vld [vmem:[#allocation2 + $0x92c] ss:$16 sps:$4 sm:$0xff]  }
 0x281   :  { %5585 = vmatprep.subr.bf16.mxu1 %v8519_v47  ;;  %v8561_v47 = vld [vmem:[#allocation2 + $0xb2c] ss:$16 sps:$4 sm:$0xff]  }
 0x283   :  { %5543 = vmatpush1.bf16.msra.mxu0 %v8514_v37  ;;  %v8556_v37 = vld [vmem:[#allocation2 + $0x928] ss:$16 sps:$4 sm:$0xff]  }
 0x284   :  { %5586 = vmatpush1.bf16.msra.mxu1 %v8517_v17  ;;  %5544 = vmatprep.subr.bf16.mxu0 %v8522_v18  ;;  %v8559_v17 = vld [vmem:[#allocation2 + $0xb28] ss:$16 sps:$4 sm:$0xff]   ;;  %v8564_v18 = vld [vmem:[#allocation2 + $0x90c] ss:$16 sps:$4 sm:$0xff]  }
 0x285   :  { %5587 = vmatprep.subr.bf16.mxu1 %v8525_v23  ;;  %v8567_v23 = vld [vmem:[#allocation2 + $0xb0c] ss:$16 sps:$4 sm:$0xff]  }
 0x287   :  { %5545 = vmatpush2.bf16.msra.mxu0 %v8520_v61  ;;  %v8562_v61 = vld [vmem:[#allocation2 + $0x908] ss:$16 sps:$4 sm:$0xff]  }
 0x288   :  { %5588 = vmatpush2.bf16.msra.mxu1 %v8523_v38  ;;  %5546 = vmatprep.subr.bf16.mxu0 %v8528_v39  ;;  %v8565_v38 = vld [vmem:[#allocation2 + $0xb08] ss:$16 sps:$4 sm:$0xff]   ;;  %v8570_v39 = vld [vmem:[#allocation2 + $0xcec] ss:$16 sps:$4 sm:$0xff]  }
 0x289   :  { %5589 = vmatprep.subr.bf16.mxu1 %v8531_v28  ;;  %v8573_v28 = vld [vmem:[#allocation2 + $0xeec] ss:$16 sps:$4 sm:$0xff]  }
 0x28b   :  { %5547 = vmatpush2.bf16.msra.mxu0 %v8526_v29  ;;  %v8568_v29 = vld [vmem:[#allocation2 + $0xce8] ss:$16 sps:$4 sm:$0xff]  }
 0x28c   :  { %5590 = vmatpush2.bf16.msra.mxu1 %v8529_v63  ;;  %5548 = vmatprep.subr.bf16.mxu0 %v8534_v53  ;;  %v8571_v63 = vld [vmem:[#allocation2 + $0xee8] ss:$16 sps:$4 sm:$0xff]   ;;  %v9546_v53 = vpop.f32.mrf.mxu0 }
 0x28d   :  { %5591 = vmatprep.subr.bf16.mxu1 %v8537_v54  ;;  %v9548_v54 = vpop.f32.mrf.mxu1 }
 0x28f   :  { %5549 = vmatpush2.bf16.msra.mxu0 %v8532_v41  ;;  %v8576_v41 = vld [vmem:[#allocation2 + $0xccc] ss:$16 sps:$4 sm:$0xff]  }
 0x290   :  { %5592 = vmatpush2.bf16.msra.mxu1 %v8535_v49  ;;  %5550 = vmatprep.subr.bf16.mxu0 %v8540_v40  ;;  %v8579_v49 = vld [vmem:[#allocation2 + $0xecc] ss:$16 sps:$4 sm:$0xff]  }
 0x291   :  { %5593 = vmatprep.subr.bf16.mxu1 %v8543_v46 }
 0x293   :  { %5551 = vmatpush2.bf16.msra.mxu0 %v8538_v11 }
 0x294   :  { %5594 = vmatpush2.bf16.msra.mxu1 %v8541_v57  ;;  %5552 = vmatprep.subr.bf16.mxu0 %v8546_v60  ;;  %v8574_v57 = vld [vmem:[#allocation2 + $0xcc8] ss:$16 sps:$4 sm:$0xff]  }
 0x295   :  { %5595 = vmatprep.subr.bf16.mxu1 %v8549_v5  ;;  %v8577_v60 = vld [vmem:[#allocation2 + $0xec8] ss:$16 sps:$4 sm:$0xff]  }
 0x297   :  { %5553 = vmatpush2.bf16.msra.mxu0 %v8544_v6 }
 0x298   :  { %5596 = vmatpush2.bf16.msra.mxu1 %v8547_v12  ;;  %5554 = vmatprep.subr.bf16.mxu0 %v8552_v13  ;;  %v8582_v12 = vld [vmem:[#allocation2 + $0xcac] ss:$16 sps:$4 sm:$0xff]  }
 0x299   :  { %5597 = vmatprep.subr.bf16.mxu1 %v8555_v20  ;;  %v8585_v13 = vld [vmem:[#allocation2 + $0xeac] ss:$16 sps:$4 sm:$0xff]  }
 0x29b   :  { %5555 = vmatpush2.bf16.msra.mxu0 %v8550_v14  ;;  %v8583_v14 = vld [vmem:[#allocation2 + $0xea8] ss:$16 sps:$4 sm:$0xff]  }
 0x29c   :  { %5598 = vmatpush2.bf16.msra.mxu1 %v8553_v62  ;;  %5556 = vmatprep.subr.bf16.mxu0 %v8558_v45  ;;  %v8588_v45 = vld [vmem:[#allocation2 + $0xc8c] ss:$16 sps:$4 sm:$0xff]  }
 0x29d   :  { %5599 = vmatprep.subr.bf16.mxu1 %v8561_v47  ;;  %v8591_v47 = vld [vmem:[#allocation2 + $0xe8c] ss:$16 sps:$4 sm:$0xff]  }
 0x29f   :  { %5557 = vmatpush2.bf16.msra.mxu0 %v8556_v37 }
 0x2a0   :  { %5600 = vmatpush2.bf16.msra.mxu1 %v8559_v17  ;;  %5558 = vmatprep.subr.bf16.mxu0 %v8564_v18  ;;  %v8597_v18 = vld [vmem:[#allocation2 + $0xe6c] ss:$16 sps:$4 sm:$0xff]  }
 0x2a1   :  { %5601 = vmatprep.subr.bf16.mxu1 %v8567_v23  ;;  %v8592_v23 = vld [vmem:[#allocation2 + $0xc68] ss:$16 sps:$4 sm:$0xff]  }
 0x2a3   :  { %5559 = vmatpush2.bf16.msra.mxu0 %v8562_v61  ;;  %v8595_v61 = vld [vmem:[#allocation2 + $0xe68] ss:$16 sps:$4 sm:$0xff]  }
 0x2a4   :  { %5602 = vmatpush2.bf16.msra.mxu1 %v8565_v38  ;;  %5614 = vmatprep.subr.bf16.mxu0 %v8570_v39  ;;  %v8600_v38 = vld [vmem:[#allocation2 + $0xc4c] ss:$16 sps:$4 sm:$0xff]  }
 0x2a5   :  { %5657 = vmatprep.subr.bf16.mxu1 %v8573_v28  ;;  %v8603_v39 = vld [vmem:[#allocation2 + $0xe4c] ss:$16 sps:$4 sm:$0xff]   ;;  %v8598_v28 = vld [vmem:[#allocation2 + $0xc48] ss:$16 sps:$4 sm:$0xff]  }
 0x2a6   :  { %v5304_v40 = vpop.f32.mrf.mxu0  ;;  %5561 = vmatmul.mubr.bf16.vlgmr.msra.gmra.mxu0 %v9362_v58 }
 0x2a7   :  { %v5347_v46 = vpop.f32.mrf.mxu1  ;;  %5604 = vmatmul.mubr.bf16.vlgmr.msra.gmra.mxu1 %v9364_v59  ;;  %v5305_v11 = vadd.f32 %v5304_v40, %v9539_v24  ;;  %5615 = vmatpush1.bf16.msra.mxu0 %v8568_v29  ;;  %v8580_v24 = vld [vmem:[#allocation2 + $0xca8] ss:$16 sps:$4 sm:$0xff]  }
 0x2a8   :  { %5658 = vmatpush1.bf16.msra.mxu1 %v8571_v63  ;;  %v9553_v5 = vpop.f32.mrf.mxu0  ;;  %5616 = vmatprep.subr.bf16.mxu0 %v8576_v41  ;;  %v8601_v29 = vld [vmem:[#allocation2 + $0xe48] ss:$16 sps:$4 sm:$0xff]   ;;  %v8606_v63 = vld [vmem:[#allocation2 + $0xc2c] ss:$16 sps:$4 sm:$0xff]  }
 0x2a9   :  { %v9555_v6 = vpop.f32.mrf.mxu1  ;;  %5659 = vmatprep.subr.bf16.mxu1 %v8579_v49  ;;  %v9557_v20 = vadd.f32 %v5347_v46, %v5305_v11  ;;  %5646 = vmatprep.mubr.bf16.mxu0 %v9369_v0  ;;  %v8586_v0 = vld [vmem:[#allocation2 + $0xc88] ss:$16 sps:$4 sm:$0xff]   ;;  %v8609_v41 = vld [vmem:[#allocation2 + $0xe2c] ss:$16 sps:$4 sm:$0xff]  }
 0x2aa   :  { %5689 = vmatprep.mubr.bf16.mxu1 %v9371_v1  ;;  %v5308_v58 = vpop.f32.mrf.mxu0  ;;  %v8589_v1 = vld [vmem:[#allocation2 + $0xe88] ss:$16 sps:$4 sm:$0xff]   ;;  %v8612_v46 = vld [vmem:[#allocation2 + $0xc0c] ss:$16 sps:$4 sm:$0xff]  }
 0x2ab   :  { %v5309_v59 = vadd.f32 %v5308_v58, %v9544_v8  ;;  %5617 = vmatpush1.bf16.msra.mxu0 %v8574_v57  ;;  %v5351_v62 = vpop.f32.mrf.mxu1  ;;  %v8594_v8 = vld [vmem:[#allocation2 + $0xc6c] ss:$16 sps:$4 sm:$0xff]   ;;  %v8604_v49 = vld [vmem:[#allocation2 + $0xc28] ss:$16 sps:$4 sm:$0xff]  }
 0x2ac   :  { %5660 = vmatpush1.bf16.msra.mxu1 %v8577_v60  ;;  %5618 = vmatprep.subr.bf16.mxu0 %v8582_v12  ;;  %v8607_v40 = vld [vmem:[#allocation2 + $0xe28] ss:$16 sps:$4 sm:$0xff]   ;;  %v8615_v11 = vld [vmem:[#allocation2 + $0xe0c] ss:$16 sps:$4 sm:$0xff]  }
 0x2ad   :  { %5661 = vmatprep.subr.bf16.mxu1 %v8585_v13  ;;  %v9562_v37 = vadd.f32 %v5351_v62, %v5309_v59  ;;  %v8610_v57 = vld [vmem:[#allocation2 + $0xc08] ss:$16 sps:$4 sm:$0xff]   ;;  %v8618_v12 = vld [vmem:[#allocation2 + $0xdec] ss:$16 sps:$4 sm:$0xff]  }
 0x2ae   :  { %v8613_v60 = vld [vmem:[#allocation2 + $0xe08] ss:$16 sps:$4 sm:$0xff]   ;;  %v8621_v13 = vld [vmem:[#allocation2 + $0xfec] ss:$16 sps:$4 sm:$0xff]  }
 0x2af   :  { %v5872_v17 = vpack.c.bf16 %v9562_v37, %v9557_v20  ;;  %5619 = vmatpush1.bf16.msra.mxu0 %v8580_v24  ;;  %v8616_v58 = vld [vmem:[#allocation2 + $0xde8] ss:$16 sps:$4 sm:$0xff]   ;;  %v8624_v24 = vld [vmem:[#allocation2 + $0xdcc] ss:$16 sps:$4 sm:$0xff]  }
 0x2b0   :  { %5662 = vmatpush1.bf16.msra.mxu1 %v8583_v14  ;;  %5620 = vmatprep.subr.bf16.mxu0 %v8588_v45  ;;  %v8619_v59 = vld [vmem:[#allocation2 + $0xfe8] ss:$16 sps:$4 sm:$0xff]   ;;  %v8627_v14 = vld [vmem:[#allocation2 + $0xfcc] ss:$16 sps:$4 sm:$0xff]  }
 0x2b1   :  { %5663 = vmatprep.subr.bf16.mxu1 %v8591_v47  ;;  %v8622_v62 = vld [vmem:[#allocation2 + $0xdc8] ss:$16 sps:$4 sm:$0xff]   ;;  %v8630_v47 = vld [vmem:[#allocation2 + $0xdac] ss:$16 sps:$4 sm:$0xff]  }
 0x2b2   :  { %v8625_v45 = vld [vmem:[#allocation2 + $0xfc8] ss:$16 sps:$4 sm:$0xff]  }
 0x2b3   :  { %5621 = vmatpush1.bf16.msra.mxu0 %v8586_v0  ;;  %v8633_v0 = vld [vmem:[#allocation2 + $0xfac] ss:$16 sps:$4 sm:$0xff]  }
 0x2b4   :  { %5664 = vmatpush1.bf16.msra.mxu1 %v8589_v1  ;;  %5622 = vmatprep.subr.bf16.mxu0 %v8594_v8  ;;  %v8628_v1 = vld [vmem:[#allocation2 + $0xda8] ss:$16 sps:$4 sm:$0xff]  }
 0x2b5   :  { %5665 = vmatprep.subr.bf16.mxu1 %v8597_v18  ;;  %v8631_v8 = vld [vmem:[#allocation2 + $0xfa8] ss:$16 sps:$4 sm:$0xff]   ;;  %v8636_v18 = vld [vmem:[#allocation2 + $0xd8c] ss:$16 sps:$4 sm:$0xff]  }
 0x2b7   :  { %5623 = vmatpush1.bf16.msra.mxu0 %v8592_v23  ;;  %v8639_v23 = vld [vmem:[#allocation2 + $0xf8c] ss:$16 sps:$4 sm:$0xff]  }
 0x2b8   :  { %5666 = vmatpush1.bf16.msra.mxu1 %v8595_v61  ;;  %5624 = vmatprep.subr.bf16.mxu0 %v8600_v38  ;;  %v8634_v61 = vld [vmem:[#allocation2 + $0xd88] ss:$16 sps:$4 sm:$0xff]  }
 0x2b9   :  { %5667 = vmatprep.subr.bf16.mxu1 %v8603_v39  ;;  %v8637_v38 = vld [vmem:[#allocation2 + $0xf88] ss:$16 sps:$4 sm:$0xff]   ;;  %v8642_v39 = vld [vmem:[#allocation2 + $0xd6c] ss:$16 sps:$4 sm:$0xff]  }
 0x2bb   :  { %5625 = vmatpush1.bf16.msra.mxu0 %v8598_v28  ;;  %v8645_v28 = vld [vmem:[#allocation2 + $0xf6c] ss:$16 sps:$4 sm:$0xff]  }
 0x2bc   :  { %5668 = vmatpush1.bf16.msra.mxu1 %v8601_v29  ;;  %5626 = vmatprep.subr.bf16.mxu0 %v8606_v63  ;;  %v8640_v29 = vld [vmem:[#allocation2 + $0xd68] ss:$16 sps:$4 sm:$0xff]  }
 0x2bd   :  { %5669 = vmatprep.subr.bf16.mxu1 %v8609_v41  ;;  %v8643_v63 = vld [vmem:[#allocation2 + $0xf68] ss:$16 sps:$4 sm:$0xff]   ;;  %v8648_v41 = vld [vmem:[#allocation2 + $0xd4c] ss:$16 sps:$4 sm:$0xff]  }
 0x2bf   :  { %5627 = vmatpush1.bf16.msra.mxu0 %v8604_v49  ;;  %v8651_v49 = vld [vmem:[#allocation2 + $0xf4c] ss:$16 sps:$4 sm:$0xff]  }
 0x2c0   :  { %5670 = vmatpush1.bf16.msra.mxu1 %v8607_v40  ;;  %5628 = vmatprep.subr.bf16.mxu0 %v8612_v46  ;;  %v8646_v40 = vld [vmem:[#allocation2 + $0xd48] ss:$16 sps:$4 sm:$0xff]  }
 0x2c1   :  { %5671 = vmatprep.subr.bf16.mxu1 %v8615_v11  ;;  %v8649_v46 = vld [vmem:[#allocation2 + $0xf48] ss:$16 sps:$4 sm:$0xff]   ;;  %v8654_v11 = vld [vmem:[#allocation2 + $0xd2c] ss:$16 sps:$4 sm:$0xff]  }
 0x2c3   :  { %5629 = vmatpush1.bf16.msra.mxu0 %v8610_v57  ;;  %v8657_v57 = vld [vmem:[#allocation2 + $0xf2c] ss:$16 sps:$4 sm:$0xff]  }
 0x2c4   :  { %5672 = vmatpush1.bf16.msra.mxu1 %v8613_v60  ;;  %5630 = vmatprep.subr.bf16.mxu0 %v8618_v12  ;;  %v8652_v60 = vld [vmem:[#allocation2 + $0xd28] ss:$16 sps:$4 sm:$0xff]  }
 0x2c5   :  { %5673 = vmatprep.subr.bf16.mxu1 %v8621_v13  ;;  %v8655_v12 = vld [vmem:[#allocation2 + $0xf28] ss:$16 sps:$4 sm:$0xff]   ;;  %v8660_v13 = vld [vmem:[#allocation2 + $0xd0c] ss:$16 sps:$4 sm:$0xff]  }
 0x2c7   :  { %5631 = vmatpush2.bf16.msra.mxu0 %v8616_v58  ;;  %v8663_v58 = vld [vmem:[#allocation2 + $0xf0c] ss:$16 sps:$4 sm:$0xff]  }
 0x2c8   :  { %5674 = vmatpush2.bf16.msra.mxu1 %v8619_v59  ;;  %5632 = vmatprep.subr.bf16.mxu0 %v8624_v24  ;;  %v8658_v59 = vld [vmem:[#allocation2 + $0xd08] ss:$16 sps:$4 sm:$0xff]  }
 0x2c9   :  { %5675 = vmatprep.subr.bf16.mxu1 %v8627_v14  ;;  %v8661_v24 = vld [vmem:[#allocation2 + $0xf08] ss:$16 sps:$4 sm:$0xff]   ;;  %v8666_v14 = vld [vmem:[#allocation2 + $0x10ec] ss:$16 sps:$4 sm:$0xff]  }
 0x2cb   :  { %5633 = vmatpush2.bf16.msra.mxu0 %v8622_v62  ;;  %v8669_v62 = vld [vmem:[#allocation2 + $0x12ec] ss:$16 sps:$4 sm:$0xff]  }
 0x2cc   :  { %5676 = vmatpush2.bf16.msra.mxu1 %v8625_v45  ;;  %5634 = vmatprep.subr.bf16.mxu0 %v8630_v47  ;;  %v8664_v45 = vld [vmem:[#allocation2 + $0x10e8] ss:$16 sps:$4 sm:$0xff]  }
 0x2cd   :  { %5677 = vmatprep.subr.bf16.mxu1 %v8633_v0  ;;  %v8667_v47 = vld [vmem:[#allocation2 + $0x12e8] ss:$16 sps:$4 sm:$0xff]   ;;  %v8672_v0 = vld [vmem:[#allocation2 + $0x10cc] ss:$16 sps:$4 sm:$0xff]  }
 0x2cf   :  { %5635 = vmatpush2.bf16.msra.mxu0 %v8628_v1  ;;  %v8675_v1 = vld [vmem:[#allocation2 + $0x12cc] ss:$16 sps:$4 sm:$0xff]  }
 0x2d0   :  { %5678 = vmatpush2.bf16.msra.mxu1 %v8631_v8  ;;  %5636 = vmatprep.subr.bf16.mxu0 %v8636_v18  ;;  %v8670_v8 = vld [vmem:[#allocation2 + $0x10c8] ss:$16 sps:$4 sm:$0xff]  }
 0x2d1   :  { %5679 = vmatprep.subr.bf16.mxu1 %v8639_v23  ;;  %v8673_v18 = vld [vmem:[#allocation2 + $0x12c8] ss:$16 sps:$4 sm:$0xff]   ;;  %v8678_v23 = vld [vmem:[#allocation2 + $0x10ac] ss:$16 sps:$4 sm:$0xff]  }
 0x2d3   :  { %5637 = vmatpush2.bf16.msra.mxu0 %v8634_v61  ;;  %v8681_v61 = vld [vmem:[#allocation2 + $0x12ac] ss:$16 sps:$4 sm:$0xff]  }
 0x2d4   :  { %5680 = vmatpush2.bf16.msra.mxu1 %v8637_v38  ;;  %5638 = vmatprep.subr.bf16.mxu0 %v8642_v39  ;;  %v8676_v38 = vld [vmem:[#allocation2 + $0x10a8] ss:$16 sps:$4 sm:$0xff]  }
 0x2d5   :  { %5681 = vmatprep.subr.bf16.mxu1 %v8645_v28  ;;  %v8679_v39 = vld [vmem:[#allocation2 + $0x12a8] ss:$16 sps:$4 sm:$0xff]  }
 0x2d6   :  { %v8682_v28 = vld [vmem:[#allocation2 + $0x1088] ss:$16 sps:$4 sm:$0xff]  }
 0x2d7   :  { %5639 = vmatpush2.bf16.msra.mxu0 %v8640_v29  ;;  %v8685_v29 = vld [vmem:[#allocation2 + $0x1288] ss:$16 sps:$4 sm:$0xff]  }
 0x2d8   :  { %5682 = vmatpush2.bf16.msra.mxu1 %v8643_v63  ;;  %5640 = vmatprep.subr.bf16.mxu0 %v8648_v41  ;;  %v8690_v63 = vld [vmem:[#allocation2 + $0x106c] ss:$16 sps:$4 sm:$0xff]  }
 0x2d9   :  { %5683 = vmatprep.subr.bf16.mxu1 %v8651_v49  ;;  %v8693_v41 = vld [vmem:[#allocation2 + $0x126c] ss:$16 sps:$4 sm:$0xff]  }
 0x2da   :  { %v8696_v49 = vld [vmem:[#allocation2 + $0x104c] ss:$16 sps:$4 sm:$0xff]  }
 0x2db   :  { %5641 = vmatpush2.bf16.msra.mxu0 %v8646_v40  ;;  %v8699_v40 = vld [vmem:[#allocation2 + $0x124c] ss:$16 sps:$4 sm:$0xff]  }
 0x2dc   :  { %5684 = vmatpush2.bf16.msra.mxu1 %v8649_v46  ;;  %5642 = vmatprep.subr.bf16.mxu0 %v8654_v11  ;;  %v8694_v46 = vld [vmem:[#allocation2 + $0x1048] ss:$16 sps:$4 sm:$0xff]  }
 0x2dd   :  { %5685 = vmatprep.subr.bf16.mxu1 %v8657_v57  ;;  %v8697_v11 = vld [vmem:[#allocation2 + $0x1248] ss:$16 sps:$4 sm:$0xff]   ;;  %v8702_v57 = vld [vmem:[#allocation2 + $0x102c] ss:$16 sps:$4 sm:$0xff]  }
 0x2df   :  { %5643 = vmatpush2.bf16.msra.mxu0 %v8652_v60  ;;  %v8705_v60 = vld [vmem:[#allocation2 + $0x122c] ss:$16 sps:$4 sm:$0xff]  }
 0x2e0   :  { %5686 = vmatpush2.bf16.msra.mxu1 %v8655_v12  ;;  %5644 = vmatprep.subr.bf16.mxu0 %v8660_v13  ;;  %v8700_v12 = vld [vmem:[#allocation2 + $0x1028] ss:$16 sps:$4 sm:$0xff]  }
 0x2e1   :  { %5687 = vmatprep.subr.bf16.mxu1 %v8663_v58  ;;  %v8703_v13 = vld [vmem:[#allocation2 + $0x1228] ss:$16 sps:$4 sm:$0xff]   ;;  %v8708_v58 = vld [vmem:[#allocation2 + $0x100c] ss:$16 sps:$4 sm:$0xff]  }
 0x2e3   :  { %5645 = vmatpush2.bf16.msra.mxu0 %v8658_v59  ;;  %v8711_v59 = vld [vmem:[#allocation2 + $0x120c] ss:$16 sps:$4 sm:$0xff]  }
 0x2e4   :  { %5688 = vmatpush2.bf16.msra.mxu1 %v8661_v24  ;;  %5700 = vmatprep.subr.bf16.mxu0 %v8666_v14  ;;  %v8706_v24 = vld [vmem:[#allocation2 + $0x1008] ss:$16 sps:$4 sm:$0xff]  }
 0x2e5   :  { %5743 = vmatprep.subr.bf16.mxu1 %v8669_v62  ;;  %v8709_v14 = vld [vmem:[#allocation2 + $0x1208] ss:$16 sps:$4 sm:$0xff]   ;;  %v8714_v62 = vld [vmem:[#allocation2 + $0x11ec] ss:$16 sps:$4 sm:$0xff]  }
 0x2e6   :  { %5647 = vmatmul.mubr.bf16.vlgmr.msra.gmra.mxu0 %v9401_v26  ;;  %v8684_v26 = vld [vmem:[#allocation2 + $0x108c] ss:$16 sps:$4 sm:$0xff]  }
 0x2e7   :  { %5690 = vmatmul.mubr.bf16.vlgmr.msra.gmra.mxu1 %v9403_v27  ;;  %5701 = vmatpush1.bf16.msra.mxu0 %v8664_v45  ;;  %v8687_v27 = vld [vmem:[#allocation2 + $0x128c] ss:$16 sps:$4 sm:$0xff]  }
 0x2e8   :  { %5744 = vmatpush1.bf16.msra.mxu1 %v8667_v47  ;;  %5702 = vmatprep.subr.bf16.mxu0 %v8672_v0  ;;  %v8717_v45 = vld [vmem:[#allocation2 + $0x13ec] ss:$16 sps:$4 sm:$0xff]   ;;  %v8712_v47 = vld [vmem:[#allocation2 + $0x11e8] ss:$16 sps:$4 sm:$0xff]  }
 0x2e9   :  { %5745 = vmatprep.subr.bf16.mxu1 %v8675_v1  ;;  %5732 = vmatprep.mubr.bf16.mxu0 %v9410_v35  ;;  %v8688_v35 = vld [vmem:[#allocation2 + $0x1068] ss:$16 sps:$4 sm:$0xff]   ;;  %v8720_v1 = vld [vmem:[#allocation2 + $0x11cc] ss:$16 sps:$4 sm:$0xff]  }
 0x2ea   :  { %5775 = vmatprep.mubr.bf16.mxu1 %v9412_v36  ;;  %v8691_v36 = vld [vmem:[#allocation2 + $0x1268] ss:$16 sps:$4 sm:$0xff]  }
 0x2eb   :  { %5703 = vmatpush1.bf16.msra.mxu0 %v8670_v8  ;;  %v8715_v0 = vld [vmem:[#allocation2 + $0x13e8] ss:$16 sps:$4 sm:$0xff]   ;;  %v8723_v8 = vld [vmem:[#allocation2 + $0x13cc] ss:$16 sps:$4 sm:$0xff]  }
 0x2ec   :  { %5746 = vmatpush1.bf16.msra.mxu1 %v8673_v18  ;;  %5704 = vmatprep.subr.bf16.mxu0 %v8678_v23  ;;  %v8718_v18 = vld [vmem:[#allocation2 + $0x11c8] ss:$16 sps:$4 sm:$0xff]  }
 0x2ed   :  { %5747 = vmatprep.subr.bf16.mxu1 %v8681_v61  ;;  %v8721_v23 = vld [vmem:[#allocation2 + $0x13c8] ss:$16 sps:$4 sm:$0xff]   ;;  %v8726_v61 = vld [vmem:[#allocation2 + $0x11ac] ss:$16 sps:$4 sm:$0xff]  }
 0x2ef   :  { %5705 = vmatpush1.bf16.msra.mxu0 %v8676_v38  ;;  %v8729_v38 = vld [vmem:[#allocation2 + $0x13ac] ss:$16 sps:$4 sm:$0xff]  }
 0x2f0   :  { %5748 = vmatpush1.bf16.msra.mxu1 %v8679_v39  ;;  %5706 = vmatprep.subr.bf16.mxu0 %v8684_v26  ;;  %v8724_v39 = vld [vmem:[#allocation2 + $0x11a8] ss:$16 sps:$4 sm:$0xff]  }
 0x2f1   :  { %5749 = vmatprep.subr.bf16.mxu1 %v8687_v27  ;;  %v8727_v26 = vld [vmem:[#allocation2 + $0x13a8] ss:$16 sps:$4 sm:$0xff]   ;;  %v8732_v27 = vld [vmem:[#allocation2 + $0x118c] ss:$16 sps:$4 sm:$0xff]  }
 0x2f3   :  { %5707 = vmatpush1.bf16.msra.mxu0 %v8682_v28  ;;  %v8735_v28 = vld [vmem:[#allocation2 + $0x138c] ss:$16 sps:$4 sm:$0xff]  }
 0x2f4   :  { %5750 = vmatpush1.bf16.msra.mxu1 %v8685_v29  ;;  %5708 = vmatprep.subr.bf16.mxu0 %v8690_v63  ;;  %v8730_v29 = vld [vmem:[#allocation2 + $0x1188] ss:$16 sps:$4 sm:$0xff]  }
 0x2f5   :  { %5751 = vmatprep.subr.bf16.mxu1 %v8693_v41  ;;  %v8733_v63 = vld [vmem:[#allocation2 + $0x1388] ss:$16 sps:$4 sm:$0xff]   ;;  %v8738_v41 = vld [vmem:[#allocation2 + $0x116c] ss:$16 sps:$4 sm:$0xff]  }
 0x2f7   :  { %5709 = vmatpush1.bf16.msra.mxu0 %v8688_v35  ;;  %v8741_v35 = vld [vmem:[#allocation2 + $0x136c] ss:$16 sps:$4 sm:$0xff]  }
 0x2f8   :  { %5752 = vmatpush1.bf16.msra.mxu1 %v8691_v36  ;;  %5710 = vmatprep.subr.bf16.mxu0 %v8696_v49  ;;  %v8736_v36 = vld [vmem:[#allocation2 + $0x1168] ss:$16 sps:$4 sm:$0xff]  }
 0x2f9   :  { %5753 = vmatprep.subr.bf16.mxu1 %v8699_v40  ;;  %v8739_v49 = vld [vmem:[#allocation2 + $0x1368] ss:$16 sps:$4 sm:$0xff]   ;;  %v8744_v40 = vld [vmem:[#allocation2 + $0x114c] ss:$16 sps:$4 sm:$0xff]  }
 0x2fb   :  { %5711 = vmatpush1.bf16.msra.mxu0 %v8694_v46  ;;  %v8747_v46 = vld [vmem:[#allocation2 + $0x134c] ss:$16 sps:$4 sm:$0xff]  }
 0x2fc   :  { %5754 = vmatpush1.bf16.msra.mxu1 %v8697_v11  ;;  %5712 = vmatprep.subr.bf16.mxu0 %v8702_v57  ;;  %v8742_v11 = vld [vmem:[#allocation2 + $0x1148] ss:$16 sps:$4 sm:$0xff]  }
 0x2fd   :  { %5755 = vmatprep.subr.bf16.mxu1 %v8705_v60  ;;  %v8745_v57 = vld [vmem:[#allocation2 + $0x1348] ss:$16 sps:$4 sm:$0xff]   ;;  %v8750_v60 = vld [vmem:[#allocation2 + $0x112c] ss:$16 sps:$4 sm:$0xff]  }
 0x2ff   :  { %5713 = vmatpush1.bf16.msra.mxu0 %v8700_v12  ;;  %v8753_v12 = vld [vmem:[#allocation2 + $0x132c] ss:$16 sps:$4 sm:$0xff]  }
 0x300   :  { %5756 = vmatpush1.bf16.msra.mxu1 %v8703_v13  ;;  %5714 = vmatprep.subr.bf16.mxu0 %v8708_v58  ;;  %v8748_v13 = vld [vmem:[#allocation2 + $0x1128] ss:$16 sps:$4 sm:$0xff]  }
 0x301   :  { %5757 = vmatprep.subr.bf16.mxu1 %v8711_v59  ;;  %v8751_v58 = vld [vmem:[#allocation2 + $0x1328] ss:$16 sps:$4 sm:$0xff]   ;;  %v8756_v59 = vld [vmem:[#allocation2 + $0x110c] ss:$16 sps:$4 sm:$0xff]  }
 0x303   :  { %5715 = vmatpush1.bf16.msra.mxu0 %v8706_v24  ;;  %v8759_v24 = vld [vmem:[#allocation2 + $0x130c] ss:$16 sps:$4 sm:$0xff]  }
 0x304   :  { %5758 = vmatpush1.bf16.msra.mxu1 %v8709_v14  ;;  %5716 = vmatprep.subr.bf16.mxu0 %v8714_v62  ;;  %v8754_v14 = vld [vmem:[#allocation2 + $0x1108] ss:$16 sps:$4 sm:$0xff]  }
 0x305   :  { %5759 = vmatprep.subr.bf16.mxu1 %v8717_v45  ;;  %v8757_v62 = vld [vmem:[#allocation2 + $0x1308] ss:$16 sps:$4 sm:$0xff]   ;;  %v8762_v45 = vld [vmem:[#allocation2 + $0x14ec] ss:$16 sps:$4 sm:$0xff]  }
 0x307   :  { %5717 = vmatpush2.bf16.msra.mxu0 %v8712_v47  ;;  %v8765_v47 = vld [vmem:[#allocation2 + $0x16ec] ss:$16 sps:$4 sm:$0xff]  }
 0x308   :  { %5760 = vmatpush2.bf16.msra.mxu1 %v8715_v0  ;;  %5718 = vmatprep.subr.bf16.mxu0 %v8720_v1  ;;  %v8760_v0 = vld [vmem:[#allocation2 + $0x14e8] ss:$16 sps:$4 sm:$0xff]  }
 0x309   :  { %5761 = vmatprep.subr.bf16.mxu1 %v8723_v8  ;;  %v8763_v1 = vld [vmem:[#allocation2 + $0x16e8] ss:$16 sps:$4 sm:$0xff]   ;;  %v8768_v8 = vld [vmem:[#allocation2 + $0x14cc] ss:$16 sps:$4 sm:$0xff]  }
 0x30b   :  { %5719 = vmatpush2.bf16.msra.mxu0 %v8718_v18  ;;  %v8771_v18 = vld [vmem:[#allocation2 + $0x16cc] ss:$16 sps:$4 sm:$0xff]  }
 0x30c   :  { %5762 = vmatpush2.bf16.msra.mxu1 %v8721_v23  ;;  %5720 = vmatprep.subr.bf16.mxu0 %v8726_v61  ;;  %v8766_v23 = vld [vmem:[#allocation2 + $0x14c8] ss:$16 sps:$4 sm:$0xff]  }
 0x30d   :  { %5763 = vmatprep.subr.bf16.mxu1 %v8729_v38  ;;  %v8769_v61 = vld [vmem:[#allocation2 + $0x16c8] ss:$16 sps:$4 sm:$0xff]   ;;  %v8774_v38 = vld [vmem:[#allocation2 + $0x14ac] ss:$16 sps:$4 sm:$0xff]  }
 0x30f   :  { %5721 = vmatpush2.bf16.msra.mxu0 %v8724_v39  ;;  %v8777_v39 = vld [vmem:[#allocation2 + $0x16ac] ss:$16 sps:$4 sm:$0xff]  }
 0x310   :  { %5764 = vmatpush2.bf16.msra.mxu1 %v8727_v26  ;;  %5722 = vmatprep.subr.bf16.mxu0 %v8732_v27  ;;  %v8772_v26 = vld [vmem:[#allocation2 + $0x14a8] ss:$16 sps:$4 sm:$0xff]  }
 0x311   :  { %5765 = vmatprep.subr.bf16.mxu1 %v8735_v28  ;;  %v8775_v27 = vld [vmem:[#allocation2 + $0x16a8] ss:$16 sps:$4 sm:$0xff]  }
 0x312   :  { %v8778_v28 = vld [vmem:[#allocation2 + $0x1488] ss:$16 sps:$4 sm:$0xff]  }
 0x313   :  { %5723 = vmatpush2.bf16.msra.mxu0 %v8730_v29  ;;  %v8781_v29 = vld [vmem:[#allocation2 + $0x1688] ss:$16 sps:$4 sm:$0xff]  }
 0x314   :  { %5766 = vmatpush2.bf16.msra.mxu1 %v8733_v63  ;;  %5724 = vmatprep.subr.bf16.mxu0 %v8738_v41  ;;  %v8786_v63 = vld [vmem:[#allocation2 + $0x146c] ss:$16 sps:$4 sm:$0xff]  }
 0x315   :  { %5767 = vmatprep.subr.bf16.mxu1 %v8741_v35  ;;  %v8789_v41 = vld [vmem:[#allocation2 + $0x166c] ss:$16 sps:$4 sm:$0xff]  }
 0x316   :  { %v8792_v35 = vld [vmem:[#allocation2 + $0x144c] ss:$16 sps:$4 sm:$0xff]  }
 0x317   :  { %5725 = vmatpush2.bf16.msra.mxu0 %v8736_v36  ;;  %v8795_v36 = vld [vmem:[#allocation2 + $0x164c] ss:$16 sps:$4 sm:$0xff]  }
 0x318   :  { %5768 = vmatpush2.bf16.msra.mxu1 %v8739_v49  ;;  %5726 = vmatprep.subr.bf16.mxu0 %v8744_v40  ;;  %v8790_v49 = vld [vmem:[#allocation2 + $0x1448] ss:$16 sps:$4 sm:$0xff]  }
 0x319   :  { %5769 = vmatprep.subr.bf16.mxu1 %v8747_v46  ;;  %v8793_v40 = vld [vmem:[#allocation2 + $0x1648] ss:$16 sps:$4 sm:$0xff]   ;;  %v8798_v46 = vld [vmem:[#allocation2 + $0x142c] ss:$16 sps:$4 sm:$0xff]  }
 0x31b   :  { %5727 = vmatpush2.bf16.msra.mxu0 %v8742_v11  ;;  %v8801_v11 = vld [vmem:[#allocation2 + $0x162c] ss:$16 sps:$4 sm:$0xff]  }
 0x31c   :  { %5770 = vmatpush2.bf16.msra.mxu1 %v8745_v57  ;;  %5728 = vmatprep.subr.bf16.mxu0 %v8750_v60  ;;  %v986_v57 = vsub.s32 1, %v9377_v7  ;;  %v8796_v60 = vld [vmem:[#allocation2 + $0x1428] ss:$16 sps:$4 sm:$0xff]  }
 0x31d   :  { %5771 = vmatprep.subr.bf16.mxu1 %v8753_v12  ;;  %v8799_v12 = vld [vmem:[#allocation2 + $0x1628] ss:$16 sps:$4 sm:$0xff]  }
 0x31f   :  { %5729 = vmatpush2.bf16.msra.mxu0 %v8748_v13  ;;  %v8804_v13 = vld [vmem:[#allocation2 + $0x140c] ss:$16 sps:$4 sm:$0xff]  }
 0x320   :  { %5772 = vmatpush2.bf16.msra.mxu1 %v8751_v58  ;;  %5730 = vmatprep.subr.bf16.mxu0 %v8756_v59  ;;  %v8807_v58 = vld [vmem:[#allocation2 + $0x160c] ss:$16 sps:$4 sm:$0xff]   ;;  %v9575_v59 = vld [vmem:[#allocation4] sm:$0xf] }
 0x321   :  { %5773 = vmatprep.subr.bf16.mxu1 %v8759_v24  ;;  %v987_v24 = vrot.slane %v9575_v59, %v986_v57 }
 0x323   :  { %5731 = vmatpush2.bf16.msra.mxu0 %v8754_v14  ;;  %v4881_v14 = vadd.f32 %v9454_v33, %v987_v24  ;;  %v8819_v33 = vld [vmem:[#allocation2 + $0x17cc] ss:$16 sps:$4 sm:$0xff]  }
 0x324   :  { %5774 = vmatpush2.bf16.msra.mxu1 %v8757_v62  ;;  %5786 = vmatprep.subr.bf16.mxu0 %v8762_v45  ;;  %v8802_v62 = vld [vmem:[#allocation2 + $0x1408] ss:$16 sps:$4 sm:$0xff]  }
 0x325   :  { %5829 = vmatprep.subr.bf16.mxu1 %v8765_v47  ;;  %v8805_v45 = vld [vmem:[#allocation2 + $0x1608] ss:$16 sps:$4 sm:$0xff]   ;;  %v8810_v47 = vld [vmem:[#allocation2 + $0x15ec] ss:$16 sps:$4 sm:$0xff]  }
 0x326   :  { %5733 = vmatmul.mubr.bf16.vlgmr.msra.gmra.mxu0 %v9450_v31  ;;  %v8780_v31 = vld [vmem:[#allocation2 + $0x148c] ss:$16 sps:$4 sm:$0xff]  }
 0x327   :  { %5776 = vmatmul.mubr.bf16.vlgmr.msra.gmra.mxu1 %v9452_v32  ;;  %5787 = vmatpush1.bf16.msra.mxu0 %v8760_v0  ;;  %v8783_v32 = vld [vmem:[#allocation2 + $0x168c] ss:$16 sps:$4 sm:$0xff]  }
 0x328   :  { %5830 = vmatpush1.bf16.msra.mxu1 %v8763_v1  ;;  %5788 = vmatprep.subr.bf16.mxu0 %v8768_v8  ;;  %v8813_v0 = vld [vmem:[#allocation2 + $0x17ec] ss:$16 sps:$4 sm:$0xff]   ;;  %v4877_v1 = vadd.f32 %v9416_v43, %v987_v24  ;;  %v4924_v8 = vadd.f32 %v9456_v34, %v4881_v14  ;;  %v8817_v43 = vld [vmem:[#allocation2 + $0x17c8] ss:$16 sps:$4 sm:$0xff]   ;;  %v5310_v24 = vpop.f32.mrf.mxu0 }
 0x329   :  { %5831 = vmatprep.subr.bf16.mxu1 %v8771_v18  ;;  %5818 = vmatprep.mubr.bf16.mxu0 %v9458_v42  ;;  %v8784_v42 = vld [vmem:[#allocation2 + $0x1468] ss:$16 sps:$4 sm:$0xff]   ;;  %v8822_v34 = vld [vmem:[#allocation2 + $0x15ac] ss:$16 sps:$4 sm:$0xff]  }
 0x32a   :  { %5861 = vmatprep.mubr.bf16.mxu1 %v9460_v48  ;;  %v8787_v48 = vld [vmem:[#allocation2 + $0x1668] ss:$16 sps:$4 sm:$0xff]  }
 0x32b   :  { %5789 = vmatpush1.bf16.msra.mxu0 %v8766_v23  ;;  %v8808_v18 = vld [vmem:[#allocation2 + $0x15e8] ss:$16 sps:$4 sm:$0xff]  }
 0x32c   :  { %5832 = vmatpush1.bf16.msra.mxu1 %v8769_v61  ;;  %5790 = vmatprep.subr.bf16.mxu0 %v8774_v38  ;;  %v8811_v23 = vld [vmem:[#allocation2 + $0x17e8] ss:$16 sps:$4 sm:$0xff]   ;;  %v8816_v61 = vld [vmem:[#allocation2 + $0x15cc] ss:$16 sps:$4 sm:$0xff]   ;;  %v4920_v38 = vadd.f32 %v9418_v44, %v4877_v1 }
 0x32d   :  { %5833 = vmatprep.subr.bf16.mxu1 %v8777_v39  ;;  %v4967_v39 = vadd.f32 %v9492_v50, %v4924_v8  ;;  %v8820_v44 = vld [vmem:[#allocation2 + $0x15a8] ss:$16 sps:$4 sm:$0xff]   ;;  %v5353_v8 = vpop.f32.mrf.mxu1 }
 0x32e   :  { %v8823_v50 = vld [vmem:[#allocation2 + $0x17a8] ss:$16 sps:$4 sm:$0xff]  }
 0x32f   :  { %5791 = vmatpush1.bf16.msra.mxu0 %v8772_v26  ;;  %v4963_v26 = vadd.f32 %v9465_v55, %v4920_v38  ;;  %v8828_v55 = vld [vmem:[#allocation2 + $0x158c] ss:$16 sps:$4 sm:$0xff]   ;;  %v8850_v1 = vld [vmem:[#allocation2 + $0x1508] ss:$16 sps:$4 sm:$0xff]  }
 0x330   :  { %5834 = vmatpush1.bf16.msra.mxu1 %v8775_v27  ;;  %5792 = vmatprep.subr.bf16.mxu0 %v8780_v31  ;;  %v8814_v27 = vld [vmem:[#allocation2 + $0x15c8] ss:$16 sps:$4 sm:$0xff]   ;;  %v8825_v31 = vld [vmem:[#allocation2 + $0x17ac] ss:$16 sps:$4 sm:$0xff]  }
 0x331   :  { %5835 = vmatprep.subr.bf16.mxu1 %v8783_v32  ;;  %v5010_v32 = vadd.f32 %v9494_v4, %v4967_v39  ;;  %v8829_v4 = vld [vmem:[#allocation2 + $0x1788] ss:$16 sps:$4 sm:$0xff]   ;;  %v8862_v39 = vld [vmem:[#allocation6 + $0x50] ss:$8 sps:$4 sm:$0xff]  }
 0x332   :  { %v8864_v38 = vld [vmem:[#allocation6 + $0x54] ss:$8 sps:$4 sm:$0xff]  }
 0x333   :  { %5793 = vmatpush1.bf16.msra.mxu0 %v8778_v28  ;;  %v5006_v28 = vadd.f32 %v9467_v56, %v4963_v26  ;;  %v8834_v56 = vld [vmem:[#allocation2 + $0x156c] ss:$16 sps:$4 sm:$0xff]   ;;  %v8867_v26 = vld [vmem:[#allocation6 + $0x44] ss:$8 sps:$4 sm:$0xff]  }
 0x334   :  { %5836 = vmatpush1.bf16.msra.mxu1 %v8781_v29  ;;  %5794 = vmatprep.subr.bf16.mxu0 %v8786_v63  ;;  %v5053_v29 = vadd.f32 %v9510_v25, %v5010_v32  ;;  %v8831_v63 = vld [vmem:[#allocation2 + $0x178c] ss:$16 sps:$4 sm:$0xff]   ;;  %v8912_v32 = vld [vmem:[#allocation6 + $0x154] ss:$8 sps:$4 sm:$0xff]  }
 0x335   :  { %5837 = vmatprep.subr.bf16.mxu1 %v8789_v41  ;;  %v5049_v41 = vadd.f32 %v9499_v15, %v5006_v28  ;;  %v8837_v25 = vld [vmem:[#allocation2 + $0x176c] ss:$16 sps:$4 sm:$0xff]   ;;  %v8835_v15 = vld [vmem:[#allocation2 + $0x1768] ss:$16 sps:$4 sm:$0xff]  }
 0x336   :  { %v8873_v28 = vld [vmem:[#allocation6 + $0x24] ss:$8 sps:$4 sm:$0xff]  }
 0x337   :  { %5795 = vmatpush1.bf16.msra.mxu0 %v8784_v42  ;;  %v5096_v42 = vadd.f32 %v9512_v30, %v5053_v29  ;;  %v8840_v30 = vld [vmem:[#allocation2 + $0x154c] ss:$16 sps:$4 sm:$0xff]  }
 0x338   :  { %5838 = vmatpush1.bf16.msra.mxu1 %v8787_v48  ;;  %5796 = vmatprep.subr.bf16.mxu0 %v8792_v35  ;;  %v8826_v48 = vld [vmem:[#allocation2 + $0x1588] ss:$16 sps:$4 sm:$0xff]   ;;  %v5092_v35 = vadd.f32 %v9501_v16, %v5049_v41  ;;  %v8910_v29 = vld [vmem:[#allocation6 + $0x150] ss:$8 sps:$4 sm:$0xff]  }
 0x339   :  { %5839 = vmatprep.subr.bf16.mxu1 %v8795_v36  ;;  %v5139_v36 = vadd.f32 %v9528_v9, %v5096_v42  ;;  %v8838_v16 = vld [vmem:[#allocation2 + $0x1548] ss:$16 sps:$4 sm:$0xff]   ;;  %v8874_v41 = vld [vmem:[#allocation6 + $0x10] ss:$8 sps:$4 sm:$0xff]  }
 0x33a   :  { %v8841_v9 = vld [vmem:[#allocation2 + $0x1748] ss:$16 sps:$4 sm:$0xff]  }
 0x33b   :  { %5797 = vmatpush1.bf16.msra.mxu0 %v8790_v49  ;;  %v5135_v49 = vadd.f32 %v9517_v51, %v5092_v35  ;;  %v8846_v51 = vld [vmem:[#allocation2 + $0x152c] ss:$16 sps:$4 sm:$0xff]   ;;  %v8918_v42 = vld [vmem:[#allocation6 + $0x134] ss:$8 sps:$4 sm:$0xff]  }
 0x33c   :  { %5840 = vmatpush1.bf16.msra.mxu1 %v8793_v40  ;;  %5798 = vmatprep.subr.bf16.mxu0 %v8798_v46  ;;  %v8832_v40 = vld [vmem:[#allocation2 + $0x1568] ss:$16 sps:$4 sm:$0xff]   ;;  %v8843_v46 = vld [vmem:[#allocation2 + $0x174c] ss:$16 sps:$4 sm:$0xff]  }
 0x33d   :  { %5841 = vmatprep.subr.bf16.mxu1 %v8801_v11  ;;  %v5182_v11 = vadd.f32 %v9530_v10, %v5139_v36  ;;  %v8844_v10 = vld [vmem:[#allocation2 + $0x1528] ss:$16 sps:$4 sm:$0xff]   ;;  %v8919_v36 = vld [vmem:[#allocation6 + $0x120] ss:$8 sps:$4 sm:$0xff]  }
 0x33e   :  { %v8882_v35 = vld [vmem:[#allocation6 + $0xf4] ss:$8 sps:$4 sm:$0xff]  }
 0x33f   :  { %5799 = vmatpush1.bf16.msra.mxu0 %v8796_v60  ;;  %v5178_v60 = vadd.f32 %v9519_v52, %v5135_v49  ;;  %v8852_v52 = vld [vmem:[#allocation2 + $0x150c] ss:$16 sps:$4 sm:$0xff]  }
 0x340   :  { %5842 = vmatpush1.bf16.msra.mxu1 %v8799_v12  ;;  %5800 = vmatprep.subr.bf16.mxu0 %v8804_v13  ;;  %v5225_v12 = vadd.f32 %v9546_v53, %v5182_v11  ;;  %v8849_v13 = vld [vmem:[#allocation2 + $0x172c] ss:$16 sps:$4 sm:$0xff]   ;;  %v8927_v11 = vld [vmem:[#allocation6 + $0x104] ss:$8 sps:$4 sm:$0xff]  }
 0x341   :  { %5843 = vmatprep.subr.bf16.mxu1 %v8807_v58  ;;  %v5221_v58 = vadd.f32 %v9535_v21, %v5178_v60  ;;  %v8855_v53 = vld [vmem:[#allocation2 + $0x170c] ss:$16 sps:$4 sm:$0xff]   ;;  %v8853_v21 = vld [vmem:[#allocation2 + $0x1708] ss:$16 sps:$4 sm:$0xff]  }
 0x342   :  { %v5268_v14 = vadd.f32 %v9548_v54, %v5225_v12  ;;  %v8858_v54 = vld [vmem:[#allocation6 + $0x74] ss:$8 sps:$4 sm:$0xff]   ;;  %v8880_v49 = vld [vmem:[#allocation6 + $0xf0] ss:$8 sps:$4 sm:$0xff]   ;;  %v8925_v12 = vld [vmem:[#allocation6 + $0x100] ss:$8 sps:$4 sm:$0xff]  }
 0x343   :  { %5801 = vmatpush1.bf16.msra.mxu0 %v8802_v62  ;;  %v8847_v62 = vld [vmem:[#allocation2 + $0x1728] ss:$16 sps:$4 sm:$0xff]  }
 0x344   :  { %5844 = vmatpush1.bf16.msra.mxu1 %v8805_v45  ;;  %5802 = vmatprep.subr.bf16.mxu0 %v8810_v47  ;;  %v5264_v45 = vadd.f32 %v9537_v22, %v5221_v58  ;;  %v5311_v47 = vadd.f32 %v5310_v24, %v5268_v14  ;;  %v8888_v60 = vld [vmem:[#allocation6 + $0xd4] ss:$8 sps:$4 sm:$0xff]   ;;  %v8889_v58 = vld [vmem:[#allocation6 + $0xc0] ss:$8 sps:$4 sm:$0xff]   ;;  %v8933_v24 = vld [vmem:[#allocation6 + $0x1e4] ss:$8 sps:$4 sm:$0xff]  }
 0x345   :  { %5845 = vmatprep.subr.bf16.mxu1 %v8813_v0  ;;  %v8894_v14 = vld [vmem:[#allocation6 + $0xb4] ss:$8 sps:$4 sm:$0xff]  }
 0x346   :  { %v5307_v0 = vadd.f32 %v9553_v5, %v5264_v45  ;;  %v8859_v5 = vld [vmem:[#allocation6 + $0x60] ss:$8 sps:$4 sm:$0xff]   ;;  %v8934_v45 = vld [vmem:[#allocation6 + $0x1d0] ss:$8 sps:$4 sm:$0xff]  }
 0x347   :  { %5803 = vmatpush2.bf16.msra.mxu0 %v8808_v18  ;;  %v5354_v18 = vadd.f32 %v5353_v8, %v5311_v47  ;;  %v8895_v47 = vld [vmem:[#allocation6 + $0xa0] ss:$8 sps:$4 sm:$0xff]   ;;  %v8898_v8 = vld [vmem:[#allocation6 + $0x90] ss:$8 sps:$4 sm:$0xff]  }
 0x348   :  { %5846 = vmatpush2.bf16.msra.mxu1 %v8811_v23  ;;  %5804 = vmatprep.subr.bf16.mxu0 %v8816_v61  ;;  %v5350_v23 = vadd.f32 %v9555_v6, %v5307_v0  ;;  %v8856_v61 = vld [vmem:[#allocation6 + $0x70] ss:$8 sps:$4 sm:$0xff]   ;;  %v8865_v6 = vld [vmem:[#allocation6 + $0x40] ss:$8 sps:$4 sm:$0xff]   ;;  %v8939_v0 = vld [vmem:[#allocation6 + $0x1c4] ss:$8 sps:$4 sm:$0xff]  }
 0x349   :  { %5847 = vmatprep.subr.bf16.mxu1 %v8819_v33  ;;  %v8861_v33 = vld [vmem:[#allocation6 + $0x64] ss:$8 sps:$4 sm:$0xff]  }
 0x34a   :  { %v5873_v22 = vpack.c.bf16 %v5354_v18, %v5350_v23  ;;  %v8903_v18 = vld [vmem:[#allocation6 + $0x84] ss:$8 sps:$4 sm:$0xff]   ;;  %v8940_v23 = vld [vmem:[#allocation6 + $0x1b0] ss:$8 sps:$4 sm:$0xff]  }
 0x34b   :  { %5805 = vmatpush2.bf16.msra.mxu0 %v8814_v27  ;;  %v8904_v27 = vld [vmem:[#allocation6 + $0x170] ss:$8 sps:$4 sm:$0xff]  }
 0x34c   :  { %5848 = vmatpush2.bf16.msra.mxu1 %v8817_v43  ;;  %5806 = vmatprep.subr.bf16.mxu0 %v8822_v34  ;;  %v8906_v43 = vld [vmem:[#allocation6 + $0x174] ss:$8 sps:$4 sm:$0xff]  }
 0x34d   :  { %5849 = vmatprep.subr.bf16.mxu1 %v8825_v31  ;;  %v8870_v34 = vld [vmem:[#allocation6 + $0x34] ss:$8 sps:$4 sm:$0xff]   ;;  %v8909_v31 = vld [vmem:[#allocation6 + $0x164] ss:$8 sps:$4 sm:$0xff]  }
 0x34f   :  { %5807 = vmatpush2.bf16.msra.mxu0 %v8820_v44  ;;  %v8871_v44 = vld [vmem:[#allocation6 + $0x20] ss:$8 sps:$4 sm:$0xff]  }
 0x350   :  { %5850 = vmatpush2.bf16.msra.mxu1 %v8823_v50  ;;  %5808 = vmatprep.subr.bf16.mxu0 %v8828_v55  ;;  %v8915_v50 = vld [vmem:[#allocation6 + $0x144] ss:$8 sps:$4 sm:$0xff]   ;;  %v8876_v55 = vld [vmem:[#allocation6 + $0x14] ss:$8 sps:$4 sm:$0xff]  }
 0x351   :  { %5851 = vmatprep.subr.bf16.mxu1 %v8831_v63  ;;  %v8913_v63 = vld [vmem:[#allocation6 + $0x140] ss:$8 sps:$4 sm:$0xff]  }
 0x353   :  { %5809 = vmatpush2.bf16.msra.mxu0 %v8826_v48  ;;  %v8879_v48 = vld [vmem:[#allocation6 + $0x4] ss:$8 sps:$4 sm:$0xff]  }
 0x354   :  { %5852 = vmatpush2.bf16.msra.mxu1 %v8829_v4  ;;  %5810 = vmatprep.subr.bf16.mxu0 %v8834_v56  ;;  %v8916_v4 = vld [vmem:[#allocation6 + $0x130] ss:$8 sps:$4 sm:$0xff]   ;;  %v8877_v56 = vld [vmem:[#allocation6] ss:$8 sps:$4 sm:$0xff]  }
 0x355   :  { %5853 = vmatprep.subr.bf16.mxu1 %v8837_v25  ;;  %v8921_v25 = vld [vmem:[#allocation6 + $0x124] ss:$8 sps:$4 sm:$0xff]  }
 0x357   :  { %5811 = vmatpush2.bf16.msra.mxu0 %v8832_v40  ;;  %v8924_v40 = vld [vmem:[#allocation6 + $0x114] ss:$8 sps:$4 sm:$0xff]  }
 0x358   :  { %5854 = vmatpush2.bf16.msra.mxu1 %v8835_v15  ;;  %5812 = vmatprep.subr.bf16.mxu0 %v8840_v30  ;;  %v8885_v15 = vld [vmem:[#allocation6 + $0xe4] ss:$8 sps:$4 sm:$0xff]   ;;  %v8922_v30 = vld [vmem:[#allocation6 + $0x110] ss:$8 sps:$4 sm:$0xff]  }
 0x359   :  { %5855 = vmatprep.subr.bf16.mxu1 %v8843_v46  ;;  %v8883_v46 = vld [vmem:[#allocation6 + $0xe0] ss:$8 sps:$4 sm:$0xff]  }
 0x35b   :  { %5813 = vmatpush2.bf16.msra.mxu0 %v8838_v16  ;;  %v8886_v16 = vld [vmem:[#allocation6 + $0xd0] ss:$8 sps:$4 sm:$0xff]  }
 0x35c   :  { %5856 = vmatpush2.bf16.msra.mxu1 %v8841_v9  ;;  %5814 = vmatprep.subr.bf16.mxu0 %v8846_v51  ;;  %v8930_v9 = vld [vmem:[#allocation6 + $0x1f4] ss:$8 sps:$4 sm:$0xff]   ;;  %v8891_v51 = vld [vmem:[#allocation6 + $0xc4] ss:$8 sps:$4 sm:$0xff]  }
 0x35d   :  { %5857 = vmatprep.subr.bf16.mxu1 %v8849_v13  ;;  %v8928_v13 = vld [vmem:[#allocation6 + $0x1f0] ss:$8 sps:$4 sm:$0xff]  }
 0x35f   :  { %5815 = vmatpush2.bf16.msra.mxu0 %v8844_v10  ;;  %v8931_v10 = vld [vmem:[#allocation6 + $0x1e0] ss:$8 sps:$4 sm:$0xff]  }
 0x360   :  { %5858 = vmatpush2.bf16.msra.mxu1 %v8847_v62  ;;  %5816 = vmatprep.subr.bf16.mxu0 %v8852_v52  ;;  %v8892_v62 = vld [vmem:[#allocation6 + $0xb0] ss:$8 sps:$4 sm:$0xff]   ;;  %v8936_v52 = vld [vmem:[#allocation6 + $0x1d4] ss:$8 sps:$4 sm:$0xff]  }
 0x361   :  { %5859 = vmatprep.subr.bf16.mxu1 %v8855_v53  ;;  %v8897_v53 = vld [vmem:[#allocation6 + $0xa4] ss:$8 sps:$4 sm:$0xff]  }
 0x363   :  { %5817 = vmatpush2.bf16.msra.mxu0 %v8850_v1  ;;  %v8900_v1 = vld [vmem:[#allocation6 + $0x94] ss:$8 sps:$4 sm:$0xff]  }
 0x364   :  { %5860 = vmatpush2.bf16.msra.mxu1 %v8853_v21  ;;  %6272 = vmatprep.subr.bf16.mxu0 %v8858_v54  ;;  %v8937_v21 = vld [vmem:[#allocation6 + $0x1c0] ss:$8 sps:$4 sm:$0xff]   ;;  %v8942_v54 = vld [vmem:[#allocation6 + $0x1b4] ss:$8 sps:$4 sm:$0xff]  }
 0x365   :  { %6315 = vmatprep.subr.bf16.mxu1 %v8906_v43 }
 0x366   :  { %5819 = vmatmul.mubr.bf16.vlgmr.msra.gmra.mxu0 %v9488_v2  ;;  %v8907_v2 = vld [vmem:[#allocation6 + $0x160] ss:$8 sps:$4 sm:$0xff]  }
 0x367   :  { %5862 = vmatmul.mubr.bf16.vlgmr.msra.gmra.mxu1 %v9490_v3  ;;  %6273 = vmatpush1.bf16.msra.mxu0 %v8856_v61  ;;  %v8868_v3 = vld [vmem:[#allocation6 + $0x30] ss:$8 sps:$4 sm:$0xff]   ;;  %v8901_v61 = vld [vmem:[#allocation6 + $0x80] ss:$8 sps:$4 sm:$0xff]  }
 0x368   :  { %6304 = vmatprep.mubr.bf16.mxu0 %v5873_v22  ;;  %6274 = vmatprep.subr.bf16.mxu0 %v8861_v33  ;;  %v8945_v33 = vld [vmem:[#allocation6 + $0x1a4] ss:$8 sps:$4 sm:$0xff]   ;;  %v8943_v22 = vld [vmem:[#allocation6 + $0x1a0] ss:$8 sps:$4 sm:$0xff]  }
 0x369   :  { %6316 = vmatpush1.bf16.msra.mxu1 %v8904_v27  ;;  %v5433_v27 = vpop.f32.mrf.mxu1 }
 0x36a   :  { %6317 = vmatprep.subr.bf16.mxu1 %v8909_v31 }
 0x36b   :  { %6275 = vmatpush1.bf16.msra.mxu0 %v8859_v5  ;;  %v8948_v5 = vld [vmem:[#allocation6 + $0x194] ss:$8 sps:$4 sm:$0xff]  }
 0x36c   :  { %6276 = vmatprep.subr.bf16.mxu0 %v8864_v38  ;;  %v8946_v38 = vld [vmem:[#allocation6 + $0x190] ss:$8 sps:$4 sm:$0xff]  }
 0x36d   :  { %6318 = vmatpush1.bf16.msra.mxu1 %v8907_v2 }
 0x36e   :  { %6319 = vmatprep.subr.bf16.mxu1 %v8912_v32  ;;  %v8954_v32 = vld [vmem:[#allocation9 + $0x70] sm:$0xff]  }
 0x36f   :  { %6277 = vmatpush1.bf16.msra.mxu0 %v8862_v39  ;;  %v8951_v39 = vld [vmem:[#allocation6 + $0x184] ss:$8 sps:$4 sm:$0xff]  }
 0x370   :  { %6278 = vmatprep.subr.bf16.mxu0 %v8867_v26  ;;  %v8949_v26 = vld [vmem:[#allocation6 + $0x180] ss:$8 sps:$4 sm:$0xff]  }
 0x371   :  { %6320 = vmatpush1.bf16.msra.mxu1 %v8910_v29 }
 0x372   :  { %6321 = vmatprep.subr.bf16.mxu1 %v8915_v50  ;;  %v8956_v50 = vld [vmem:[#allocation9 + $0x68] sm:$0xff]  }
 0x373   :  { %6279 = vmatpush1.bf16.msra.mxu0 %v8865_v6  ;;  %v5390_v6 = vpop.f32.mrf.mxu0 }
 0x374   :  { %6280 = vmatprep.subr.bf16.mxu0 %v8870_v34  ;;  %v5435_v34 = vpop.f32.mrf.mxu1 }
 0x375   :  { %6322 = vmatpush1.bf16.msra.mxu1 %v8913_v63  ;;  %v5392_v43 = vpop.f32.mrf.mxu0 }
 0x376   :  { %6323 = vmatprep.subr.bf16.mxu1 %v8918_v42  ;;  %v5437_v2 = vpop.f32.mrf.mxu1  ;;  %v8958_v42 = vld [vmem:[#allocation9 + $0x60] sm:$0xff]  }
 0x377   :  { %6281 = vmatpush1.bf16.msra.mxu0 %v8868_v3  ;;  %v5394_v31 = vpop.f32.mrf.mxu0  ;;  %v8953_v3 = vld [vmem:[#allocation9 + $0x38] sm:$0xff]  }
 0x378   :  { %6282 = vmatprep.subr.bf16.mxu0 %v8873_v28  ;;  %v5439_v37 = vpop.f32.mrf.mxu1 }
 0x379   :  { %6324 = vmatpush1.bf16.msra.mxu1 %v8916_v4  ;;  %v5396_v20 = vpop.f32.mrf.mxu0 }
 0x37a   :  { %6325 = vmatprep.subr.bf16.mxu1 %v8921_v25  ;;  %v5519_v29 = vpop.f32.mrf.mxu1  ;;  %v8960_v25 = vld [vmem:[#allocation9 + $0x58] sm:$0xff]  }
 0x37b   :  { %6283 = vmatpush1.bf16.msra.mxu0 %v8871_v44  ;;  %v5476_v28 = vpop.f32.mrf.mxu0  ;;  %v8955_v44 = vld [vmem:[#allocation9 + $0x30] sm:$0xff]  }
 0x37c   :  { %6284 = vmatprep.subr.bf16.mxu0 %v8876_v55  ;;  %v5521_v63 = vpop.f32.mrf.mxu1 }
 0x37d   :  { %6326 = vmatpush1.bf16.msra.mxu1 %v8919_v36  ;;  %v5478_v55 = vpop.f32.mrf.mxu0 }
 0x37e   :  { %6327 = vmatprep.subr.bf16.mxu1 %v8924_v40  ;;  %v5523_v4 = vpop.f32.mrf.mxu1 }
 0x37f   :  { %6285 = vmatpush1.bf16.msra.mxu0 %v8874_v41  ;;  %v8957_v41 = vld [vmem:[#allocation9 + $0x28] sm:$0xff]  }
 0x380   :  { %6286 = vmatprep.subr.bf16.mxu0 %v8879_v48  ;;  %v5480_v48 = vpop.f32.mrf.mxu0  ;;  %v5525_v36 = vpop.f32.mrf.mxu1 }
 0x381   :  { %6328 = vmatpush1.bf16.msra.mxu1 %v8922_v30 }
 0x382   :  { %6329 = vmatprep.subr.bf16.mxu1 %v8927_v11  ;;  %v5605_v40 = vpop.f32.mrf.mxu1 }
 0x383   :  { %6287 = vmatpush1.bf16.msra.mxu0 %v8877_v56  ;;  %v8959_v56 = vld [vmem:[#allocation9 + $0x20] sm:$0xff]  }
 0x384   :  { %6288 = vmatprep.subr.bf16.mxu0 %v8882_v35  ;;  %v5482_v35 = vpop.f32.mrf.mxu0 }
 0x385   :  { %6330 = vmatpush1.bf16.msra.mxu1 %v8925_v12  ;;  %v994_v12 = vsub.s32 3, %v9377_v7 }
 0x386   :  { %6331 = vmatprep.subr.bf16.mxu1 %v8930_v9 }
 0x387   :  { %6289 = vmatpush2.bf16.msra.mxu0 %v8880_v49  ;;  %v5562_v49 = vpop.f32.mrf.mxu0 }
 0x388   :  { %6290 = vmatprep.subr.bf16.mxu0 %v8885_v15  ;;  %v8961_v15 = vld [vmem:[#allocation9 + $0x18] sm:$0xff]  }
 0x389   :  { %6332 = vmatpush2.bf16.msra.mxu1 %v8928_v13  ;;  %v5564_v30 = vpop.f32.mrf.mxu0  ;;  %v995_v13 = vrot.slane %v9575_v59, %v994_v12 }
 0x38a   :  { %6333 = vmatprep.subr.bf16.mxu1 %v8933_v24 }
 0x38b   :  { %6291 = vmatpush2.bf16.msra.mxu0 %v8883_v46  ;;  %v5607_v46 = vpop.f32.mrf.mxu1  ;;  %v5566_v11 = vpop.f32.mrf.mxu0 }
 0x38c   :  { %6292 = vmatprep.subr.bf16.mxu0 %v8888_v60 }
 0x38d   :  { %6334 = vmatpush2.bf16.msra.mxu1 %v8931_v10  ;;  %v5609_v60 = vpop.f32.mrf.mxu1  ;;  %v5568_v9 = vpop.f32.mrf.mxu0  ;;  %v5393_v10 = vadd.f32 %v5392_v43, %v995_v13 }
 0x38e   :  { %6335 = vmatprep.subr.bf16.mxu1 %v8936_v52 }
 0x38f   :  { %6293 = vmatpush2.bf16.msra.mxu0 %v8886_v16  ;;  %v990_v16 = vsub.s32 2, %v9377_v7 }
 0x390   :  { %6294 = vmatprep.subr.bf16.mxu0 %v8891_v51  ;;  %v5611_v51 = vpop.f32.mrf.mxu1 }
 0x391   :  { %6336 = vmatpush2.bf16.msra.mxu1 %v8934_v45 }
 0x392   :  { %6337 = vmatprep.subr.bf16.mxu1 %v8939_v0  ;;  %v5436_v0 = vadd.f32 %v5435_v34, %v5393_v10 }
 0x393   :  { %6295 = vmatpush2.bf16.msra.mxu0 %v8889_v58  ;;  %v991_v58 = vrot.slane %v9575_v59, %v990_v16 }
 0x394   :  { %6296 = vmatprep.subr.bf16.mxu0 %v8894_v14 }
 0x395   :  { %6338 = vmatpush2.bf16.msra.mxu1 %v8937_v21  ;;  %v5391_v52 = vadd.f32 %v5390_v6, %v991_v58 }
 0x396   :  { %6339 = vmatprep.subr.bf16.mxu1 %v8942_v54 }
 0x397   :  { %6297 = vmatpush2.bf16.msra.mxu0 %v8892_v62  ;;  %v5395_v62 = vadd.f32 %v5394_v31, %v991_v58  ;;  %v5434_v21 = vadd.f32 %v5433_v27, %v5391_v52 }
 0x398   :  { %6298 = vmatprep.subr.bf16.mxu0 %v8897_v53 }
 0x399   :  { %6340 = vmatpush2.bf16.msra.mxu1 %v8940_v23  ;;  %v5479_v23 = vadd.f32 %v5478_v55, %v5436_v0 }
 0x39a   :  { %6341 = vmatprep.subr.bf16.mxu1 %v8945_v33  ;;  %v5477_v33 = vadd.f32 %v5476_v28, %v5434_v21 }
 0x39b   :  { %6299 = vmatpush2.bf16.msra.mxu0 %v8895_v47  ;;  %v5397_v47 = vadd.f32 %v5396_v20, %v995_v13 }
 0x39c   :  { %6300 = vmatprep.subr.bf16.mxu0 %v8900_v1  ;;  %v5438_v1 = vadd.f32 %v5437_v2, %v5395_v62 }
 0x39d   :  { %6342 = vmatpush2.bf16.msra.mxu1 %v8943_v22 }
 0x39e   :  { %6343 = vmatprep.subr.bf16.mxu1 %v8948_v5 }
 0x39f   :  { %6301 = vmatpush2.bf16.msra.mxu0 %v8898_v8 }
 0x3a0   :  { %6302 = vmatprep.subr.bf16.mxu0 %v8903_v18  ;;  %v5440_v18 = vadd.f32 %v5439_v37, %v5397_v47 }
 0x3a1   :  { %6344 = vmatpush2.bf16.msra.mxu1 %v8946_v38  ;;  %v5522_v38 = vadd.f32 %v5521_v63, %v5479_v23  ;;  %v8963_v23 = vld [vmem:[#allocation9 + $0x10] sm:$0xff]  }
 0x3a2   :  { %6345 = vmatprep.subr.bf16.mxu1 %v8951_v39  ;;  %v5483_v22 = vadd.f32 %v5482_v35, %v5440_v18  ;;  %v8962_v18 = vld [vmem:[#allocation9 + $0x50] sm:$0xff]  }
 0x3a3   :  { %6303 = vmatpush2.bf16.msra.mxu0 %v8901_v61  ;;  %v5481_v61 = vadd.f32 %v5480_v48, %v5438_v1 }
 0x3a4   :  { %v5526_v31 = vadd.f32 %v5525_v36, %v5483_v22  ;;  %v8966_v22 = vld [vmem:[#allocation9 + $0x40] sm:$0xff]  }
 0x3a5   :  { %6346 = vmatpush2.bf16.msra.mxu1 %v8949_v26  ;;  %v5524_v39 = vadd.f32 %v5523_v4, %v5481_v61  ;;  %v5520_v26 = vadd.f32 %v5519_v29, %v5477_v33  ;;  %v8964_v61 = vld [vmem:[#allocation9 + $0x48] sm:$0xff]  }
 0x3a6   :  { %6305 = vmatmul.mubr.bf16.vlgmr.msra.gmra.mxu0 %v5872_v17  ;;  %v8952_v17 = vld [vmem:[#allocation9 + $0x78] sm:$0xff]   ;;  %v5648_v24 = vpop.f32.mrf.mxu0  ;;  %v5569_v2 = vadd.f32 %v5568_v9, %v5526_v31  ;;  %v8965_v33 = vld [vmem:[#allocation9 + $0x8] sm:$0xff]  }
 0x3a7   :  { %7620 = vmatprep.subr.bf16.mxu0 %v8952_v17  ;;  %v5691_v14 = vpop.f32.mrf.mxu1  ;;  %v5565_v17 = vadd.f32 %v5564_v30, %v5522_v38  ;;  %v5567_v20 = vadd.f32 %v5566_v11, %v5524_v39  ;;  %v5563_v34 = vadd.f32 %v5562_v49, %v5520_v26  ;;  %v9165_v38 = vmov 0.0   ;;  %v8969_v39 = vld [vmem:[%s9678_s7 + $0x30] sm:$0xff]   ;;  %v8970_v26 = vld [vmem:[%s9678_s7 + $0x28] sm:$0xff]  }
 0x3a8   :  { %7621 = vmatpush3.bf16.msra.mxu0 %v8953_v3  ;;  %v5650_v53 = vpop.f32.mrf.mxu0  ;;  %7656 = vmatprep.subr.bf16.mxu1 %v9165_v38 }
 0x3a9   :  { %7622 = vmatprep.subr.bf16.mxu0 %v8954_v32  ;;  %v5693_v45 = vpop.f32.mrf.mxu1  ;;  %v5608_v32 = vadd.f32 %v5607_v46, %v5565_v17  ;;  %v5610_v37 = vadd.f32 %v5609_v60, %v5567_v20  ;;  %v5940_v17 = vld [vmem:[#allocation7] sm:$0x3] }
 0x3aa   :  { %v5652_v8 = vpop.f32.mrf.mxu0 }
 0x3ab   :  { %v5695_v54 = vpop.f32.mrf.mxu1  ;;  %v5651_v28 = vadd.f32 %v5650_v53, %v5608_v32  ;;  %v5653_v55 = vadd.f32 %v5652_v8, %v5610_v37 }
 0x3ac   :  { %7623 = vmatpush3.bf16.msra.mxu0 %v8955_v44  ;;  %v5654_v5 = vpop.f32.mrf.mxu0  ;;  %v5606_v44 = vadd.f32 %v5605_v40, %v5563_v34  ;;  %v5949_v34 = vrot.slane %v5940_v17, %v986_v57 }
 0x3ad   :  { %7624 = vmatprep.subr.bf16.mxu0 %v8956_v50  ;;  %v5697_v59 = vpop.f32.mrf.mxu1  ;;  %v5612_v50 = vadd.f32 %v5611_v51, %v5569_v2  ;;  %v5694_v29 = vadd.f32 %v5693_v45, %v5651_v28  ;;  %v5696_v4 = vadd.f32 %v5695_v54, %v5653_v55  ;;  %v5945_v2 = vrot.slane %v5940_v17, %v982_v19  ;;  %v8972_v19 = vld [vmem:[%s9678_s7 + $0x18] sm:$0xff]  }
 0x3af   :  { %v5655_v48 = vadd.f32 %v5654_v5, %v5612_v50  ;;  %v8967_v5 = vld [vmem:[#allocation9] sm:$0xff]  }
 0x3b0   :  { %7625 = vmatpush3.bf16.msra.mxu0 %v8957_v41  ;;  %v5649_v41 = vadd.f32 %v5648_v24, %v5606_v44 }
 0x3b1   :  { %7626 = vmatprep.subr.bf16.mxu0 %v8958_v42  ;;  %v5698_v36 = vadd.f32 %v5697_v59, %v5655_v48  ;;  %v8968_v59 = vld [vmem:[%s9678_s7 + $0x38] sm:$0xff]  }
 0x3b4   :  { %7627 = vmatpush3.bf16.msra.mxu0 %v8959_v56  ;;  %v5692_v56 = vadd.f32 %v5691_v14, %v5649_v41 }
 0x3b5   :  { %7628 = vmatprep.subr.bf16.mxu0 %v8960_v25 }
 0x3b8   :  { %7629 = vmatpush3.bf16.msra.mxu0 %v8961_v15 }
 0x3b9   :  { %7630 = vmatprep.subr.bf16.mxu0 %v8962_v18 }
 0x3bc   :  { %7631 = vmatpush3.bf16.msra.mxu0 %v8963_v23 }
 0x3bd   :  { %7632 = vmatprep.subr.bf16.mxu0 %v8964_v61  ;;  %v7614_v61 = vld [vmem:[#allocation13] ss:$0 sm:$0xff] }
 0x3c0   :  { %7633 = vmatpush3.bf16.msra.mxu0 %v8965_v33 }
 0x3c1   :  { %7634 = vmatprep.subr.bf16.mxu0 %v8966_v22 }
 0x3c4   :  { %7635 = vmatpush3.bf16.msra.mxu0 %v8967_v5 }
 0x3c5   :  { %7676 = vmatprep.subr.bf16.mxu0 %v9165_v38 }
 0x3e6   :  { %v5734_v43 = vpop.f32.mrf.mxu0 }
 0x3e7   :  { %v5777_v6 = vpop.f32.mrf.mxu1  ;;  %v5735_v30 = vadd.f32 %v5734_v43, %v5692_v56  ;;  %v8971_v43 = vld [vmem:[%s9678_s7 + $0x20] sm:$0xff]  }
 0x3e8   :  { %v5736_v27 = vpop.f32.mrf.mxu0 }
 0x3e9   :  { %v5779_v3 = vpop.f32.mrf.mxu1  ;;  %v5737_v49 = vadd.f32 %v5736_v27, %v5694_v29  ;;  %v5778_v51 = vadd.f32 %v5777_v6, %v5735_v30  ;;  %v8976_v30 = vld [vmem:[%s9680_s9 + $0x18] sm:$0xff]  }
 0x3ea   :  { %v5738_v42 = vpop.f32.mrf.mxu0 }
 0x3eb   :  { %v5781_v63 = vpop.f32.mrf.mxu1  ;;  %v5739_v15 = vadd.f32 %v5738_v42, %v5696_v4  ;;  %v5780_v16 = vadd.f32 %v5779_v3, %v5737_v49  ;;  %v8974_v49 = vld [vmem:[%s9678_s7 + $0x8] sm:$0xff]  }
 0x3ec   :  { %v5740_v25 = vpop.f32.mrf.mxu0 }
 0x3ed   :  { %v5783_v35 = vpop.f32.mrf.mxu1  ;;  %v5741_v60 = vadd.f32 %v5740_v25, %v5698_v36  ;;  %v5782_v9 = vadd.f32 %v5781_v63, %v5739_v15  ;;  %v8973_v36 = vld [vmem:[%s9678_s7 + $0x10] sm:$0xff]   ;;  %v8975_v15 = vld [vmem:[%s9678_s7] sm:$0xff]  }
 0x3ef   :  { %v5784_v24 = vadd.f32 %v5783_v35, %v5741_v60 }
 0x426   :  { %v5820_v11 = vpop.f32.mrf.mxu0 }
 0x427   :  { %v5863_v46 = vpop.f32.mrf.mxu1  ;;  %v5821_v14 = vadd.f32 %v5820_v11, %v5778_v51 }
 0x428   :  { %v5822_v40 = vpop.f32.mrf.mxu0 }
 0x429   :  { %v5865_v12 = vpop.f32.mrf.mxu1  ;;  %v5823_v10 = vadd.f32 %v5822_v40, %v5780_v16  ;;  %v5864_v21 = vadd.f32 %v5863_v46, %v5821_v14  ;;  %v7588_v40 = vld [vmem:[#allocation10] ss:$0 sm:$0xff]  ;;  %v8978_v14 = vld [vmem:[%s9680_s9 + $0x8] sm:$0xff]  }
 0x42a   :  { %v5824_v13 = vpop.f32.mrf.mxu0 }
 0x42b   :  { %v5867_v58 = vpop.f32.mrf.mxu1  ;;  %v5825_v62 = vadd.f32 %v5824_v13, %v5782_v9  ;;  %v5866_v0 = vadd.f32 %v5865_v12, %v5823_v10 }
 0x42c   :  { %v5826_v52 = vpop.f32.mrf.mxu0 }
 0x42d   :  { %v5827_v53 = vadd.f32 %v5826_v52, %v5784_v24  ;;  %v5868_v45 = vadd.f32 %v5867_v58, %v5825_v62  ;;  %v5869_v47 = vpop.f32.mrf.mxu1  ;;  %v8977_v62 = vld [vmem:[%s9680_s9 + $0x10] sm:$0xff]   ;;  %v8979_v52 = vld [vmem:[%s9680_s9] sm:$0xff]  }
 0x42f   :  { %v5870_v1 = vadd.f32 %v5869_v47, %v5827_v53  ;;  %v5874_v54 = vpack.c.bf16 %v5868_v45, %v5864_v21  ;;  %v7605_v53 = vld [vmem:[#allocation12] ss:$0 sm:$0xff] }
 0x431   :  { %v5875_v8 = vpack.c.bf16 %v5870_v1, %v5866_v0 }
 0x433   :  { %6347 = vmatprep.mubr.bf16.mxu1 %v5875_v8 }
 0x434   :  { %6348 = vmatmul.mubr.bf16.vlgmr.msra.gmra.mxu1 %v5874_v54 }
 0x435   :  { %7657 = vmatpush3.bf16.msra.mxu1 %v8968_v59  ;;  %7672 = vmatprep.mubr.msk.bf16.mxu1 %vm9166_vm0, %v9165_v38 }
 0x436   :  { %7658 = vmatprep.subr.bf16.mxu1 %v9165_v38 }
 0x439   :  { %7659 = vmatpush3.bf16.msra.mxu1 %v8969_v39 }
 0x43a   :  { %7660 = vmatprep.subr.bf16.mxu1 %v9165_v38 }
 0x43d   :  { %7661 = vmatpush3.bf16.msra.mxu1 %v8970_v26 }
 0x43e   :  { %7662 = vmatprep.subr.bf16.mxu1 %v9165_v38 }
 0x441   :  { %7663 = vmatpush3.bf16.msra.mxu1 %v8971_v43 }
 0x442   :  { %7664 = vmatprep.subr.bf16.mxu1 %v9165_v38 }
 0x445   :  { %7665 = vmatpush3.bf16.msra.mxu1 %v8972_v19 }
 0x446   :  { %7666 = vmatprep.subr.bf16.mxu1 %v9165_v38 }
 0x449   :  { %7667 = vmatpush3.bf16.msra.mxu1 %v8973_v36 }
 0x44a   :  { %7668 = vmatprep.subr.bf16.mxu1 %v9165_v38 }
 0x44d   :  { %7669 = vmatpush3.bf16.msra.mxu1 %v8974_v49 }
 0x44e   :  { %7670 = vmatprep.subr.bf16.mxu1 %v9165_v38 }
 0x451   :  { %7671 = vmatpush3.bf16.msra.mxu1 %v8975_v15 }
 0x466   :  { %v6306_v6 = vpop.f32.mrf.mxu0 }
 0x467   :  { %v6307_v50 = vadd.f32 %v6306_v6, %v5945_v2 }
 0x468   :  { %v6308_v31 = vpop.f32.mrf.mxu0 }
 0x469   :  { %v6309_v37 = vadd.f32 %v6308_v31, %v5949_v34 }
 0x46a   :  { %v6310_v20 = vpop.f32.mrf.mxu0 }
 0x46b   :  { %v6311_v44 = vadd.f32 %v6310_v20, %v5945_v2 }
 0x46c   :  { %v6312_v3 = vpop.f32.mrf.mxu0 }
 0x46d   :  { %v6313_v55 = vadd.f32 %v6312_v3, %v5949_v34 }
 0x4f4   :  { %v6349_v27 = vpop.f32.mrf.mxu1 }
 0x4f5   :  { %v6350_v63 = vadd.f32 %v6349_v27, %v6307_v50 }
 0x4f6   :  { %v6351_v32 = vpop.f32.mrf.mxu1 }
 0x4f7   :  { %v6352_v41 = vadd.f32 %v6351_v32, %v6309_v37  ;;  %v6358_v57 = vmax.f32 %v6350_v63, 0.0 }
 0x4f8   :  { %v6353_v28 = vpop.f32.mrf.mxu1 }
 0x4f9   :  { %v6354_v42 = vadd.f32 %v6353_v28, %v6311_v44  ;;  %v6359_v56 = vmax.f32 %v6352_v41, 0.0 }
 0x4fa   :  { %v6355_v48 = vpop.f32.mrf.mxu1 }
 0x4fb   :  { %v6356_v29 = vadd.f32 %v6355_v48, %v6313_v55  ;;  %v6360_v4 = vmax.f32 %v6354_v42, 0.0 }
 0x4fd   :  { %v6361_v25 = vmax.f32 %v6356_v29, 0.0  ;;  %v6362_v7 = vpack.c.bf16 %v6360_v4, %v6358_v57 }
 0x4ff   :  { %v6363_v35 = vpack.c.bf16 %v6361_v25, %v6359_v56 }
 0x501   :  { %6531 = vmatprep.mubr.bf16.mxu0 %v6363_v35 }
 0x502   :  { %6532 = vmatmul.mubr.bf16.vlgmr.msra.gmra.mxu0 %v6362_v7 }
 0x503   :  { %7684 = vmatprep.mubr.msk.bf16.mxu0 %vm9166_vm0, %v9165_v38  ;;  %7677 = vmatpush3.bf16.msra.mxu0 %v8976_v30 }
 0x504   :  { %7678 = vmatprep.subr.bf16.mxu0 %v9165_v38 }
 0x507   :  { %7679 = vmatpush3.bf16.msra.mxu0 %v8977_v62 }
 0x508   :  { %7680 = vmatprep.subr.bf16.mxu0 %v9165_v38 }
 0x50b   :  { %7681 = vmatpush3.bf16.msra.mxu0 %v8978_v14 }
 0x50c   :  { %7682 = vmatprep.subr.bf16.mxu0 %v9165_v38 }
 0x50f   :  { %7683 = vmatpush3.bf16.msra.mxu0 %v8979_v52 }
 0x5c2   :  { %v7636_v11 = vpop.f32.mrf.mxu0 }
 0x5c4   :  { %v7637_v46 = vpop.f32.mrf.mxu0 }
 0x5c5   :  { %v7638_v60 = vadd.f32 %v7637_v46, %v7636_v11 }
 0x5c6   :  { %v7639_v12 = vpop.f32.mrf.mxu0 }
 0x5c7   :  { %v6534_v9 = vadd.f32 %v7638_v60, %v7588_v40 }
 0x5c8   :  { %v7640_v16 = vpop.f32.mrf.mxu0 }
 0x5c9   :  { %v7641_v51 = vadd.f32 %v7640_v16, %v7639_v12  ;;  %v6540_v58 = vmax.f32 %v6534_v9, 0.0 }
 0x5cb   :  { %v6537_v13 = vadd.f32 %v7641_v51, %v7588_v40 }
 0x5cd   :  { %v6541_v24 = vmax.f32 %v6537_v13, 0.0 }
 0x5cf   :  { %v6542_v10 = vpack.c.bf16 %v6541_v24, %v6540_v58 }
 0x5d1   :  { %7673 = vmatmul.mubr.bf16.vlgmr.msra.gmra.mxu1 %v6542_v10 }
 0x691   :  { %v6648_v45 = vpop.f32.mrf.mxu1 }
 0x692   :  { %v6649_v0 = vadd.f32 %v7605_v53, %v6648_v45 }
 0x693   :  { %v7674_v47 = vpop.f32.mrf.mxu1 }
 0x694   :  { %v6655_v54 = vmax.f32 %v6649_v0, 0.0 }
 0x695   :  { %v6651_v1 = vpop.f32.mrf.mxu1 }
 0x696   :  { %v6652_v21 = vadd.f32 %v7605_v53, %v6651_v1 }
 0x697   :  { %v7675_v8 = vpop.f32.mrf.mxu1 }
 0x698   :  { %v6656_v18 = vmax.f32 %v6652_v21, 0.0 }
 0x69a   :  { %v6657_v23 = vpack.c.bf16 %v6656_v18, %v6655_v54 }
 0x69c   :  { %7685 = vmatmul.mubr.msk.bf16.vlgmr.msra.gmra.mxu0 %vm6697_vm1, %v6657_v23 }
 0x75c   :  { %v6735_v33 = vpop.f32.mrf.mxu0 }
 0x75d   :  { %v6736_v22 = vadd.f32 %v7614_v61, %v6735_v33 }
 0x75e   :  { %v7686_v5 = vpop.f32.mrf.mxu0 }
 0x75f   :  { %v6742_v59 = vmax.f32 %v6736_v22, 0.0 }
 0x760   :  { %v6738_v38 = vpop.f32.mrf.mxu0 }
 0x761   :  { %6745 = vst.msk [vmem:[%s9682_s11] sm:$0xff] %vm6744_vm2, %v6742_v59  ;;  %v6739_v39 = vadd.f32 %v7614_v61, %v6738_v38 }
 0x762   :  { %v7687_v26 = vpop.f32.mrf.mxu0 }
 0x763   :  { %v6743_v43 = vmax.f32 %v6739_v39, 0.0 }
 0x765   :  { %6746 = vst.msk [vmem:[%s9682_s11 + $0x8] sm:$0xff] %vm6744_vm2, %v6743_v43 }
 0x766   :  { %6751 = vsyncpa [#allocation3], 1 }
 0x767   :  { %6752 = vsyncpa [#allocation5], 1 }
 0x768   :  { %6753 = vsyncpa [#allocation8], 1 }
 0x769   :  { %6754 = vsyncpa [#allocation11], 1 }
 0x76a   :  { %6755 = vsyncpa [#allocation14], 1 }

</bundles_post_ra>
